<compile_context>
chip_gen: v5e
topology: v5e:2x2
jax: 0.10.0
libtpu: 0.0.40
codegen_flags: <defaults>
</compile_context>

<pallas_src>
import jax
import jax.numpy as jnp
from jax.experimental import pallas as pl
from jax.experimental.pallas import tpu as pltpu

IN_FEATURES = 28 * 28            # 784
IN_FEATURES_PAD = 896            # 7 * 128, lane-aligned K for the first matmul
H1, H2, H3 = 1024, 512, 256      # lin1 / lin2 / lin3 widths
OUT_PAD = 128                    # lane-dense final layer / output slab
DROPOUT_P = 0.2
LEAKY_SLOPE = 0.2
MAX_TILE_B = 256                 # MXU-filling batch tile


def _round_up(n, m):
    return ((n + m - 1) // m) * m


def _leaky_relu(h):
    return jnp.where(h >= 0.0, h, LEAKY_SLOPE * h)


def discriminator_kernel(x_ref, m1_ref, m2_ref, m3_ref,
                         w1_ref, b1_ref, w2_ref, b2_ref,
                         w3_ref, b3_ref, w4_ref, b4_ref,
                         out_ref):
    # lin1 + LeakyReLU + dropout (mask holds 0 or 1/(1-p) -> single multiply)
    h = jnp.dot(x_ref[...], w1_ref[...], preferred_element_type=jnp.float32)
    h = _leaky_relu(h + b1_ref[...])
    h = h.astype(jnp.bfloat16) * m1_ref[...]

    # lin2 + LeakyReLU + dropout
    h = jnp.dot(h, w2_ref[...], preferred_element_type=jnp.float32)
    h = _leaky_relu(h + b2_ref[...])
    h = h.astype(jnp.bfloat16) * m2_ref[...]

    # lin3 + LeakyReLU + dropout
    h = jnp.dot(h, w3_ref[...], preferred_element_type=jnp.float32)
    h = _leaky_relu(h + b3_ref[...])
    h = h.astype(jnp.bfloat16) * m3_ref[...]

    # lin4: padded to 128 lanes (zero columns), only column 0 is the real logit.
    h = jnp.dot(h, w4_ref[...], preferred_element_type=jnp.float32)
    out_ref[...] = (h + b4_ref[...]).astype(out_ref.dtype)


@jax.jit
def simple_discriminator(x, params, seed):
    """x: (B, C, H, W) or (B, F) float32.  Returns logits of shape (B,)."""
    w1, b1, w2, b2, w3, b3, w4, b4 = params   # kernel-ready (bf16 weights, padded)
    b = x.shape[0]
    x2d = x.reshape(b, -1)
    assert x2d.shape[1] == IN_FEATURES

    tile_b = min(MAX_TILE_B, _round_up(b, 8))
    b_pad = _round_up(b, tile_b)
    num_tiles = b_pad // tile_b

    # Zero-pad batch to a multiple of the tile and features to 896 lanes.
    x_pad = jnp.zeros((b_pad, IN_FEATURES_PAD), jnp.bfloat16)
    x_pad = x_pad.at[:b, :IN_FEATURES].set(x2d.astype(jnp.bfloat16))

    # Precomputed inverted-dropout masks: value is 0 (dropped) or 1/(1-p) (kept).
    # TODO(synk): RNG stream differs from torch's F.dropout — only the distribution matches.
    scale = 1.0 / (1.0 - DROPOUT_P)
    k1, k2, k3 = jax.random.split(jax.random.PRNGKey(seed), 3)

    def mask(k, n):
        keep = jax.random.bernoulli(k, 1.0 - DROPOUT_P, (b_pad, n))
        return jnp.where(keep, scale, 0.0).astype(jnp.bfloat16)

    m1, m2, m3 = mask(k1, H1), mask(k2, H2), mask(k3, H3)

    row_spec = lambda n: pl.BlockSpec((tile_b, n), lambda i: (i, 0))
    const_spec = lambda shp: pl.BlockSpec(shp, lambda i: (0, 0))

    out = pl.pallas_call(
        discriminator_kernel,
        out_shape=jax.ShapeDtypeStruct((b_pad, OUT_PAD), jnp.float32),
        grid=(num_tiles,),
        in_specs=[
            row_spec(IN_FEATURES_PAD),                       # x tile
            row_spec(H1), row_spec(H2), row_spec(H3),        # dropout mask tiles
            const_spec((IN_FEATURES_PAD, H1)), const_spec((1, H1)),
            const_spec((H1, H2)),              const_spec((1, H2)),
            const_spec((H2, H3)),              const_spec((1, H3)),
            const_spec((H3, OUT_PAD)),         const_spec((1, OUT_PAD)),
        ],
        out_specs=row_spec(OUT_PAD),
        compiler_params=pltpu.CompilerParams(
            dimension_semantics=("parallel",),   # shards batch tiles across v7x's 2 TCs
            vmem_limit_bytes=48 * 1024 * 1024,   # headroom for double-buffered bf16 weights
        ),
    )(x_pad, m1, m2, m3, w1, b1, w2, b2, w3, b3, w4, b4)

    # logits live in lane 0; drop batch padding; matches x.squeeze_() -> (B,)
    return out[:b, 0]


def init_params(key):
    """nn.Linear-style init, returned in kernel-ready layout (bf16, padded)."""
    ks = jax.random.split(key, 8)

    def linear(kw, kb, fan_in, fan_out):
        bound = 1.0 / jnp.sqrt(jnp.float32(fan_in))
        w = jax.random.uniform(kw, (fan_in, fan_out), jnp.float32, -bound, bound)
        bvec = jax.random.uniform(kb, (1, fan_out), jnp.float32, -bound, bound)
        return w, bvec

    w1, b1 = linear(ks[0], ks[1], IN_FEATURES, H1)
    w2, b2 = linear(ks[2], ks[3], H1, H2)
    w3, b3 = linear(ks[4], ks[5], H2, H3)
    w4, b4 = linear(ks[6], ks[7], H3, 1)

    # Kernel-ready: bf16 weights, zero-pad first-layer K to 896 and last layer to 128 lanes.
    w1p = jnp.zeros((IN_FEATURES_PAD, H1), jnp.bfloat16)
    w1p = w1p.at[:IN_FEATURES, :].set(w1.astype(jnp.bfloat16))
    w4p = jnp.zeros((H3, OUT_PAD), jnp.bfloat16).at[:, :1].set(w4.astype(jnp.bfloat16))
    b4p = jnp.zeros((1, OUT_PAD), jnp.float32).at[:, :1].set(b4)

    return (w1p, b1,
            w2.astype(jnp.bfloat16), b2,
            w3.astype(jnp.bfloat16), b3,
            w4p, b4p)


if __name__ == "__main__":
    key = jax.random.PRNGKey(0)
    k_params, k_x = jax.random.split(key)

    params = init_params(k_params)
    # Small MNIST-like batch: (B=8, C=1, H=28, W=28) -> flattened to 784 inside.
    x = jax.random.normal(k_x, (8, 1, 28, 28), dtype=jnp.float32)

    logits = simple_discriminator(x, params, 1234)
    jax.block_until_ready(logits)

    assert logits.shape == (8,)
    assert jnp.all(jnp.isfinite(logits))
    print("KERNEL_OK")
</pallas_src>

<mosaic_0001>
module attributes {stable_mosaic.version = 11 : i64} {
  func.func @discriminator_kernel(%arg0: i32, %arg1: memref<8x896xbf16, #tpu.memory_space<vmem>>, %arg2: memref<8x1024xbf16, #tpu.memory_space<vmem>>, %arg3: memref<8x512xbf16, #tpu.memory_space<vmem>>, %arg4: memref<8x256xbf16, #tpu.memory_space<vmem>>, %arg5: memref<896x1024xbf16, #tpu.memory_space<vmem>>, %arg6: memref<1x1024xf32, #tpu.memory_space<vmem>>, %arg7: memref<1024x512xbf16, #tpu.memory_space<vmem>>, %arg8: memref<1x512xf32, #tpu.memory_space<vmem>>, %arg9: memref<512x256xbf16, #tpu.memory_space<vmem>>, %arg10: memref<1x256xf32, #tpu.memory_space<vmem>>, %arg11: memref<256x128xbf16, #tpu.memory_space<vmem>>, %arg12: memref<1x128xf32, #tpu.memory_space<vmem>>, %arg13: memref<8x128xf32, #tpu.memory_space<vmem>>) attributes {dimension_semantics = [#tpu.dimension_semantics<parallel>], iteration_bounds = array<i64: 1>, scalar_prefetch = 0 : i64, scratch_operands = 0 : i64, tpu.core_type = #tpu.core_type<tc>, window_params = [{transform_indices = @transform_0, window_bounds = array<i64: 8, 896>}, {transform_indices = @transform_1, window_bounds = array<i64: 8, 1024>}, {transform_indices = @transform_2, window_bounds = array<i64: 8, 512>}, {transform_indices = @transform_3, window_bounds = array<i64: 8, 256>}, {pipeline_mode = #tpu.pipeline_mode<synchronous>, transform_indices = @transform_4, window_bounds = array<i64: 896, 1024>}, {pipeline_mode = #tpu.pipeline_mode<synchronous>, transform_indices = @transform_5, window_bounds = array<i64: 1, 1024>}, {pipeline_mode = #tpu.pipeline_mode<synchronous>, transform_indices = @transform_6, window_bounds = array<i64: 1024, 512>}, {pipeline_mode = #tpu.pipeline_mode<synchronous>, transform_indices = @transform_7, window_bounds = array<i64: 1, 512>}, {pipeline_mode = #tpu.pipeline_mode<synchronous>, transform_indices = @transform_8, window_bounds = array<i64: 512, 256>}, {pipeline_mode = #tpu.pipeline_mode<synchronous>, transform_indices = @transform_9, window_bounds = array<i64: 1, 256>}, {pipeline_mode = #tpu.pipeline_mode<synchronous>, transform_indices = @transform_10, window_bounds = array<i64: 256, 128>}, {pipeline_mode = #tpu.pipeline_mode<synchronous>, transform_indices = @transform_11, window_bounds = array<i64: 1, 128>}, {transform_indices = @transform_12, window_bounds = array<i64: 8, 128>}]} {
    %c0 = arith.constant 0 : index
    %c0_0 = arith.constant 0 : index
    %0 = vector.load %arg1[%c0, %c0_0] : memref<8x896xbf16, #tpu.memory_space<vmem>>, vector<8x896xbf16>
    %c0_1 = arith.constant 0 : index
    %c0_2 = arith.constant 0 : index
    %1 = vector.load %arg5[%c0_1, %c0_2] : memref<896x1024xbf16, #tpu.memory_space<vmem>>, vector<896x1024xbf16>
    %cst = arith.constant dense<0.000000e+00> : vector<8x1024xf32>
    %2 = tpu.matmul %0, %1, %cst {dimension_numbers = #tpu.dot_dimension_numbers<[1], [0], [0], [1], [0, 0, 1, 1], [], []>} : vector<8x896xbf16>, vector<896x1024xbf16>, vector<8x1024xf32> -> vector<8x1024xf32>
    %c0_3 = arith.constant 0 : index
    %c0_4 = arith.constant 0 : index
    %3 = vector.load %arg6[%c0_3, %c0_4] : memref<1x1024xf32, #tpu.memory_space<vmem>>, vector<1x1024xf32>
    %4 = vector.broadcast %3 : vector<1x1024xf32> to vector<8x1024xf32>
    %5 = arith.addf %2, %4 : vector<8x1024xf32>
    %cst_5 = arith.constant 0.000000e+00 : f32
    %6 = vector.broadcast %cst_5 : f32 to vector<8x1024xf32>
    %7 = arith.cmpf oge, %5, %6 : vector<8x1024xf32>
    %cst_6 = arith.constant 2.000000e-01 : f32
    %8 = vector.broadcast %cst_6 : f32 to vector<8x1024xf32>
    %9 = arith.mulf %8, %5 : vector<8x1024xf32>
    %10 = arith.select %7, %5, %9 : vector<8x1024xi1>, vector<8x1024xf32>
    %11 = arith.truncf %10 : vector<8x1024xf32> to vector<8x1024xbf16>
    %c0_7 = arith.constant 0 : index
    %c0_8 = arith.constant 0 : index
    %12 = vector.load %arg2[%c0_7, %c0_8] : memref<8x1024xbf16, #tpu.memory_space<vmem>>, vector<8x1024xbf16>
    %13 = arith.mulf %11, %12 : vector<8x1024xbf16>
    %c0_9 = arith.constant 0 : index
    %c0_10 = arith.constant 0 : index
    %14 = vector.load %arg7[%c0_9, %c0_10] : memref<1024x512xbf16, #tpu.memory_space<vmem>>, vector<1024x512xbf16>
    %cst_11 = arith.constant dense<0.000000e+00> : vector<8x512xf32>
    %15 = tpu.matmul %13, %14, %cst_11 {dimension_numbers = #tpu.dot_dimension_numbers<[1], [0], [0], [1], [0, 0, 1, 1], [], []>} : vector<8x1024xbf16>, vector<1024x512xbf16>, vector<8x512xf32> -> vector<8x512xf32>
    %c0_12 = arith.constant 0 : index
    %c0_13 = arith.constant 0 : index
    %16 = vector.load %arg8[%c0_12, %c0_13] : memref<1x512xf32, #tpu.memory_space<vmem>>, vector<1x512xf32>
    %17 = vector.broadcast %16 : vector<1x512xf32> to vector<8x512xf32>
    %18 = arith.addf %15, %17 : vector<8x512xf32>
    %cst_14 = arith.constant 0.000000e+00 : f32
    %19 = vector.broadcast %cst_14 : f32 to vector<8x512xf32>
    %20 = arith.cmpf oge, %18, %19 : vector<8x512xf32>
    %cst_15 = arith.constant 2.000000e-01 : f32
    %21 = vector.broadcast %cst_15 : f32 to vector<8x512xf32>
    %22 = arith.mulf %21, %18 : vector<8x512xf32>
    %23 = arith.select %20, %18, %22 : vector<8x512xi1>, vector<8x512xf32>
    %24 = arith.truncf %23 : vector<8x512xf32> to vector<8x512xbf16>
    %c0_16 = arith.constant 0 : index
    %c0_17 = arith.constant 0 : index
    %25 = vector.load %arg3[%c0_16, %c0_17] : memref<8x512xbf16, #tpu.memory_space<vmem>>, vector<8x512xbf16>
    %26 = arith.mulf %24, %25 : vector<8x512xbf16>
    %c0_18 = arith.constant 0 : index
    %c0_19 = arith.constant 0 : index
    %27 = vector.load %arg9[%c0_18, %c0_19] : memref<512x256xbf16, #tpu.memory_space<vmem>>, vector<512x256xbf16>
    %cst_20 = arith.constant dense<0.000000e+00> : vector<8x256xf32>
    %28 = tpu.matmul %26, %27, %cst_20 {dimension_numbers = #tpu.dot_dimension_numbers<[1], [0], [0], [1], [0, 0, 1, 1], [], []>} : vector<8x512xbf16>, vector<512x256xbf16>, vector<8x256xf32> -> vector<8x256xf32>
    %c0_21 = arith.constant 0 : index
    %c0_22 = arith.constant 0 : index
    %29 = vector.load %arg10[%c0_21, %c0_22] : memref<1x256xf32, #tpu.memory_space<vmem>>, vector<1x256xf32>
    %30 = vector.broadcast %29 : vector<1x256xf32> to vector<8x256xf32>
    %31 = arith.addf %28, %30 : vector<8x256xf32>
    %cst_23 = arith.constant 0.000000e+00 : f32
    %32 = vector.broadcast %cst_23 : f32 to vector<8x256xf32>
    %33 = arith.cmpf oge, %31, %32 : vector<8x256xf32>
    %cst_24 = arith.constant 2.000000e-01 : f32
    %34 = vector.broadcast %cst_24 : f32 to vector<8x256xf32>
    %35 = arith.mulf %34, %31 : vector<8x256xf32>
    %36 = arith.select %33, %31, %35 : vector<8x256xi1>, vector<8x256xf32>
    %37 = arith.truncf %36 : vector<8x256xf32> to vector<8x256xbf16>
    %c0_25 = arith.constant 0 : index
    %c0_26 = arith.constant 0 : index
    %38 = vector.load %arg4[%c0_25, %c0_26] : memref<8x256xbf16, #tpu.memory_space<vmem>>, vector<8x256xbf16>
    %39 = arith.mulf %37, %38 : vector<8x256xbf16>
    %c0_27 = arith.constant 0 : index
    %c0_28 = arith.constant 0 : index
    %40 = vector.load %arg11[%c0_27, %c0_28] : memref<256x128xbf16, #tpu.memory_space<vmem>>, vector<256x128xbf16>
    %cst_29 = arith.constant dense<0.000000e+00> : vector<8x128xf32>
    %41 = tpu.matmul %39, %40, %cst_29 {dimension_numbers = #tpu.dot_dimension_numbers<[1], [0], [0], [1], [0, 0, 1, 1], [], []>} : vector<8x256xbf16>, vector<256x128xbf16>, vector<8x128xf32> -> vector<8x128xf32>
    %c0_30 = arith.constant 0 : index
    %c0_31 = arith.constant 0 : index
    %42 = vector.load %arg12[%c0_30, %c0_31] : memref<1x128xf32, #tpu.memory_space<vmem>>, vector<1x128xf32>
    %43 = vector.broadcast %42 : vector<1x128xf32> to vector<8x128xf32>
    %44 = arith.addf %41, %43 : vector<8x128xf32>
    %c0_32 = arith.constant 0 : index
    %c0_33 = arith.constant 0 : index
    %45 = vector.load %arg13[%c0_32, %c0_33] : memref<8x128xf32, #tpu.memory_space<vmem>>, vector<8x128xf32>
    tpu.vector_store %arg13[%c0_32, %c0_33], %44 {strides = array<i32>} : memref<8x128xf32, #tpu.memory_space<vmem>>, vector<8x128xf32>,
    return
  }
  func.func @transform_0(%arg0: i32) -> (i32, i32) {
    %c0_i32 = arith.constant 0 : i32
    %c0_i32_0 = arith.constant 0 : i32
    return %arg0, %c0_i32 : i32, i32
  }
  func.func @transform_1(%arg0: i32) -> (i32, i32) {
    %c0_i32 = arith.constant 0 : i32
    %c0_i32_0 = arith.constant 0 : i32
    return %arg0, %c0_i32 : i32, i32
  }
  func.func @transform_2(%arg0: i32) -> (i32, i32) {
    %c0_i32 = arith.constant 0 : i32
    %c0_i32_0 = arith.constant 0 : i32
    return %arg0, %c0_i32 : i32, i32
  }
  func.func @transform_3(%arg0: i32) -> (i32, i32) {
    %c0_i32 = arith.constant 0 : i32
    %c0_i32_0 = arith.constant 0 : i32
    return %arg0, %c0_i32 : i32, i32
  }
  func.func @transform_4(%arg0: i32) -> (i32, i32) {
    %c0_i32 = arith.constant 0 : i32
    %c0_i32_0 = arith.constant 0 : i32
    %c0_i32_1 = arith.constant 0 : i32
    return %c0_i32, %c0_i32_0 : i32, i32
  }
  func.func @transform_5(%arg0: i32) -> (i32, i32) {
    %c0_i32 = arith.constant 0 : i32
    %c0_i32_0 = arith.constant 0 : i32
    %c0_i32_1 = arith.constant 0 : i32
    return %c0_i32, %c0_i32_0 : i32, i32
  }
  func.func @transform_6(%arg0: i32) -> (i32, i32) {
    %c0_i32 = arith.constant 0 : i32
    %c0_i32_0 = arith.constant 0 : i32
    %c0_i32_1 = arith.constant 0 : i32
    return %c0_i32, %c0_i32_0 : i32, i32
  }
  func.func @transform_7(%arg0: i32) -> (i32, i32) {
    %c0_i32 = arith.constant 0 : i32
    %c0_i32_0 = arith.constant 0 : i32
    %c0_i32_1 = arith.constant 0 : i32
    return %c0_i32, %c0_i32_0 : i32, i32
  }
  func.func @transform_8(%arg0: i32) -> (i32, i32) {
    %c0_i32 = arith.constant 0 : i32
    %c0_i32_0 = arith.constant 0 : i32
    %c0_i32_1 = arith.constant 0 : i32
    return %c0_i32, %c0_i32_0 : i32, i32
  }
  func.func @transform_9(%arg0: i32) -> (i32, i32) {
    %c0_i32 = arith.constant 0 : i32
    %c0_i32_0 = arith.constant 0 : i32
    %c0_i32_1 = arith.constant 0 : i32
    return %c0_i32, %c0_i32_0 : i32, i32
  }
  func.func @transform_10(%arg0: i32) -> (i32, i32) {
    %c0_i32 = arith.constant 0 : i32
    %c0_i32_0 = arith.constant 0 : i32
    %c0_i32_1 = arith.constant 0 : i32
    return %c0_i32, %c0_i32_0 : i32, i32
  }
  func.func @transform_11(%arg0: i32) -> (i32, i32) {
    %c0_i32 = arith.constant 0 : i32
    %c0_i32_0 = arith.constant 0 : i32
    %c0_i32_1 = arith.constant 0 : i32
    return %c0_i32, %c0_i32_0 : i32, i32
  }
  func.func @transform_12(%arg0: i32) -> (i32, i32) {
    %c0_i32 = arith.constant 0 : i32
    %c0_i32_0 = arith.constant 0 : i32
    return %arg0, %c0_i32 : i32, i32
  }
}

</mosaic_0001>

<bundles_post_ra>
// kernel: simple_discriminator.3
= control target key start
LH: loop header
LB: loop body
LE: loop exit
PB: predicated region body
PF: predicated region fallthrough
CT: control target
= control target key end

     0   :  { %17 = vsyncpa [#allocation3], 0  ;;  %s10914_s0 = inlined_call_operand.vmem [shape: bf16[8,896], index: 0, kind: input, shape index: {}]   ;;  %s10915_s1 = inlined_call_operand.vmem [shape: bf16[8,1024], index: 1, kind: input, shape index: {}]   ;;  %s10916_s2 = inlined_call_operand.vmem [shape: bf16[8,512], index: 2, kind: input, shape index: {}]   ;;  %s10917_s3 = inlined_call_operand.vmem [shape: bf16[8,256], index: 3, kind: input, shape index: {}]   ;;  %s10918_s4 = inlined_call_operand.hbm [shape: bf16[896,1024], index: 4, kind: input, shape index: {}]   ;;  %s10919_s5 = inlined_call_operand.hbm [shape: f32[1,1024], index: 5, kind: input, shape index: {}]   ;;  %s10920_s6 = inlined_call_operand.hbm [shape: bf16[1024,512], index: 6, kind: input, shape index: {}]   ;;  %s10921_s7 = inlined_call_operand.hbm [shape: f32[1,512], index: 7, kind: input, shape index: {}]   ;;  %s10922_s8 = inlined_call_operand.hbm [shape: bf16[512,256], index: 8, kind: input, shape index: {}]   ;;  %s10923_s9 = inlined_call_operand.hbm [shape: f32[1,256], index: 9, kind: input, shape index: {}]   ;;  %s10924_s10 = inlined_call_operand.hbm [shape: bf16[256,128], index: 10, kind: input, shape index: {}]   ;;  %s10925_s11 = inlined_call_operand.hbm [shape: f32[1,128], index: 11, kind: input, shape index: {}]   ;;  %s10926_s12 = inlined_call_operand.vmem [shape: f32[8,128], index: 12, kind: output, shape index: {}]  }
   0x1   :  { %18 = vsyncpa [#allocation5], 0 }
   0x2   :  { %19 = vsyncpa [#allocation8], 0 }
   0x3   :  { %20 = vsyncpa [#allocation11], 0  ;;  %s48_s23 = sshll.u32 %s10919_s5, 4  ;;  %s49_s23 = int_to_ptr.hbm [resolvable:$true] %s48_s23 }
   0x4   :  { %21 = vsyncpa [#allocation14], 0  ;;  %s10499_s24 = smov [#allocation4]   ;;  %s72_s28 = sshll.u32 %s10921_s7, 4  ;;  %s73_s28 = int_to_ptr.hbm [resolvable:$true] %s72_s28 }
   0x5   :  { %s50_s25 = sshll.u32 %s10499_s24, 4  ;;  %s10500_s29 = smov [#allocation7]   ;;  %s51_s25 = int_to_ptr.vmem [resolvable:$true] %s50_s25 }
   0x6   :  { %53 = dma.hbm_to_vmem [thread:$0]  %s49_s23, 128, %s51_s25, [#allocation5]  }
   0x7   :  { %s74_s30 = sshll.u32 %s10500_s29, 4  ;;  %s96_s15 = sshll.u32 %s10923_s9, 4  ;;  %s75_s30 = int_to_ptr.vmem [resolvable:$true] %s74_s30  ;;  %s97_s15 = int_to_ptr.hbm [resolvable:$true] %s96_s15 }
   0x8   :  { %77 = dma.hbm_to_vmem [thread:$0]  %s73_s28, 64, %s75_s30, [#allocation8]  }
   0x9   :  { %s34_s17 = sshll.u32 %s10918_s4, 4  ;;  %s10501_s18 = smov [#allocation10]   ;;  %s35_s17 = int_to_ptr.hbm [resolvable:$true] %s34_s17 }
   0xa   :  { %s98_s19 = sshll.u32 %s10501_s18, 4  ;;  %s10502_s7 = smov [#allocation2]   ;;  %s99_s19 = int_to_ptr.vmem [resolvable:$true] %s98_s19 }
   0xb   :  { %101 = dma.hbm_to_vmem [thread:$0]  %s97_s15, 32, %s99_s19, [#allocation11]  }
   0xc   :  { %s36_s20 = sshll.u32 %s10502_s7, 4  ;;  %s10503_s21 = smov 512   ;;  %s37_s20 = int_to_ptr.vmem [resolvable:$true] %s36_s20 }
   0xd   :  { %s10504_s22 = smov 32   ;;  %s58_s24 = sshll.u32 %s10920_s6, 4  ;;  %s59_s24 = int_to_ptr.hbm [resolvable:$true] %s58_s24 }
   0xe   :  { %42 = dma.hbm_to_vmem [thread:$0]  %s35_s17, 57344, %s37_s20, [#allocation3], %s10503_s21, %s10503_s21, %s10504_s22  }
   0xf   :  { %s10505_s25 = smov [#allocation6]   ;;  %s82_s28 = sshll.u32 %s10922_s8, 4  ;;  %s83_s28 = int_to_ptr.hbm [resolvable:$true] %s82_s28 }
  0x10   :  { %s60_s26 = sshll.u32 %s10505_s25, 4  ;;  %s10506_s29 = smov 256   ;;  %s61_s26 = int_to_ptr.vmem [resolvable:$true] %s60_s26 }
  0x11   :  { %s10507_s30 = smov 16   ;;  %s10508_s13 = smov [#allocation9]  }
  0x12   :  { %66 = dma.hbm_to_vmem [thread:$0]  %s59_s24, 32768, %s61_s26, [#allocation5], %s10506_s29, %s10506_s29, %s10507_s30  }
  0x13   :  { %s84_s14 = sshll.u32 %s10508_s13, 4  ;;  %s10509_s15 = smov 128   ;;  %s85_s14 = int_to_ptr.vmem [resolvable:$true] %s84_s14 }
  0x14   :  { %s10510_s5 = smov 8   ;;  %s106_s17 = sshll.u32 %s10924_s10, 4  ;;  %s107_s17 = int_to_ptr.hbm [resolvable:$true] %s106_s17 }
  0x15   :  { %90 = dma.hbm_to_vmem [thread:$0]  %s83_s28, 8192, %s85_s14, [#allocation8], %s10509_s15, %s10509_s15, %s10510_s5  }
  0x16   :  { %s10511_s18 = smov [#allocation12]   ;;  %s120_s20 = sshll.u32 %s10925_s11, 4  ;;  %s121_s20 = int_to_ptr.hbm [resolvable:$true] %s120_s20 }
  0x17   :  { %s108_s19 = sshll.u32 %s10511_s18, 4  ;;  %s10512_s21 = smov 64   ;;  %s109_s19 = int_to_ptr.vmem [resolvable:$true] %s108_s19 }
  0x18   :  { %s10513_s22 = smov 4   ;;  %s10514_s23 = smov [#allocation13]  }
  0x19   :  { %114 = dma.hbm_to_vmem [thread:$0]  %s107_s17, 2048, %s109_s19, [#allocation11], %s10512_s21, %s10512_s21, %s10513_s22  }
  0x1a   :  { %s122_s9 = sshll.u32 %s10514_s23, 4  ;;  %s123_s9 = int_to_ptr.vmem [resolvable:$true] %s122_s9 }
  0x1b   :  { %125 = dma.hbm_to_vmem [thread:$0]  %s121_s20, 16, %s123_s9, [#allocation14]  }
  0x1c   :  { %10489 = dma.done.wait [#allocation3], 57344  }
  0x1d   :  { %10490 = vsyncadd [#allocation3], 4294909952 }
  0x1e   :  { %10491 = dma.done.wait [#allocation5], 32896  }
  0x1f   :  { %10492 = vsyncadd [#allocation5], 4294934400 }
  0x20   :  { %10493 = dma.done.wait [#allocation8], 8256  }
  0x21   :  { %10494 = vsyncadd [#allocation8], 4294959040 }
  0x22   :  { %10495 = dma.done.wait [#allocation11], 2080  }
  0x23   :  { %10496 = vsyncadd [#allocation11], 4294965216 }
  0x24   :  { %10497 = dma.done.wait [#allocation14], 16  }
  0x25   :  { %10498 = vsyncadd [#allocation14], 4294967280  ;;  %v6583_v0 = vld [vmem:[#allocation2 + $0x1c0] sm:$0xf] }
  0x26   :  { %v9553_v1 = vld [vmem:[#allocation2 + $0x1dc] sm:$0xf0] }
  0x27   :  { %v6839_v2 = vld [vmem:[#allocation2 + $0x3c0] sm:$0xf]  ;;  %v6584_v3 = vor.u32 %v9553_v1, %v6583_v0 }
  0x28   :  { %v9617_v4 = vld [vmem:[#allocation2 + $0x3dc] sm:$0xf0] }
  0x29   :  { %v7095_v5 = vld [vmem:[#allocation2 + $0x5c0] sm:$0xf]  ;;  %v6840_v7 = vor.u32 %v9617_v4, %v6839_v2  ;;  %2893 = vmatpush.bf16.msra.mxu0 %v6584_v3 }
  0x2a   :  { %v9681_v6 = vld [vmem:[#allocation2 + $0x5dc] sm:$0xf0] }
  0x2b   :  { %v7096_v8 = vor.u32 %v9681_v6, %v7095_v5  ;;  %v7351_v9 = vld [vmem:[#allocation2 + $0x7c0] sm:$0xf]  ;;  %2906 = vmatpush.bf16.msra.mxu1 %v6840_v7 }
  0x2c   :  { %v9745_v10 = vld [vmem:[#allocation2 + $0x7dc] sm:$0xf0] }
  0x2d   :  { %v6551_v11 = vld [vmem:[#allocation2 + $0x180] sm:$0xf]  ;;  %v7352_v12 = vor.u32 %v9745_v10, %v7351_v9  ;;  %2919 = vmatpush.bf16.msra.mxu2 %v7096_v8 }
  0x2e   :  { %v9545_v13 = vld [vmem:[#allocation2 + $0x19c] sm:$0xf0] }
  0x2f   :  { %v6807_v14 = vld [vmem:[#allocation2 + $0x380] sm:$0xf]  ;;  %v6552_v16 = vor.u32 %v9545_v13, %v6551_v11  ;;  %2932 = vmatpush.bf16.msra.mxu3 %v7352_v12 }
  0x30   :  { %v9609_v15 = vld [vmem:[#allocation2 + $0x39c] sm:$0xf0] }
  0x31   :  { %v6808_v17 = vor.u32 %v9609_v15, %v6807_v14  ;;  %v7063_v18 = vld [vmem:[#allocation2 + $0x580] sm:$0xf]  ;;  %2894 = vmatpush.bf16.msra.mxu0 %v6552_v16 }
  0x32   :  { %v9673_v19 = vld [vmem:[#allocation2 + $0x59c] sm:$0xf0] }
  0x33   :  { %v7319_v20 = vld [vmem:[#allocation2 + $0x780] sm:$0xf]  ;;  %v7064_v21 = vor.u32 %v9673_v19, %v7063_v18  ;;  %2907 = vmatpush.bf16.msra.mxu1 %v6808_v17 }
  0x34   :  { %v9737_v22 = vld [vmem:[#allocation2 + $0x79c] sm:$0xf0] }
  0x35   :  { %v6519_v23 = vld [vmem:[#allocation2 + $0x140] sm:$0xf]  ;;  %v7320_v25 = vor.u32 %v9737_v22, %v7319_v20  ;;  %2920 = vmatpush.bf16.msra.mxu2 %v7064_v21 }
  0x36   :  { %v9537_v24 = vld [vmem:[#allocation2 + $0x15c] sm:$0xf0] }
  0x37   :  { %v6775_v26 = vld [vmem:[#allocation2 + $0x340] sm:$0xf]  ;;  %v6520_v29 = vor.u32 %v9537_v24, %v6519_v23  ;;  %2933 = vmatpush.bf16.msra.mxu3 %v7320_v25 }
  0x38   :  { %v9601_v27 = vld [vmem:[#allocation2 + $0x35c] sm:$0xf0] }
  0x39   :  { %v7031_v28 = vld [vmem:[#allocation2 + $0x540] sm:$0xf]  ;;  %v6776_v33 = vor.u32 %v9601_v27, %v6775_v26  ;;  %2895 = vmatpush.bf16.msra.mxu0 %v6520_v29 }
  0x3a   :  { %v9665_v30 = vld [vmem:[#allocation2 + $0x55c] sm:$0xf0] }
  0x3b   :  { %v7287_v31 = vld [vmem:[#allocation2 + $0x740] sm:$0xf]  ;;  %v7032_v34 = vor.u32 %v9665_v30, %v7031_v28  ;;  %2908 = vmatpush.bf16.msra.mxu1 %v6776_v33 }
  0x3c   :  { %v9729_v32 = vld [vmem:[#allocation2 + $0x75c] sm:$0xf0] }
  0x3d   :  { %v6487_v35 = vld [vmem:[#allocation2 + $0x100] sm:$0xf]  ;;  %v7288_v38 = vor.u32 %v9729_v32, %v7287_v31  ;;  %2921 = vmatpush.bf16.msra.mxu2 %v7032_v34 }
  0x3e   :  { %v9529_v36 = vld [vmem:[#allocation2 + $0x11c] sm:$0xf0] }
  0x3f   :  { %v6743_v37 = vld [vmem:[#allocation2 + $0x300] sm:$0xf]  ;;  %v6488_v44 = vor.u32 %v9529_v36, %v6487_v35  ;;  %2934 = vmatpush.bf16.msra.mxu3 %v7288_v38  ;;  %v6585_v38 = vld [vmem:[#allocation2 + $0x1e0] sm:$0xf0] }
  0x40   :  { %v9593_v39 = vld [vmem:[#allocation2 + $0x31c] sm:$0xf0] }
  0x41   :  { %v6999_v40 = vld [vmem:[#allocation2 + $0x500] sm:$0xf]  ;;  %v6744_v45 = vor.u32 %v9593_v39, %v6743_v37  ;;  %2896 = vmatpush.bf16.msra.mxu0 %v6488_v44  ;;  %v9549_v37 = vld [vmem:[#allocation2 + $0x1c4] sm:$0xf] }
  0x42   :  { %v9657_v41 = vld [vmem:[#allocation2 + $0x51c] sm:$0xf0] }
  0x43   :  { %v7255_v42 = vld [vmem:[#allocation2 + $0x700] sm:$0xf]  ;;  %v7000_v46 = vor.u32 %v9657_v41, %v6999_v40  ;;  %2909 = vmatpush.bf16.msra.mxu1 %v6744_v45 }
  0x44   :  { %v9721_v43 = vld [vmem:[#allocation2 + $0x71c] sm:$0xf0] }
  0x45   :  { %v6455_v47 = vld [vmem:[#allocation2 + $0xc0] sm:$0xf]  ;;  %v7256_v50 = vor.u32 %v9721_v43, %v7255_v42  ;;  %2922 = vmatpush.bf16.msra.mxu2 %v7000_v46  ;;  %v6588_v46 = vor.u32 %v9549_v37, %v6585_v38 }
  0x46   :  { %v9521_v48 = vld [vmem:[#allocation2 + $0xdc] sm:$0xf0] }
  0x47   :  { %v6711_v49 = vld [vmem:[#allocation2 + $0x2c0] sm:$0xf]  ;;  %v6456_v56 = vor.u32 %v9521_v48, %v6455_v47  ;;  %2935 = vmatpush.bf16.msra.mxu3 %v7256_v50  ;;  %v9541_v50 = vld [vmem:[#allocation2 + $0x184] sm:$0xf] }
  0x48   :  { %v9585_v51 = vld [vmem:[#allocation2 + $0x2dc] sm:$0xf0] }
  0x49   :  { %v6967_v52 = vld [vmem:[#allocation2 + $0x4c0] sm:$0xf]  ;;  %v6712_v57 = vor.u32 %v9585_v51, %v6711_v49  ;;  %2897 = vmatpush.bf16.msra.mxu0 %v6456_v56  ;;  %v6553_v51 = vld [vmem:[#allocation2 + $0x1a0] sm:$0xf0] }
  0x4a   :  { %v9649_v53 = vld [vmem:[#allocation2 + $0x4dc] sm:$0xf0] }
  0x4b   :  { %v7223_v54 = vld [vmem:[#allocation2 + $0x6c0] sm:$0xf]  ;;  %v6968_v58 = vor.u32 %v9649_v53, %v6967_v52  ;;  %2910 = vmatpush.bf16.msra.mxu1 %v6712_v57 }
  0x4c   :  { %v9713_v55 = vld [vmem:[#allocation2 + $0x6dc] sm:$0xf0] }
  0x4d   :  { %v6423_v59 = vld [vmem:[#allocation2 + $0x80] sm:$0xf]  ;;  %v7224_v62 = vor.u32 %v9713_v55, %v7223_v54  ;;  %2923 = vmatpush.bf16.msra.mxu2 %v6968_v58  ;;  %v159_v58 = vld [vmem:[%s10914_s0 + $0x8] sm:$0xff] }
  0x4e   :  { %v9513_v60 = vld [vmem:[#allocation2 + $0x9c] sm:$0xf0] }
  0x4f   :  { %v6679_v61 = vld [vmem:[#allocation2 + $0x280] sm:$0xf]  ;;  %v6424_v4 = vor.u32 %v9513_v60, %v6423_v59  ;;  %2936 = vmatpush.bf16.msra.mxu3 %v7224_v62  ;;  %v6556_v59 = vor.u32 %v9541_v50, %v6553_v51 }
  0x50   :  { %v9577_v63 = vld [vmem:[#allocation2 + $0x29c] sm:$0xf0] }
  0x51   :  { %v6935_v0 = vld [vmem:[#allocation2 + $0x480] sm:$0xf]  ;;  %v6680_v5 = vor.u32 %v9577_v63, %v6679_v61  ;;  %2898 = vmatpush.bf16.msra.mxu0 %v6424_v4  ;;  %v634_v63 = vunpack.c.l.b16 %v159_v58 }
  0x52   :  { %v9641_v1 = vld [vmem:[#allocation2 + $0x49c] sm:$0xf0] }
  0x53   :  { %v7191_v2 = vld [vmem:[#allocation2 + $0x680] sm:$0xf]  ;;  %v6936_v6 = vor.u32 %v9641_v1, %v6935_v0  ;;  %2911 = vmatpush.bf16.msra.mxu1 %v6680_v5  ;;  %v635_v0 = vunpack.c.h.b16 %v159_v58  ;;  %v9533_v1 = vld [vmem:[#allocation2 + $0x144] sm:$0xf]  ;;  %v10607_v4 = vpack.c.b16 %v634_v63, %v634_v63 }
  0x54   :  { %v9705_v3 = vld [vmem:[#allocation2 + $0x69c] sm:$0xf0] }
  0x55   :  { %v6391_v7 = vld [vmem:[#allocation2 + $0x40] sm:$0xf]  ;;  %v7192_v10 = vor.u32 %v9705_v3, %v7191_v2  ;;  %2924 = vmatpush.bf16.msra.mxu2 %v6936_v6  ;;  %v6521_v2 = vld [vmem:[#allocation2 + $0x160] sm:$0xf0]  ;;  %v10612_v6 = vpack.c.b16 %v635_v0, %v635_v0 }
  0x56   :  { %v9505_v8 = vld [vmem:[#allocation2 + $0x5c] sm:$0xf0] }
  0x57   :  { %v6647_v9 = vld [vmem:[#allocation2 + $0x240] sm:$0xf]  ;;  %v6392_v16 = vor.u32 %v9505_v8, %v6391_v7  ;;  %2937 = vmatpush.bf16.msra.mxu3 %v7192_v10 }
  0x58   :  { %v9569_v11 = vld [vmem:[#allocation2 + $0x25c] sm:$0xf0] }
  0x59   :  { %v6903_v12 = vld [vmem:[#allocation2 + $0x440] sm:$0xf]  ;;  %v6648_v19 = vor.u32 %v9569_v11, %v6647_v9  ;;  %2899 = vmatpush.bf16.msra.mxu0 %v6392_v16 }
  0x5a   :  { %v9633_v13 = vld [vmem:[#allocation2 + $0x45c] sm:$0xf0] }
  0x5b   :  { %v7159_v14 = vld [vmem:[#allocation2 + $0x640] sm:$0xf]  ;;  %v6904_v20 = vor.u32 %v9633_v13, %v6903_v12  ;;  %2912 = vmatpush.bf16.msra.mxu1 %v6648_v19  ;;  %v6489_v19 = vld [vmem:[#allocation2 + $0x120] sm:$0xf0] }
  0x5c   :  { %v9697_v15 = vld [vmem:[#allocation2 + $0x65c] sm:$0xf0] }
  0x5d   :  { %v6359_v17 = vld [vmem:[#allocation2] sm:$0xf]  ;;  %v7160_v24 = vor.u32 %v9697_v15, %v7159_v14  ;;  %2925 = vmatpush.bf16.msra.mxu2 %v6904_v20  ;;  %v6524_v14 = vor.u32 %v9533_v1, %v6521_v2 }
  0x5e   :  { %v9497_v18 = vld [vmem:[#allocation2 + $0x1c] sm:$0xf0] }
  0x5f   :  { %v6615_v21 = vld [vmem:[#allocation2 + $0x200] sm:$0xf]  ;;  %v6360_v31 = vor.u32 %v9497_v18, %v6359_v17  ;;  %2938 = vmatpush.bf16.msra.mxu3 %v7160_v24  ;;  %v9525_v18 = vld [vmem:[#allocation2 + $0x104] sm:$0xf] }
  0x60   :  { %v9561_v22 = vld [vmem:[#allocation2 + $0x21c] sm:$0xf0] }
  0x61   :  { %v6871_v23 = vld [vmem:[#allocation2 + $0x400] sm:$0xf]  ;;  %v6616_v35 = vor.u32 %v9561_v22, %v6615_v21  ;;  %2900 = vmatpush.bf16.msra.mxu0 %v6360_v31 }
  0x62   :  { %v9625_v25 = vld [vmem:[#allocation2 + $0x41c] sm:$0xf0] }
  0x63   :  { %v7127_v26 = vld [vmem:[#allocation2 + $0x600] sm:$0xf]  ;;  %v6872_v36 = vor.u32 %v9625_v25, %v6871_v23  ;;  %2913 = vmatpush.bf16.msra.mxu1 %v6616_v35 }
  0x64   :  { %v9689_v27 = vld [vmem:[#allocation2 + $0x61c] sm:$0xf0] }
  0x65   :  { %v7607_v28 = vld [vmem:[#allocation2 + $0x9c0] sm:$0xf]  ;;  %v7128_v39 = vor.u32 %v9689_v27, %v7127_v26  ;;  %2926 = vmatpush.bf16.msra.mxu2 %v6872_v36 }
  0x66   :  { %v9809_v29 = vld [vmem:[#allocation2 + $0x9dc] sm:$0xf0] }
  0x67   :  { %v7863_v30 = vld [vmem:[#allocation2 + $0xbc0] sm:$0xf]  ;;  %v7608_v40 = vor.u32 %v9809_v29, %v7607_v28  ;;  %2939 = vmatpush.bf16.msra.mxu3 %v7128_v39  ;;  %v6492_v28 = vor.u32 %v9525_v18, %v6489_v19 }
  0x68   :  { %v9873_v32 = vld [vmem:[#allocation2 + $0xbdc] sm:$0xf0]  ;;  %2927 = vmatmul.bf16.vlgmr.msra.gmra.mxu2 %v10607_v4 }
  0x69   :  { %v8119_v33 = vld [vmem:[#allocation2 + $0xdc0] sm:$0xf]  ;;  %v7864_v41 = vor.u32 %v9873_v32, %v7863_v30  ;;  %2945 = vmatpush.bf16.msrb.mxu0 %v7608_v40  ;;  %v9517_v32 = vld [vmem:[#allocation2 + $0xc4] sm:$0xf] }
  0x6a   :  { %v9937_v34 = vld [vmem:[#allocation2 + $0xddc] sm:$0xf0]  ;;  %2940 = vmatmul.bf16.vlgmr.msra.gmra.mxu3 %v10612_v6 }
  0x6b   :  { %v8120_v42 = vor.u32 %v9937_v34, %v8119_v33  ;;  %v7575_v43 = vld [vmem:[#allocation2 + $0x980] sm:$0xf]  ;;  %2958 = vmatpush.bf16.msrb.mxu1 %v7864_v41  ;;  %2984 = vmatpush.bf16.msrb.mxu3 %v6588_v46  ;;  %v6457_v33 = vld [vmem:[#allocation2 + $0xe0] sm:$0xf0] }
  0x6c   :  { %v9801_v44 = vld [vmem:[#allocation2 + $0x99c] sm:$0xf0]  ;;  %v6460_v40 = vor.u32 %v9517_v32, %v6457_v33  ;;  %v9669_v32 = vld [vmem:[#allocation2 + $0x584] sm:$0xf] }
  0x6d   :  { %v7831_v45 = vld [vmem:[#allocation2 + $0xb80] sm:$0xf]  ;;  %v7576_v52 = vor.u32 %v9801_v44, %v7575_v43  ;;  %2971 = vmatpush.bf16.msrb.mxu2 %v8120_v42  ;;  %v9509_v44 = vld [vmem:[#allocation2 + $0x84] sm:$0xf] }
  0x6e   :  { %v9865_v47 = vld [vmem:[#allocation2 + $0xb9c] sm:$0xf0] }
  0x6f   :  { %v8087_v48 = vld [vmem:[#allocation2 + $0xd80] sm:$0xf]  ;;  %v7832_v54 = vor.u32 %v9865_v47, %v7831_v45  ;;  %2946 = vmatpush.bf16.msrb.mxu0 %v7576_v52  ;;  %2985 = vmatpush.bf16.msrb.mxu3 %v6556_v59  ;;  %v6425_v45 = vld [vmem:[#allocation2 + $0xa0] sm:$0xf0] }
  0x70   :  { %v9929_v49 = vld [vmem:[#allocation2 + $0xd9c] sm:$0xf0]  ;;  %v6428_v52 = vor.u32 %v9509_v44, %v6425_v45  ;;  %v9597_v45 = vld [vmem:[#allocation2 + $0x344] sm:$0xf] }
  0x71   :  { %v7543_v53 = vld [vmem:[#allocation2 + $0x940] sm:$0xf]  ;;  %v8088_v55 = vor.u32 %v9929_v49, %v8087_v48  ;;  %2959 = vmatpush.bf16.msrb.mxu1 %v7832_v54 }
  0x72   :  { %v9793_v56 = vld [vmem:[#allocation2 + $0x95c] sm:$0xf0] }
  0x73   :  { %v7799_v57 = vld [vmem:[#allocation2 + $0xb40] sm:$0xf]  ;;  %v7544_v3 = vor.u32 %v9793_v56, %v7543_v53  ;;  %2972 = vmatpush.bf16.msrb.mxu2 %v8088_v55  ;;  %2986 = vmatpush.bf16.msrb.mxu3 %v6524_v14  ;;  %v9501_v56 = vld [vmem:[#allocation2 + $0x44] sm:$0xf] }
  0x74   :  { %v9857_v60 = vld [vmem:[#allocation2 + $0xb5c] sm:$0xf0]  ;;  %v7097_v14 = vld [vmem:[#allocation2 + $0x5e0] sm:$0xf0] }
  0x75   :  { %v8055_v61 = vld [vmem:[#allocation2 + $0xd40] sm:$0xf]  ;;  %v7800_v7 = vor.u32 %v9857_v60, %v7799_v57  ;;  %2947 = vmatpush.bf16.msrb.mxu0 %v7544_v3  ;;  %v6393_v57 = vld [vmem:[#allocation2 + $0x60] sm:$0xf0]  ;;  %v161_v3 = vld [vmem:[%s10914_s0 + $0x18] sm:$0xf] }
  0x76   :  { %v9921_v62 = vld [vmem:[#allocation2 + $0xd5c] sm:$0xf0] }
  0x77   :  { %v158_v5 = vld [vmem:[%s10914_s0] sm:$0xff]  ;;  %v8056_v8 = vor.u32 %v9921_v62, %v8055_v61  ;;  %2960 = vmatpush.bf16.msrb.mxu1 %v7800_v7  ;;  %2987 = vmatpush.bf16.msrb.mxu3 %v6492_v28 }
  0x78   :  { %v7511_v9 = vld [vmem:[#allocation2 + $0x900] sm:$0xf]  ;;  %v632_v12 = vunpack.c.l.b16 %v158_v5  ;;  %v633_v13 = vunpack.c.h.b16 %v158_v5  ;;  %v6396_v5 = vor.u32 %v9501_v56, %v6393_v57  ;;  %v9493_v7 = vld [vmem:[#allocation2 + $0x4] sm:$0xf] }
  0x79   :  { %v9785_v10 = vld [vmem:[#allocation2 + $0x91c] sm:$0xf0]  ;;  %2973 = vmatpush.bf16.msrb.mxu2 %v8056_v8  ;;  %v6361_v8 = vld [vmem:[#allocation2 + $0x20] sm:$0xf0] }
  0x7a   :  { %v7767_v11 = vld [vmem:[#allocation2 + $0xb00] sm:$0xf]  ;;  %v10615_v20 = vpack.c.b16 %v632_v12, %v632_v12  ;;  %v10617_v21 = vpack.c.b16 %v633_v13, %v633_v13  ;;  %v7512_v22 = vor.u32 %v9785_v10, %v7511_v9  ;;  %v160_v9 = vld [vmem:[%s10914_s0 + $0x10] sm:$0xff]  ;;  %v9613_v10 = vld [vmem:[#allocation2 + $0x3c4] sm:$0xf] }
  0x7b   :  { %v9849_v15 = vld [vmem:[#allocation2 + $0xb1c] sm:$0xf0]  ;;  %2988 = vmatpush.bf16.msrb.mxu3 %v6460_v40  ;;  %v9677_v12 = vld [vmem:[#allocation2 + $0x5c4] sm:$0xf] }
  0x7c   :  { %v8023_v16 = vld [vmem:[#allocation2 + $0xd00] sm:$0xf]  ;;  %v7768_v23 = vor.u32 %v9849_v15, %v7767_v11  ;;  %2901 = vmatmul.bf16.vlgmr.msra.gmra.mxu0 %v10615_v20  ;;  %2914 = vmatmul.bf16.vlgmr.msra.gmra.mxu1 %v10617_v21  ;;  %v6841_v11 = vld [vmem:[#allocation2 + $0x3e0] sm:$0xf0]  ;;  %v7100_v28 = vor.u32 %v9677_v12, %v7097_v14 }
  0x7d   :  { %v9913_v17 = vld [vmem:[#allocation2 + $0xd1c] sm:$0xf0]  ;;  %2948 = vmatpush.bf16.msrb.mxu0 %v7512_v22  ;;  %v9741_v15 = vld [vmem:[#allocation2 + $0x7c4] sm:$0xf] }
  0x7e   :  { %v8024_v24 = vor.u32 %v9913_v17, %v8023_v16  ;;  %v7479_v25 = vld [vmem:[#allocation2 + $0x8c0] sm:$0xf]  ;;  %2961 = vmatpush.bf16.msrb.mxu1 %v7768_v23  ;;  %v7353_v16 = vld [vmem:[#allocation2 + $0x7e0] sm:$0xf0]  ;;  %v638_v17 = vunpack.c.l.b16 %v161_v3 }
  0x7f   :  { %v9777_v26 = vld [vmem:[#allocation2 + $0x8dc] sm:$0xf0]  ;;  %2989 = vmatpush.bf16.msrb.mxu3 %v6428_v52  ;;  %v9805_v22 = vld [vmem:[#allocation2 + $0x9c4] sm:$0xf] }
  0x80   :  { %v7735_v27 = vld [vmem:[#allocation2 + $0xac0] sm:$0xf]  ;;  %v7480_v34 = vor.u32 %v9777_v26, %v7479_v25  ;;  %2974 = vmatpush.bf16.msrb.mxu2 %v8024_v24  ;;  %v7609_v23 = vld [vmem:[#allocation2 + $0x9e0] sm:$0xf0]  ;;  %v636_v24 = vunpack.c.l.b16 %v160_v9  ;;  %v637_v25 = vunpack.c.h.b16 %v160_v9  ;;  %v6364_v26 = vor.u32 %v9493_v7, %v6361_v8 }
  0x81   :  { %v9841_v29 = vld [vmem:[#allocation2 + $0xadc] sm:$0xf0]  ;;  %v7612_v33 = vor.u32 %v9805_v22, %v7609_v23  ;;  %v9789_v52 = vld [vmem:[#allocation2 + $0x944] sm:$0xf] }
  0x82   :  { %v7991_v30 = vld [vmem:[#allocation2 + $0xcc0] sm:$0xf]  ;;  %v7736_v35 = vor.u32 %v9841_v29, %v7735_v27  ;;  %2949 = vmatpush.bf16.msrb.mxu0 %v7480_v34  ;;  %v6844_v27 = vor.u32 %v9613_v10, %v6841_v11  ;;  %v7356_v29 = vor.u32 %v9741_v15, %v7353_v16  ;;  %v7065_v34 = vld [vmem:[#allocation2 + $0x5a0] sm:$0xf0]  ;;  %v10630_v40 = vpack.c.b16 %v636_v24, %v636_v24 }
  0x83   :  { %v9905_v31 = vld [vmem:[#allocation2 + $0xcdc] sm:$0xf0]  ;;  %2990 = vmatpush.bf16.msrb.mxu3 %v6396_v5  ;;  %v9589_v57 = vld [vmem:[#allocation2 + $0x304] sm:$0xf] }
  0x84   :  { %v7992_v36 = vor.u32 %v9905_v31, %v7991_v30  ;;  %v7447_v37 = vld [vmem:[#allocation2 + $0x880] sm:$0xf]  ;;  %2962 = vmatpush.bf16.msrb.mxu1 %v7736_v35  ;;  %v9605_v30 = vld [vmem:[#allocation2 + $0x384] sm:$0xf] }
  0x85   :  { %v9769_v38 = vld [vmem:[#allocation2 + $0x89c] sm:$0xf0]  ;;  %v6809_v31 = vld [vmem:[#allocation2 + $0x3a0] sm:$0xf0] }
  0x86   :  { %v7703_v39 = vld [vmem:[#allocation2 + $0xa80] sm:$0xf]  ;;  %v7448_v46 = vor.u32 %v9769_v38, %v7447_v37  ;;  %2975 = vmatpush.bf16.msrb.mxu2 %v7992_v36  ;;  %v9733_v35 = vld [vmem:[#allocation2 + $0x784] sm:$0xf]  ;;  %v10628_v37 = vpack.c.b16 %v638_v17, %v638_v17 }
  0x87   :  { %v9833_v41 = vld [vmem:[#allocation2 + $0xa9c] sm:$0xf0]  ;;  %v7321_v36 = vld [vmem:[#allocation2 + $0x7a0] sm:$0xf0]  ;;  %2991 = vmatpush.bf16.msrb.mxu3 %v6364_v26 }
  0x88   :  { %v7959_v42 = vld [vmem:[#allocation2 + $0xc80] sm:$0xf]  ;;  %v7704_v47 = vor.u32 %v9833_v41, %v7703_v39  ;;  %2950 = vmatpush.bf16.msrb.mxu0 %v7448_v46  ;;  %v9797_v38 = vld [vmem:[#allocation2 + $0x984] sm:$0xf]  ;;  %v10632_v41 = vpack.c.b16 %v637_v25, %v637_v25  ;;  %v7324_v44 = vor.u32 %v9733_v35, %v7321_v36 }
  0x89   :  { %v9897_v43 = vld [vmem:[#allocation2 + $0xc9c] sm:$0xf0]  ;;  %v7577_v39 = vld [vmem:[#allocation2 + $0x9a0] sm:$0xf0] }
  0x8a   :  { %v7960_v48 = vor.u32 %v9897_v43, %v7959_v42  ;;  %v7415_v49 = vld [vmem:[#allocation2 + $0x840] sm:$0xf]  ;;  %2963 = vmatpush.bf16.msrb.mxu1 %v7704_v47  ;;  %v6812_v42 = vor.u32 %v9605_v30, %v6809_v31  ;;  %v7068_v43 = vor.u32 %v9669_v32, %v7065_v34  ;;  %v6777_v46 = vld [vmem:[#allocation2 + $0x360] sm:$0xf0]  ;;  %2992 = vmatmul.bf16.vlgmr.msrb.gmra.mxu3 %v10615_v20 }
  0x8b   :  { %v9761_v50 = vld [vmem:[#allocation2 + $0x85c] sm:$0xf0]  ;;  %v9661_v47 = vld [vmem:[#allocation2 + $0x544] sm:$0xf]  ;;  %3036 = vmatpush.bf16.msra.mxu3 %v7612_v33 }
  0x8c   :  { %v7671_v51 = vld [vmem:[#allocation2 + $0xa40] sm:$0xf]  ;;  %v7416_v59 = vor.u32 %v9761_v50, %v7415_v49  ;;  %2976 = vmatpush.bf16.msrb.mxu2 %v7960_v48  ;;  %v7580_v48 = vor.u32 %v9797_v38, %v7577_v39  ;;  %v7033_v49 = vld [vmem:[#allocation2 + $0x560] sm:$0xf0] }
  0x8d   :  { %v9825_v53 = vld [vmem:[#allocation2 + $0xa5c] sm:$0xf0]  ;;  %v9725_v50 = vld [vmem:[#allocation2 + $0x744] sm:$0xf] }
  0x8e   :  { %v7927_v54 = vld [vmem:[#allocation2 + $0xc40] sm:$0xf]  ;;  %v7672_v63 = vor.u32 %v9825_v53, %v7671_v51  ;;  %2951 = vmatpush.bf16.msrb.mxu0 %v7416_v59  ;;  %v7289_v51 = vld [vmem:[#allocation2 + $0x760] sm:$0xf0] }
  0x8f   :  { %v9889_v55 = vld [vmem:[#allocation2 + $0xc5c] sm:$0xf0]  ;;  %v7545_v53 = vld [vmem:[#allocation2 + $0x960] sm:$0xf0]  ;;  %v7292_v56 = vor.u32 %v9725_v50, %v7289_v51  ;;  %3037 = vmatpush.bf16.msra.mxu3 %v7580_v48 }
  0x90   :  { %v7383_v58 = vld [vmem:[#allocation2 + $0x800] sm:$0xf]  ;;  %v7928_v0 = vor.u32 %v9889_v55, %v7927_v54  ;;  %2964 = vmatpush.bf16.msrb.mxu1 %v7672_v63  ;;  %v6780_v54 = vor.u32 %v9597_v45, %v6777_v46  ;;  %v7036_v55 = vor.u32 %v9661_v47, %v7033_v49  ;;  %v9653_v59 = vld [vmem:[#allocation2 + $0x504] sm:$0xf] }
  0x91   :  { %v9753_v60 = vld [vmem:[#allocation2 + $0x81c] sm:$0xf0]  ;;  %v7257_v63 = vld [vmem:[#allocation2 + $0x720] sm:$0xf0] }
  0x92   :  { %v7639_v61 = vld [vmem:[#allocation2 + $0xa00] sm:$0xf]  ;;  %v7384_v13 = vor.u32 %v9753_v60, %v7383_v58  ;;  %2977 = vmatpush.bf16.msrb.mxu2 %v7928_v0  ;;  %v6745_v58 = vld [vmem:[#allocation2 + $0x320] sm:$0xf0]  ;;  %v7548_v60 = vor.u32 %v9789_v52, %v7545_v53 }
  0x93   :  { %v9817_v62 = vld [vmem:[#allocation2 + $0xa1c] sm:$0xf0]  ;;  %v9781_v0 = vld [vmem:[#allocation2 + $0x904] sm:$0xf] }
  0x94   :  { %v7895_v1 = vld [vmem:[#allocation2 + $0xc00] sm:$0xf]  ;;  %v7640_v18 = vor.u32 %v9817_v62, %v7639_v61  ;;  %2952 = vmatpush.bf16.msrb.mxu0 %v7384_v13  ;;  %v7001_v61 = vld [vmem:[#allocation2 + $0x520] sm:$0xf0]  ;;  %3038 = vmatpush.bf16.msra.mxu3 %v7548_v60 }
  0x95   :  { %v9881_v2 = vld [vmem:[#allocation2 + $0xc1c] sm:$0xf0]  ;;  %v9717_v62 = vld [vmem:[#allocation2 + $0x704] sm:$0xf]  ;;  %v7004_v3 = vor.u32 %v9653_v59, %v7001_v61 }
  0x96   :  { %v7896_v19 = vor.u32 %v9881_v2, %v7895_v1  ;;  %2965 = vmatpush.bf16.msrb.mxu1 %v7640_v18  ;;  %v7513_v1 = vld [vmem:[#allocation2 + $0x920] sm:$0xf0]  ;;  %v6748_v2 = vor.u32 %v9589_v57, %v6745_v58  ;;  %v7260_v5 = vor.u32 %v9717_v62, %v7257_v63  ;;  %v6591_v62 = vld [vmem:[#allocation2 + $0x1c8] sm:$0xf] }
  0x97   :  { %2953 = vmatmul.bf16.vlgmr.msrb.gmra.mxu0 %v10630_v40  ;;  %v9581_v7 = vld [vmem:[#allocation2 + $0x2c4] sm:$0xf]  ;;  %v7516_v10 = vor.u32 %v9781_v0, %v7513_v1  ;;  %v9554_v63 = vld [vmem:[#allocation2 + $0x1e4] sm:$0xf0] }
  0x98   :  { %2978 = vmatpush.bf16.msrb.mxu2 %v7896_v19  ;;  %2997 = vmatpush.bf16.msra.mxu0 %v6844_v27  ;;  %v6713_v8 = vld [vmem:[#allocation2 + $0x2e0] sm:$0xf0] }
  0x99   :  { %2966 = vmatmul.bf16.vlgmr.msrb.gmra.mxu1 %v10632_v41  ;;  %v9645_v9 = vld [vmem:[#allocation2 + $0x4c4] sm:$0xf]  ;;  %v6716_v16 = vor.u32 %v9581_v7, %v6713_v8  ;;  %3039 = vmatpush.bf16.msra.mxu3 %v7516_v10 }
  0x9a   :  { %3010 = vmatpush.bf16.msra.mxu1 %v7100_v28  ;;  %v6969_v11 = vld [vmem:[#allocation2 + $0x4e0] sm:$0xf0] }
  0x9b   :  { %2979 = vmatmul.bf16.vlgmr.msrb.gmra.mxu2 %v10628_v37  ;;  %v9709_v12 = vld [vmem:[#allocation2 + $0x6c4] sm:$0xf]  ;;  %v6972_v17 = vor.u32 %v9645_v9, %v6969_v11  ;;  %v6592_v9 = vor.u32 %v9554_v63, %v6591_v62 }
  0x9c   :  { %3023 = vmatpush.bf16.msra.mxu2 %v7356_v29  ;;  %2998 = vmatpush.bf16.msra.mxu0 %v6812_v42  ;;  %v7225_v13 = vld [vmem:[#allocation2 + $0x6e0] sm:$0xf0] }
  0x9d   :  { %v9773_v14 = vld [vmem:[#allocation2 + $0x8c4] sm:$0xf]  ;;  %v7228_v18 = vor.u32 %v9709_v12, %v7225_v13 }
  0x9e   :  { %3011 = vmatpush.bf16.msra.mxu1 %v7068_v43  ;;  %v7481_v15 = vld [vmem:[#allocation2 + $0x8e0] sm:$0xf0] }
  0x9f   :  { %v9573_v19 = vld [vmem:[#allocation2 + $0x284] sm:$0xf]  ;;  %v7484_v24 = vor.u32 %v9773_v14, %v7481_v15  ;;  %v6559_v15 = vld [vmem:[#allocation2 + $0x188] sm:$0xf] }
  0xa0   :  { %3024 = vmatpush.bf16.msra.mxu2 %v7324_v44  ;;  %2999 = vmatpush.bf16.msra.mxu0 %v6780_v54  ;;  %v6681_v22 = vld [vmem:[#allocation2 + $0x2a0] sm:$0xf0] }
  0xa1   :  { %v9637_v23 = vld [vmem:[#allocation2 + $0x484] sm:$0xf]  ;;  %v6684_v30 = vor.u32 %v9573_v19, %v6681_v22  ;;  %3040 = vmatpush.bf16.msra.mxu3 %v7484_v24 }
  0xa2   :  { %3012 = vmatpush.bf16.msra.mxu1 %v7036_v55  ;;  %v6937_v25 = vld [vmem:[#allocation2 + $0x4a0] sm:$0xf0] }
  0xa3   :  { %v9701_v26 = vld [vmem:[#allocation2 + $0x684] sm:$0xf]  ;;  %v6940_v31 = vor.u32 %v9637_v23, %v6937_v25 }
  0xa4   :  { %3025 = vmatpush.bf16.msra.mxu2 %v7292_v56  ;;  %3000 = vmatpush.bf16.msra.mxu0 %v6748_v2  ;;  %v7193_v27 = vld [vmem:[#allocation2 + $0x6a0] sm:$0xf0]  ;;  %v6847_v2 = vld [vmem:[#allocation2 + $0x3c8] sm:$0xf] }
  0xa5   :  { %v9765_v28 = vld [vmem:[#allocation2 + $0x884] sm:$0xf]  ;;  %v7196_v32 = vor.u32 %v9701_v26, %v7193_v27 }
  0xa6   :  { %3013 = vmatpush.bf16.msra.mxu1 %v7004_v3  ;;  %v7449_v29 = vld [vmem:[#allocation2 + $0x8a0] sm:$0xf0]  ;;  %v9618_v3 = vld [vmem:[#allocation2 + $0x3e4] sm:$0xf0] }
  0xa7   :  { %v9565_v33 = vld [vmem:[#allocation2 + $0x244] sm:$0xf]  ;;  %v7452_v36 = vor.u32 %v9765_v28, %v7449_v29  ;;  %v6848_v13 = vor.u32 %v9618_v3, %v6847_v2  ;;  %v6527_v29 = vld [vmem:[#allocation2 + $0x148] sm:$0xf] }
  0xa8   :  { %3026 = vmatpush.bf16.msra.mxu2 %v7260_v5  ;;  %3001 = vmatpush.bf16.msra.mxu0 %v6716_v16  ;;  %v6649_v34 = vld [vmem:[#allocation2 + $0x260] sm:$0xf0]  ;;  %v9546_v16 = vld [vmem:[#allocation2 + $0x1a4] sm:$0xf0] }
  0xa9   :  { %v9629_v35 = vld [vmem:[#allocation2 + $0x444] sm:$0xf]  ;;  %v6652_v45 = vor.u32 %v9565_v33, %v6649_v34  ;;  %3041 = vmatpush.bf16.msra.mxu3 %v7452_v36  ;;  %v6560_v23 = vor.u32 %v9546_v16, %v6559_v15 }
  0xaa   :  { %3014 = vmatpush.bf16.msra.mxu1 %v6972_v17  ;;  %v6905_v38 = vld [vmem:[#allocation2 + $0x460] sm:$0xf0]  ;;  %v6815_v17 = vld [vmem:[#allocation2 + $0x388] sm:$0xf] }
  0xab   :  { %v9693_v39 = vld [vmem:[#allocation2 + $0x644] sm:$0xf]  ;;  %v6908_v48 = vor.u32 %v9629_v35, %v6905_v38 }
  0xac   :  { %3027 = vmatpush.bf16.msra.mxu2 %v7228_v18  ;;  %v7161_v42 = vld [vmem:[#allocation2 + $0x660] sm:$0xf0]  ;;  %3002 = vmatpush.bf16.msra.mxu0 %v6684_v30  ;;  %v9610_v18 = vld [vmem:[#allocation2 + $0x3a4] sm:$0xf0] }
  0xad   :  { %v9757_v43 = vld [vmem:[#allocation2 + $0x844] sm:$0xf]  ;;  %v7164_v49 = vor.u32 %v9693_v39, %v7161_v42  ;;  %v6816_v27 = vor.u32 %v9610_v18, %v6815_v17  ;;  %v9538_v30 = vld [vmem:[#allocation2 + $0x164] sm:$0xf0] }
  0xae   :  { %v7417_v44 = vld [vmem:[#allocation2 + $0x860] sm:$0xf0]  ;;  %3015 = vmatpush.bf16.msra.mxu1 %v6940_v31  ;;  %v6783_v31 = vld [vmem:[#allocation2 + $0x348] sm:$0xf]  ;;  %v6528_v35 = vor.u32 %v9538_v30, %v6527_v29 }
  0xaf   :  { %v9557_v46 = vld [vmem:[#allocation2 + $0x204] sm:$0xf]  ;;  %v7420_v53 = vor.u32 %v9757_v43, %v7417_v44  ;;  %v6495_v44 = vld [vmem:[#allocation2 + $0x108] sm:$0xf] }
  0xb0   :  { %v6617_v47 = vld [vmem:[#allocation2 + $0x220] sm:$0xf0]  ;;  %3028 = vmatpush.bf16.msra.mxu2 %v7196_v32  ;;  %3003 = vmatpush.bf16.msra.mxu0 %v6652_v45  ;;  %v9602_v32 = vld [vmem:[#allocation2 + $0x364] sm:$0xf0] }
  0xb1   :  { %v9621_v50 = vld [vmem:[#allocation2 + $0x404] sm:$0xf]  ;;  %v6620_v60 = vor.u32 %v9557_v46, %v6617_v47  ;;  %3042 = vmatpush.bf16.msra.mxu3 %v7420_v53  ;;  %v6784_v42 = vor.u32 %v9602_v32, %v6783_v31  ;;  %v9530_v45 = vld [vmem:[#allocation2 + $0x124] sm:$0xf0] }
  0xb2   :  { %v6873_v51 = vld [vmem:[#allocation2 + $0x420] sm:$0xf0]  ;;  %3016 = vmatpush.bf16.msra.mxu1 %v6908_v48  ;;  %v6751_v46 = vld [vmem:[#allocation2 + $0x308] sm:$0xf] }
  0xb3   :  { %v9685_v52 = vld [vmem:[#allocation2 + $0x604] sm:$0xf]  ;;  %v6876_v0 = vor.u32 %v9621_v50, %v6873_v51  ;;  %v9594_v47 = vld [vmem:[#allocation2 + $0x324] sm:$0xf0]  ;;  %v6496_v50 = vor.u32 %v9530_v45, %v6495_v44 }
  0xb4   :  { %v7129_v54 = vld [vmem:[#allocation2 + $0x620] sm:$0xf0]  ;;  %3029 = vmatpush.bf16.msra.mxu2 %v7164_v49  ;;  %3004 = vmatpush.bf16.msra.mxu0 %v6620_v60  ;;  %v6399_v18 = vld [vmem:[#allocation2 + $0x48] sm:$0xf] }
  0xb5   :  { %v9749_v55 = vld [vmem:[#allocation2 + $0x804] sm:$0xf]  ;;  %v7132_v1 = vor.u32 %v9685_v52, %v7129_v54  ;;  %v6752_v54 = vor.u32 %v9594_v47, %v6751_v46  ;;  %v6367_v31 = vld [vmem:[#allocation2 + $0x8] sm:$0xf] }
  0xb6   :  { %v7385_v56 = vld [vmem:[#allocation2 + $0x820] sm:$0xf0]  ;;  %3017 = vmatpush.bf16.msra.mxu1 %v6876_v0  ;;  %v7615_v44 = vld [vmem:[#allocation2 + $0x9c8] sm:$0xf] }
  0xb7   :  { %v9869_v57 = vld [vmem:[#allocation2 + $0xbc4] sm:$0xf]  ;;  %v7388_v5 = vor.u32 %v9749_v55, %v7385_v56  ;;  %3005 = vmatmul.bf16.vlgmr.msra.gmra.mxu0 %v10617_v21  ;;  %v6463_v56 = vld [vmem:[#allocation2 + $0xc8] sm:$0xf] }
  0xb8   :  { %v7865_v58 = vld [vmem:[#allocation2 + $0xbe0] sm:$0xf0]  ;;  %3030 = vmatpush.bf16.msra.mxu2 %v7132_v1  ;;  %v9810_v45 = vld [vmem:[#allocation2 + $0x9e4] sm:$0xf0] }
  0xb9   :  { %v9933_v59 = vld [vmem:[#allocation2 + $0xdc4] sm:$0xf]  ;;  %v7868_v7 = vor.u32 %v9869_v57, %v7865_v58  ;;  %3043 = vmatpush.bf16.msra.mxu3 %v7388_v5  ;;  %3018 = vmatmul.bf16.vlgmr.msra.gmra.mxu1 %v10607_v4  ;;  %v9522_v57 = vld [vmem:[#allocation2 + $0xe4] sm:$0xf0] }
  0xba   :  { %v8121_v61 = vld [vmem:[#allocation2 + $0xde0] sm:$0xf0]  ;;  %v6719_v58 = vld [vmem:[#allocation2 + $0x2c8] sm:$0xf]  ;;  %v6464_v62 = vor.u32 %v9522_v57, %v6463_v56 }
  0xbb   :  { %v8124_v8 = vor.u32 %v9933_v59, %v8121_v61  ;;  %v9861_v10 = vld [vmem:[#allocation2 + $0xb84] sm:$0xf]  ;;  %3049 = vmatpush.bf16.msrb.mxu0 %v7868_v7  ;;  %3031 = vmatmul.bf16.vlgmr.msra.gmra.mxu2 %v10612_v6  ;;  %v9586_v59 = vld [vmem:[#allocation2 + $0x2e4] sm:$0xf0] }
  0xbc   :  { %v7833_v11 = vld [vmem:[#allocation2 + $0xba0] sm:$0xf0]  ;;  %3075 = vmatpush.bf16.msrb.mxu2 %v6592_v9  ;;  %3044 = vmatmul.bf16.vlgmr.msra.gmra.mxu3 %v10630_v40  ;;  %v6720_v2 = vor.u32 %v9586_v59, %v6719_v58  ;;  %v6431_v5 = vld [vmem:[#allocation2 + $0x88] sm:$0xf] }
  0xbd   :  { %v9925_v12 = vld [vmem:[#allocation2 + $0xd84] sm:$0xf]  ;;  %v7836_v19 = vor.u32 %v9861_v10, %v7833_v11  ;;  %3062 = vmatpush.bf16.msrb.mxu1 %v8124_v8  ;;  %3088 = vmatpush.bf16.msrb.mxu3 %v6848_v13  ;;  %v9514_v7 = vld [vmem:[#allocation2 + $0xa4] sm:$0xf0] }
  0xbe   :  { %v8089_v14 = vld [vmem:[#allocation2 + $0xda0] sm:$0xf0]  ;;  %v6687_v8 = vld [vmem:[#allocation2 + $0x288] sm:$0xf] }
  0xbf   :  { %v8092_v22 = vor.u32 %v9925_v12, %v8089_v14  ;;  %v9853_v24 = vld [vmem:[#allocation2 + $0xb44] sm:$0xf]  ;;  %3050 = vmatpush.bf16.msrb.mxu0 %v7836_v19  ;;  %v9578_v9 = vld [vmem:[#allocation2 + $0x2a4] sm:$0xf0]  ;;  %v6432_v12 = vor.u32 %v9514_v7, %v6431_v5 }
  0xc0   :  { %v7801_v25 = vld [vmem:[#allocation2 + $0xb60] sm:$0xf0]  ;;  %3076 = vmatpush.bf16.msrb.mxu2 %v6560_v23  ;;  %v6688_v16 = vor.u32 %v9578_v9, %v6687_v8  ;;  %v9506_v19 = vld [vmem:[#allocation2 + $0x64] sm:$0xf0] }
  0xc1   :  { %v9917_v26 = vld [vmem:[#allocation2 + $0xd44] sm:$0xf]  ;;  %v7804_v33 = vor.u32 %v9853_v24, %v7801_v25  ;;  %3063 = vmatpush.bf16.msrb.mxu1 %v8092_v22  ;;  %3089 = vmatpush.bf16.msrb.mxu3 %v6816_v27  ;;  %v6655_v22 = vld [vmem:[#allocation2 + $0x248] sm:$0xf] }
  0xc2   :  { %v8057_v28 = vld [vmem:[#allocation2 + $0xd60] sm:$0xf0]  ;;  %v9570_v23 = vld [vmem:[#allocation2 + $0x264] sm:$0xf0] }
  0xc3   :  { %v8060_v34 = vor.u32 %v9917_v26, %v8057_v28  ;;  %v9845_v36 = vld [vmem:[#allocation2 + $0xb04] sm:$0xf]  ;;  %3051 = vmatpush.bf16.msrb.mxu0 %v7804_v33  ;;  %v6400_v28 = vor.u32 %v9506_v19, %v6399_v18  ;;  %v6656_v32 = vor.u32 %v9570_v23, %v6655_v22  ;;  %v9498_v33 = vld [vmem:[#allocation2 + $0x24] sm:$0xf0] }
  0xc4   :  { %v7769_v38 = vld [vmem:[#allocation2 + $0xb20] sm:$0xf0]  ;;  %3077 = vmatpush.bf16.msrb.mxu2 %v6528_v35  ;;  %v9562_v35 = vld [vmem:[#allocation2 + $0x224] sm:$0xf0]  ;;  %v6368_v47 = vor.u32 %v9498_v33, %v6367_v31 }
  0xc5   :  { %v9909_v39 = vld [vmem:[#allocation2 + $0xd04] sm:$0xf]  ;;  %v7772_v48 = vor.u32 %v9845_v36, %v7769_v38  ;;  %3064 = vmatpush.bf16.msrb.mxu1 %v8060_v34  ;;  %3090 = vmatpush.bf16.msrb.mxu3 %v6784_v42  ;;  %v6623_v34 = vld [vmem:[#allocation2 + $0x208] sm:$0xf] }
  0xc6   :  { %v8025_v43 = vld [vmem:[#allocation2 + $0xd20] sm:$0xf0]  ;;  %v7103_v36 = vld [vmem:[#allocation2 + $0x5c8] sm:$0xf] }
  0xc7   :  { %v8028_v49 = vor.u32 %v9909_v39, %v8025_v43  ;;  %v9837_v51 = vld [vmem:[#allocation2 + $0xac4] sm:$0xf]  ;;  %3052 = vmatpush.bf16.msrb.mxu0 %v7772_v48  ;;  %v9682_v38 = vld [vmem:[#allocation2 + $0x5e4] sm:$0xf0] }
  0xc8   :  { %v7737_v52 = vld [vmem:[#allocation2 + $0xae0] sm:$0xf0]  ;;  %3078 = vmatpush.bf16.msrb.mxu2 %v6496_v50  ;;  %v7359_v39 = vld [vmem:[#allocation2 + $0x7c8] sm:$0xf]  ;;  %v6624_v50 = vor.u32 %v9562_v35, %v6623_v34 }
  0xc9   :  { %v9901_v53 = vld [vmem:[#allocation2 + $0xcc4] sm:$0xf]  ;;  %v7740_v60 = vor.u32 %v9837_v51, %v7737_v52  ;;  %3065 = vmatpush.bf16.msrb.mxu1 %v8028_v49  ;;  %3091 = vmatpush.bf16.msrb.mxu3 %v6752_v54  ;;  %v9746_v43 = vld [vmem:[#allocation2 + $0x7e4] sm:$0xf0]  ;;  %v7104_v51 = vor.u32 %v9682_v38, %v7103_v36 }
  0xca   :  { %v7993_v55 = vld [vmem:[#allocation2 + $0xce0] sm:$0xf0]  ;;  %v7871_v48 = vld [vmem:[#allocation2 + $0xbc8] sm:$0xf]  ;;  %v7360_v52 = vor.u32 %v9746_v43, %v7359_v39 }
  0xcb   :  { %v7996_v61 = vor.u32 %v9901_v53, %v7993_v55  ;;  %v9829_v63 = vld [vmem:[#allocation2 + $0xa84] sm:$0xf]  ;;  %3053 = vmatpush.bf16.msrb.mxu0 %v7740_v60  ;;  %v9874_v49 = vld [vmem:[#allocation2 + $0xbe4] sm:$0xf0]  ;;  %v7616_v53 = vor.u32 %v9810_v45, %v7615_v44 }
  0xcc   :  { %v7705_v0 = vld [vmem:[#allocation2 + $0xaa0] sm:$0xf0]  ;;  %3079 = vmatpush.bf16.msrb.mxu2 %v6464_v62  ;;  %v7071_v54 = vld [vmem:[#allocation2 + $0x588] sm:$0xf]  ;;  %v7872_v57 = vor.u32 %v9874_v49, %v7871_v48 }
  0xcd   :  { %v9893_v1 = vld [vmem:[#allocation2 + $0xc84] sm:$0xf]  ;;  %v7708_v10 = vor.u32 %v9829_v63, %v7705_v0  ;;  %3066 = vmatpush.bf16.msrb.mxu1 %v7996_v61  ;;  %3092 = vmatpush.bf16.msrb.mxu3 %v6720_v2  ;;  %v9674_v55 = vld [vmem:[#allocation2 + $0x5a4] sm:$0xf0] }
  0xce   :  { %v7961_v3 = vld [vmem:[#allocation2 + $0xca0] sm:$0xf0]  ;;  %v7327_v56 = vld [vmem:[#allocation2 + $0x788] sm:$0xf]  ;;  %v7072_v63 = vor.u32 %v9674_v55, %v7071_v54 }
  0xcf   :  { %v7964_v11 = vor.u32 %v9893_v1, %v7961_v3  ;;  %v9821_v13 = vld [vmem:[#allocation2 + $0xa44] sm:$0xf]  ;;  %3054 = vmatpush.bf16.msrb.mxu0 %v7708_v10  ;;  %v9738_v58 = vld [vmem:[#allocation2 + $0x7a4] sm:$0xf0] }
  0xd0   :  { %v7673_v14 = vld [vmem:[#allocation2 + $0xa60] sm:$0xf0]  ;;  %3080 = vmatpush.bf16.msrb.mxu2 %v6432_v12  ;;  %v7583_v59 = vld [vmem:[#allocation2 + $0x988] sm:$0xf]  ;;  %v7328_v0 = vor.u32 %v9738_v58, %v7327_v56 }
  0xd1   :  { %v9885_v15 = vld [vmem:[#allocation2 + $0xc44] sm:$0xf]  ;;  %v7676_v24 = vor.u32 %v9821_v13, %v7673_v14  ;;  %3067 = vmatpush.bf16.msrb.mxu1 %v7964_v11  ;;  %3093 = vmatpush.bf16.msrb.mxu3 %v6688_v16  ;;  %v9802_v60 = vld [vmem:[#allocation2 + $0x9a4] sm:$0xf0] }
  0xd2   :  { %v7929_v17 = vld [vmem:[#allocation2 + $0xc60] sm:$0xf0]  ;;  %v7839_v61 = vld [vmem:[#allocation2 + $0xb88] sm:$0xf]  ;;  %v7584_v1 = vor.u32 %v9802_v60, %v7583_v59 }
  0xd3   :  { %v9813_v25 = vld [vmem:[#allocation2 + $0xa04] sm:$0xf]  ;;  %v7932_v27 = vor.u32 %v9885_v15, %v7929_v17  ;;  %3055 = vmatpush.bf16.msrb.mxu0 %v7676_v24  ;;  %v9866_v62 = vld [vmem:[#allocation2 + $0xba4] sm:$0xf0] }
  0xd4   :  { %v7641_v26 = vld [vmem:[#allocation2 + $0xa20] sm:$0xf0]  ;;  %3081 = vmatpush.bf16.msrb.mxu2 %v6400_v28  ;;  %v7039_v2 = vld [vmem:[#allocation2 + $0x548] sm:$0xf]  ;;  %v7840_v7 = vor.u32 %v9866_v62, %v7839_v61 }
  0xd5   :  { %v9877_v29 = vld [vmem:[#allocation2 + $0xc04] sm:$0xf]  ;;  %v7644_v42 = vor.u32 %v9813_v25, %v7641_v26  ;;  %3068 = vmatpush.bf16.msrb.mxu1 %v7932_v27  ;;  %3094 = vmatpush.bf16.msrb.mxu3 %v6656_v32  ;;  %v9666_v3 = vld [vmem:[#allocation2 + $0x564] sm:$0xf0] }
  0xd6   :  { %v7897_v30 = vld [vmem:[#allocation2 + $0xc20] sm:$0xf0]  ;;  %v7295_v5 = vld [vmem:[#allocation2 + $0x748] sm:$0xf]  ;;  %v7040_v13 = vor.u32 %v9666_v3, %v7039_v2 }
  0xd7   :  { %v7900_v46 = vor.u32 %v9877_v29, %v7897_v30  ;;  %3056 = vmatpush.bf16.msrb.mxu0 %v7644_v42  ;;  %v9730_v8 = vld [vmem:[#allocation2 + $0x764] sm:$0xf0] }
  0xd8   :  { %3082 = vmatpush.bf16.msrb.mxu2 %v6368_v47  ;;  %v7551_v9 = vld [vmem:[#allocation2 + $0x948] sm:$0xf]  ;;  %v7296_v14 = vor.u32 %v9730_v8, %v7295_v5 }
  0xd9   :  { %3069 = vmatpush.bf16.msrb.mxu1 %v7900_v46  ;;  %3095 = vmatpush.bf16.msrb.mxu3 %v6624_v50  ;;  %v9794_v10 = vld [vmem:[#allocation2 + $0x964] sm:$0xf0] }
  0xda   :  { %3057 = vmatmul.bf16.vlgmr.msrb.gmra.mxu0 %v10632_v41  ;;  %v7807_v11 = vld [vmem:[#allocation2 + $0xb48] sm:$0xf]  ;;  %v7552_v15 = vor.u32 %v9794_v10, %v7551_v9 }
  0xdb   :  { %3101 = vmatpush.bf16.msra.mxu0 %v7104_v51  ;;  %v9858_v12 = vld [vmem:[#allocation2 + $0xb64] sm:$0xf0]  ;;  %3083 = vmatmul.bf16.vlgmr.msrb.gmra.mxu2 %v10615_v20 }
  0xdc   :  { %3127 = vmatpush.bf16.msra.mxu2 %v7616_v53  ;;  %3070 = vmatmul.bf16.vlgmr.msrb.gmra.mxu1 %v10628_v37  ;;  %v7007_v16 = vld [vmem:[#allocation2 + $0x508] sm:$0xf]  ;;  %v7808_v19 = vor.u32 %v9858_v12, %v7807_v11 }
  0xdd   :  { %3114 = vmatpush.bf16.msra.mxu1 %v7360_v52  ;;  %3140 = vmatpush.bf16.msra.mxu3 %v7872_v57  ;;  %v9658_v17 = vld [vmem:[#allocation2 + $0x524] sm:$0xf0] }
  0xde   :  { %3096 = vmatmul.bf16.vlgmr.msrb.gmra.mxu3 %v10617_v21  ;;  %v7263_v18 = vld [vmem:[#allocation2 + $0x708] sm:$0xf]  ;;  %v7008_v27 = vor.u32 %v9658_v17, %v7007_v16 }
  0xdf   :  { %3102 = vmatpush.bf16.msra.mxu0 %v7072_v63  ;;  %v9722_v22 = vld [vmem:[#allocation2 + $0x724] sm:$0xf0] }
  0xe0   :  { %3128 = vmatpush.bf16.msra.mxu2 %v7584_v1  ;;  %v7519_v23 = vld [vmem:[#allocation2 + $0x908] sm:$0xf]  ;;  %v7264_v28 = vor.u32 %v9722_v22, %v7263_v18  ;;  %v9550_v18 = vld [vmem:[#allocation2 + $0x1cc] sm:$0xf] }
  0xe1   :  { %3115 = vmatpush.bf16.msra.mxu1 %v7328_v0  ;;  %3141 = vmatpush.bf16.msra.mxu3 %v7840_v7  ;;  %v9786_v24 = vld [vmem:[#allocation2 + $0x924] sm:$0xf0]  ;;  %v6593_v22 = vld [vmem:[#allocation2 + $0x1e8] sm:$0xf0] }
  0xe2   :  { %v7775_v25 = vld [vmem:[#allocation2 + $0xb08] sm:$0xf]  ;;  %v7520_v29 = vor.u32 %v9786_v24, %v7519_v23  ;;  %v9614_v23 = vld [vmem:[#allocation2 + $0x3cc] sm:$0xf] }
  0xe3   :  { %v9850_v26 = vld [vmem:[#allocation2 + $0xb24] sm:$0xf0]  ;;  %3103 = vmatpush.bf16.msra.mxu0 %v7040_v13  ;;  %v6849_v24 = vld [vmem:[#allocation2 + $0x3e8] sm:$0xf0] }
  0xe4   :  { %3129 = vmatpush.bf16.msra.mxu2 %v7552_v15  ;;  %v6975_v30 = vld [vmem:[#allocation2 + $0x4c8] sm:$0xf]  ;;  %v7776_v33 = vor.u32 %v9850_v26, %v7775_v25 }
  0xe5   :  { %3116 = vmatpush.bf16.msra.mxu1 %v7296_v14  ;;  %v9650_v31 = vld [vmem:[#allocation2 + $0x4e4] sm:$0xf0]  ;;  %3142 = vmatpush.bf16.msra.mxu3 %v7808_v19 }
  0xe6   :  { %v7231_v32 = vld [vmem:[#allocation2 + $0x6c8] sm:$0xf]  ;;  %v6976_v42 = vor.u32 %v9650_v31, %v6975_v30  ;;  %v6596_v31 = vor.u32 %v9550_v18, %v6593_v22  ;;  %v9646_v18 = vld [vmem:[#allocation2 + $0x4cc] sm:$0xf] }
  0xe7   :  { %v9714_v34 = vld [vmem:[#allocation2 + $0x6e4] sm:$0xf0]  ;;  %3104 = vmatpush.bf16.msra.mxu0 %v7008_v27  ;;  %v9678_v27 = vld [vmem:[#allocation2 + $0x5cc] sm:$0xf] }
  0xe8   :  { %v7487_v35 = vld [vmem:[#allocation2 + $0x8c8] sm:$0xf]  ;;  %3130 = vmatpush.bf16.msra.mxu2 %v7520_v29  ;;  %v7232_v43 = vor.u32 %v9714_v34, %v7231_v32  ;;  %v6852_v32 = vor.u32 %v9614_v23, %v6849_v24 }
  0xe9   :  { %v9778_v36 = vld [vmem:[#allocation2 + $0x8e4] sm:$0xf0]  ;;  %3117 = vmatpush.bf16.msra.mxu1 %v7264_v28  ;;  %3143 = vmatpush.bf16.msra.mxu3 %v7776_v33  ;;  %v7105_v28 = vld [vmem:[#allocation2 + $0x5e8] sm:$0xf0] }
  0xea   :  { %v7743_v38 = vld [vmem:[#allocation2 + $0xac8] sm:$0xf]  ;;  %v7488_v44 = vor.u32 %v9778_v36, %v7487_v35  ;;  %v9542_v35 = vld [vmem:[#allocation2 + $0x18c] sm:$0xf]  ;;  %v7108_v36 = vor.u32 %v9678_v27, %v7105_v28 }
  0xeb   :  { %v9842_v39 = vld [vmem:[#allocation2 + $0xae4] sm:$0xf0]  ;;  %3105 = vmatpush.bf16.msra.mxu0 %v6976_v42  ;;  %v6817_v42 = vld [vmem:[#allocation2 + $0x3a8] sm:$0xf0] }
  0xec   :  { %v6943_v45 = vld [vmem:[#allocation2 + $0x488] sm:$0xf]  ;;  %v7744_v48 = vor.u32 %v9842_v39, %v7743_v38  ;;  %3131 = vmatpush.bf16.msra.mxu2 %v7488_v44  ;;  %v6561_v38 = vld [vmem:[#allocation2 + $0x1a8] sm:$0xf0] }
  0xed   :  { %v9642_v46 = vld [vmem:[#allocation2 + $0x4a4] sm:$0xf0]  ;;  %3118 = vmatpush.bf16.msra.mxu1 %v7232_v43  ;;  %v9606_v39 = vld [vmem:[#allocation2 + $0x38c] sm:$0xf] }
  0xee   :  { %v7199_v47 = vld [vmem:[#allocation2 + $0x688] sm:$0xf]  ;;  %v6944_v54 = vor.u32 %v9642_v46, %v6943_v45  ;;  %3144 = vmatpush.bf16.msra.mxu3 %v7744_v48  ;;  %v9670_v43 = vld [vmem:[#allocation2 + $0x58c] sm:$0xf]  ;;  %v6564_v46 = vor.u32 %v9542_v35, %v6561_v38 }
  0xef   :  { %v9706_v49 = vld [vmem:[#allocation2 + $0x6a4] sm:$0xf0]  ;;  %v7073_v44 = vld [vmem:[#allocation2 + $0x5a8] sm:$0xf0] }
  0xf0   :  { %v7455_v50 = vld [vmem:[#allocation2 + $0x888] sm:$0xf]  ;;  %v7200_v55 = vor.u32 %v9706_v49, %v7199_v47  ;;  %3106 = vmatpush.bf16.msra.mxu0 %v6944_v54  ;;  %v6820_v47 = vor.u32 %v9606_v39, %v6817_v42  ;;  %v6785_v54 = vld [vmem:[#allocation2 + $0x368] sm:$0xf0] }
  0xf1   :  { %v9770_v51 = vld [vmem:[#allocation2 + $0x8a4] sm:$0xf0]  ;;  %v9510_v28 = vld [vmem:[#allocation2 + $0x8c] sm:$0xf] }
  0xf2   :  { %v7711_v52 = vld [vmem:[#allocation2 + $0xa88] sm:$0xf]  ;;  %v7456_v56 = vor.u32 %v9770_v51, %v7455_v50  ;;  %3119 = vmatpush.bf16.msra.mxu1 %v7200_v55  ;;  %v9534_v50 = vld [vmem:[#allocation2 + $0x14c] sm:$0xf]  ;;  %v7076_v51 = vor.u32 %v9670_v43, %v7073_v44 }
  0xf3   :  { %v9834_v53 = vld [vmem:[#allocation2 + $0xaa4] sm:$0xf0]  ;;  %v9662_v55 = vld [vmem:[#allocation2 + $0x54c] sm:$0xf] }
  0xf4   :  { %v6911_v57 = vld [vmem:[#allocation2 + $0x448] sm:$0xf]  ;;  %v7712_v60 = vor.u32 %v9834_v53, %v7711_v52  ;;  %3132 = vmatpush.bf16.msra.mxu2 %v7456_v56  ;;  %v6529_v52 = vld [vmem:[#allocation2 + $0x168] sm:$0xf0] }
  0xf5   :  { %v9634_v58 = vld [vmem:[#allocation2 + $0x464] sm:$0xf0]  ;;  %v9598_v53 = vld [vmem:[#allocation2 + $0x34c] sm:$0xf] }
  0xf6   :  { %v7167_v59 = vld [vmem:[#allocation2 + $0x648] sm:$0xf]  ;;  %v6912_v2 = vor.u32 %v9634_v58, %v6911_v57  ;;  %3145 = vmatpush.bf16.msra.mxu3 %v7712_v60  ;;  %v7041_v56 = vld [vmem:[#allocation2 + $0x568] sm:$0xf0]  ;;  %v6532_v58 = vor.u32 %v9534_v50, %v6529_v52 }
  0xf7   :  { %v9698_v61 = vld [vmem:[#allocation2 + $0x664] sm:$0xf0]  ;;  %v9566_v50 = vld [vmem:[#allocation2 + $0x24c] sm:$0xf] }
  0xf8   :  { %v7423_v62 = vld [vmem:[#allocation2 + $0x848] sm:$0xf]  ;;  %v7168_v7 = vor.u32 %v9698_v61, %v7167_v59  ;;  %3107 = vmatpush.bf16.msra.mxu0 %v6912_v2  ;;  %v6788_v59 = vor.u32 %v9598_v53, %v6785_v54  ;;  %v6753_v2 = vld [vmem:[#allocation2 + $0x328] sm:$0xf0]  ;;  %v2941_v53 = vpop.f32.mrf.mxu3 }
  0xf9   :  { %v9762_v63 = vld [vmem:[#allocation2 + $0x864] sm:$0xf0]  ;;  %v2902_v35 = vpop.f32.mrf.mxu0  ;;  %v2915_v39 = vpop.f32.mrf.mxu1  ;;  %v9630_v54 = vld [vmem:[#allocation2 + $0x44c] sm:$0xf] }
  0xfa   :  { %v7679_v0 = vld [vmem:[#allocation2 + $0xa48] sm:$0xf]  ;;  %v7424_v8 = vor.u32 %v9762_v63, %v7423_v62  ;;  %3120 = vmatpush.bf16.msra.mxu1 %v7168_v7  ;;  %v9526_v62 = vld [vmem:[#allocation2 + $0x10c] sm:$0xf]  ;;  %v7044_v63 = vor.u32 %v9662_v55, %v7041_v56 }
  0xfb   :  { %v9826_v1 = vld [vmem:[#allocation2 + $0xa64] sm:$0xf0]  ;;  %v6913_v55 = vld [vmem:[#allocation2 + $0x468] sm:$0xf0] }
  0xfc   :  { %v6879_v3 = vld [vmem:[#allocation2 + $0x408] sm:$0xf]  ;;  %v7680_v12 = vor.u32 %v9826_v1, %v7679_v0  ;;  %3133 = vmatpush.bf16.msra.mxu2 %v7424_v8  ;;  %v6497_v0 = vld [vmem:[#allocation2 + $0x128] sm:$0xf0] }
  0xfd   :  { %v9626_v5 = vld [vmem:[#allocation2 + $0x424] sm:$0xf0]  ;;  %v9590_v1 = vld [vmem:[#allocation2 + $0x30c] sm:$0xf] }
  0xfe   :  { %v7135_v9 = vld [vmem:[#allocation2 + $0x608] sm:$0xf]  ;;  %v6880_v19 = vor.u32 %v9626_v5, %v6879_v3  ;;  %3146 = vmatpush.bf16.msra.mxu3 %v7680_v12  ;;  %v9654_v3 = vld [vmem:[#allocation2 + $0x50c] sm:$0xf] }
  0xff   :  { %v9690_v10 = vld [vmem:[#allocation2 + $0x624] sm:$0xf0]  ;;  %v7009_v5 = vld [vmem:[#allocation2 + $0x528] sm:$0xf0] }
 0x100   :  { %v7391_v11 = vld [vmem:[#allocation2 + $0x808] sm:$0xf]  ;;  %v7136_v25 = vor.u32 %v9690_v10, %v7135_v9  ;;  %3108 = vmatpush.bf16.msra.mxu0 %v6880_v19  ;;  %v6500_v9 = vor.u32 %v9526_v62, %v6497_v0  ;;  %v6756_v10 = vor.u32 %v9590_v1, %v6753_v2  ;;  %v9518_v12 = vld [vmem:[#allocation2 + $0xcc] sm:$0xf]  ;;  %v6916_v1 = vor.u32 %v9630_v54, %v6913_v55 }
 0x101   :  { %v9754_v13 = vld [vmem:[#allocation2 + $0x824] sm:$0xf0]  ;;  %v6977_v19 = vld [vmem:[#allocation2 + $0x4e8] sm:$0xf0] }
 0x102   :  { %v7647_v14 = vld [vmem:[#allocation2 + $0xa08] sm:$0xf]  ;;  %v7392_v26 = vor.u32 %v9754_v13, %v7391_v11  ;;  %3121 = vmatpush.bf16.msra.mxu1 %v7136_v25  ;;  %v10650_v13 = vld [vmem:[#allocation4] sm:$0xff]  ;;  %v9494_v62 = vld [vmem:[#allocation2 + $0xc] sm:$0xf] }
 0x103   :  { %v9818_v15 = vld [vmem:[#allocation2 + $0xa24] sm:$0xf0]  ;;  %3109 = vmatmul.bf16.vlgmr.msra.gmra.mxu0 %v10607_v4  ;;  %v612_v23 = vperm.slane %v10650_v13, 0  ;;  %v9558_v0 = vld [vmem:[#allocation2 + $0x20c] sm:$0xf] }
 0x104   :  { %v8127_v16 = vld [vmem:[#allocation2 + $0xdc8] sm:$0xf]  ;;  %v7648_v29 = vor.u32 %v9818_v15, %v7647_v14  ;;  %3134 = vmatpush.bf16.msra.mxu2 %v7392_v26  ;;  %v7012_v14 = vor.u32 %v9654_v3, %v7009_v5  ;;  %v6465_v15 = vld [vmem:[#allocation2 + $0xe8] sm:$0xf0] }
 0x105   :  { %v9938_v17 = vld [vmem:[#allocation2 + $0xde4] sm:$0xf0]  ;;  %3122 = vmatmul.bf16.vlgmr.msra.gmra.mxu1 %v10612_v6  ;;  %v6468_v24 = vor.u32 %v9518_v12, %v6465_v15  ;;  %v2903_v38 = vadd.f32 %v2902_v35, %v612_v23  ;;  %v6625_v2 = vld [vmem:[#allocation2 + $0x228] sm:$0xf0] }
 0x106   :  { %v8128_v30 = vor.u32 %v9938_v17, %v8127_v16  ;;  %v8095_v33 = vld [vmem:[#allocation2 + $0xd88] sm:$0xf]  ;;  %3147 = vmatpush.bf16.msra.mxu3 %v7648_v29  ;;  %3166 = vmatpush.bf16.msrb.mxu1 %v6596_v31  ;;  %v9582_v16 = vld [vmem:[#allocation2 + $0x2cc] sm:$0xf]  ;;  %v6980_v29 = vor.u32 %v9646_v18, %v6977_v19  ;;  %v6628_v19 = vor.u32 %v9558_v0, %v6625_v2 }
 0x107   :  { %v9930_v34 = vld [vmem:[#allocation2 + $0xda4] sm:$0xf0]  ;;  %3135 = vmatmul.bf16.vlgmr.msra.gmra.mxu2 %v10630_v40  ;;  %v6721_v17 = vld [vmem:[#allocation2 + $0x2e8] sm:$0xf0]  ;;  %v2916_v52 = vadd.f32 %v2915_v39, %v2903_v38 }
 0x108   :  { %3153 = vmatpush.bf16.msrb.mxu0 %v8128_v30  ;;  %v8096_v45 = vor.u32 %v9930_v34, %v8095_v33  ;;  %3179 = vmatpush.bf16.msrb.mxu2 %v6852_v32  ;;  %v8063_v48 = vld [vmem:[#allocation2 + $0xd48] sm:$0xf]  ;;  %v6724_v25 = vor.u32 %v9582_v16, %v6721_v17  ;;  %v6433_v30 = vld [vmem:[#allocation2 + $0xa8] sm:$0xf0]  ;;  %v2917_v17 = vpop.f32.mrf.mxu1 }
 0x109   :  { %v9922_v49 = vld [vmem:[#allocation2 + $0xd64] sm:$0xf0]  ;;  %3148 = vmatmul.bf16.vlgmr.msra.gmra.mxu3 %v10632_v41  ;;  %v9574_v31 = vld [vmem:[#allocation2 + $0x28c] sm:$0xf]  ;;  %v6436_v42 = vor.u32 %v9510_v28, %v6433_v30 }
 0x10a   :  { %3192 = vmatpush.bf16.msrb.mxu3 %v7108_v36  ;;  %v8064_v57 = vor.u32 %v9922_v49, %v8063_v48  ;;  %3167 = vmatpush.bf16.msrb.mxu1 %v6564_v46  ;;  %v8031_v60 = vld [vmem:[#allocation2 + $0xd08] sm:$0xf]  ;;  %v6689_v32 = vld [vmem:[#allocation2 + $0x2a8] sm:$0xf0] }
 0x10b   :  { %v9914_v61 = vld [vmem:[#allocation2 + $0xd24] sm:$0xf0]  ;;  %v9638_v33 = vld [vmem:[#allocation2 + $0x48c] sm:$0xf]  ;;  %v6692_v43 = vor.u32 %v9574_v31, %v6689_v32 }
 0x10c   :  { %3154 = vmatpush.bf16.msrb.mxu0 %v8096_v45  ;;  %3180 = vmatpush.bf16.msrb.mxu2 %v6820_v47  ;;  %v8032_v7 = vor.u32 %v9914_v61, %v8031_v60  ;;  %v7999_v8 = vld [vmem:[#allocation2 + $0xcc8] sm:$0xf]  ;;  %v6945_v34 = vld [vmem:[#allocation2 + $0x4a8] sm:$0xf0]  ;;  %v2928_v47 = vpop.f32.mrf.mxu2 }
 0x10d   :  { %v9906_v11 = vld [vmem:[#allocation2 + $0xce4] sm:$0xf0]  ;;  %v9502_v46 = vld [vmem:[#allocation2 + $0x4c] sm:$0xf]  ;;  %v6948_v48 = vor.u32 %v9638_v33, %v6945_v34 }
 0x10e   :  { %3193 = vmatpush.bf16.msrb.mxu3 %v7076_v51  ;;  %3168 = vmatpush.bf16.msrb.mxu1 %v6532_v58  ;;  %v8000_v22 = vor.u32 %v9906_v11, %v7999_v8  ;;  %v7967_v26 = vld [vmem:[#allocation2 + $0xc88] sm:$0xf]  ;;  %v6401_v49 = vld [vmem:[#allocation2 + $0x68] sm:$0xf0]  ;;  %v2904_v11 = vpop.f32.mrf.mxu0 }
 0x10f   :  { %v9898_v27 = vld [vmem:[#allocation2 + $0xca4] sm:$0xf0]  ;;  %v6657_v51 = vld [vmem:[#allocation2 + $0x268] sm:$0xf0]  ;;  %v6404_v60 = vor.u32 %v9502_v46, %v6401_v49 }
 0x110   :  { %3155 = vmatpush.bf16.msrb.mxu0 %v8064_v57  ;;  %3181 = vmatpush.bf16.msrb.mxu2 %v6788_v59  ;;  %v7968_v36 = vor.u32 %v9898_v27, %v7967_v26  ;;  %v7935_v44 = vld [vmem:[#allocation2 + $0xc48] sm:$0xf]  ;;  %v2929_v59 = vadd.f32 %v2928_v47, %v2916_v52  ;;  %v6660_v61 = vor.u32 %v9566_v50, %v6657_v51  ;;  %v9622_v3 = vld [vmem:[#allocation2 + $0x40c] sm:$0xf]  ;;  %v2943_v27 = vpop.f32.mrf.mxu3 }
 0x111   :  { %v9890_v45 = vld [vmem:[#allocation2 + $0xc64] sm:$0xf0]  ;;  %v6881_v5 = vld [vmem:[#allocation2 + $0x428] sm:$0xf0] }
 0x112   :  { %3194 = vmatpush.bf16.msrb.mxu3 %v7044_v63  ;;  %3169 = vmatpush.bf16.msrb.mxu1 %v6500_v9  ;;  %v7936_v56 = vor.u32 %v9890_v45, %v7935_v44  ;;  %v7903_v57 = vld [vmem:[#allocation2 + $0xc08] sm:$0xf]  ;;  %v6369_v63 = vld [vmem:[#allocation2 + $0x28] sm:$0xf0] }
 0x113   :  { %v9882_v58 = vld [vmem:[#allocation2 + $0xc24] sm:$0xf0]  ;;  %v9742_v8 = vld [vmem:[#allocation2 + $0x7cc] sm:$0xf]  ;;  %v6372_v18 = vor.u32 %v9494_v62, %v6369_v63 }
 0x114   :  { %3156 = vmatpush.bf16.msrb.mxu0 %v8032_v7  ;;  %3182 = vmatpush.bf16.msrb.mxu2 %v6756_v10  ;;  %v10653_v7 = vadd.f32 %v2941_v53, %v2929_v59  ;;  %v7361_v9 = vld [vmem:[#allocation2 + $0x7e8] sm:$0xf0]  ;;  %v7904_v12 = vor.u32 %v9882_v58, %v7903_v57 }
 0x115   :  { %v9806_v10 = vld [vmem:[#allocation2 + $0x9cc] sm:$0xf]  ;;  %v7364_v26 = vor.u32 %v9742_v8, %v7361_v9 }
 0x116   :  { %3195 = vmatpush.bf16.msrb.mxu3 %v7012_v14  ;;  %3170 = vmatpush.bf16.msrb.mxu1 %v6468_v24  ;;  %v7617_v14 = vld [vmem:[#allocation2 + $0x9e8] sm:$0xf0]  ;;  %v2930_v24 = vpop.f32.mrf.mxu2 }
 0x117   :  { %v9870_v15 = vld [vmem:[#allocation2 + $0xbcc] sm:$0xf]  ;;  %v7620_v28 = vor.u32 %v9806_v10, %v7617_v14 }
 0x118   :  { %3157 = vmatpush.bf16.msrb.mxu0 %v8000_v22  ;;  %3183 = vmatpush.bf16.msrb.mxu2 %v6724_v25  ;;  %v7873_v16 = vld [vmem:[#allocation2 + $0xbe8] sm:$0xf0]  ;;  %v6884_v25 = vor.u32 %v9622_v3, %v6881_v5  ;;  %v2954_v3 = vpop.f32.mrf.mxu0  ;;  %v2967_v5 = vpop.f32.mrf.mxu1 }
 0x119   :  { %v9934_v22 = vld [vmem:[#allocation2 + $0xdcc] sm:$0xf]  ;;  %v2955_v14 = vadd.f32 %v2954_v3, %v10653_v7 }
 0x11a   :  { %3196 = vmatpush.bf16.msrb.mxu3 %v6980_v29  ;;  %3171 = vmatpush.bf16.msrb.mxu1 %v6436_v42  ;;  %v8129_v23 = vld [vmem:[#allocation2 + $0xde8] sm:$0xf0]  ;;  %v7876_v29 = vor.u32 %v9870_v15, %v7873_v16 }
 0x11b   :  { %v9734_v30 = vld [vmem:[#allocation2 + $0x78c] sm:$0xf]  ;;  %v8132_v33 = vor.u32 %v9934_v22, %v8129_v23  ;;  %v2968_v23 = vadd.f32 %v2967_v5, %v2955_v14  ;;  %v6599_v5 = vld [vmem:[#allocation2 + $0x1d0] sm:$0xf] }
 0x11c   :  { %3158 = vmatpush.bf16.msrb.mxu0 %v7968_v36  ;;  %3184 = vmatpush.bf16.msrb.mxu2 %v6692_v43  ;;  %v7329_v31 = vld [vmem:[#allocation2 + $0x7a8] sm:$0xf0]  ;;  %v7111_v14 = vld [vmem:[#allocation2 + $0x5d0] sm:$0xf] }
 0x11d   :  { %v9798_v32 = vld [vmem:[#allocation2 + $0x98c] sm:$0xf]  ;;  %v7332_v42 = vor.u32 %v9734_v30, %v7329_v31 }
 0x11e   :  { %3197 = vmatpush.bf16.msrb.mxu3 %v6948_v48  ;;  %3172 = vmatpush.bf16.msrb.mxu1 %v6404_v60  ;;  %v7585_v34 = vld [vmem:[#allocation2 + $0x9a8] sm:$0xf0]  ;;  %v2980_v30 = vpop.f32.mrf.mxu2 }
 0x11f   :  { %v9862_v35 = vld [vmem:[#allocation2 + $0xb8c] sm:$0xf]  ;;  %v7588_v43 = vor.u32 %v9798_v32, %v7585_v34  ;;  %v10660_v34 = vadd.f32 %v2980_v30, %v2968_v23  ;;  %v9611_v30 = vld [vmem:[#allocation2 + $0x3ac] sm:$0xf0] }
 0x120   :  { %3159 = vmatpush.bf16.msrb.mxu0 %v7936_v56  ;;  %3185 = vmatpush.bf16.msrb.mxu2 %v6660_v61  ;;  %v7841_v36 = vld [vmem:[#allocation2 + $0xba8] sm:$0xf0] }
 0x121   :  { %v9926_v38 = vld [vmem:[#allocation2 + $0xd8c] sm:$0xf]  ;;  %v7844_v44 = vor.u32 %v9862_v35, %v7841_v36  ;;  %vm3621_vm0 = vcmp.ge.f32.partialorder %v10660_v34, 0.0 }
 0x122   :  { %3198 = vmatpush.bf16.msrb.mxu3 %v6916_v1  ;;  %3173 = vmatpush.bf16.msrb.mxu1 %v6372_v18  ;;  %v8097_v39 = vld [vmem:[#allocation2 + $0xda8] sm:$0xf0] }
 0x123   :  { %v9726_v45 = vld [vmem:[#allocation2 + $0x74c] sm:$0xf]  ;;  %v8100_v48 = vor.u32 %v9926_v38, %v8097_v39  ;;  %v10662_v38 = vpop.f32.mrf.mxu3 }
 0x124   :  { %3160 = vmatpush.bf16.msrb.mxu0 %v7904_v12  ;;  %3186 = vmatpush.bf16.msrb.mxu2 %v6628_v19  ;;  %v7297_v46 = vld [vmem:[#allocation2 + $0x768] sm:$0xf0] }
 0x125   :  { %v9790_v47 = vld [vmem:[#allocation2 + $0x94c] sm:$0xf]  ;;  %v7300_v54 = vor.u32 %v9726_v45, %v7297_v46  ;;  %3174 = vmatmul.bf16.vlgmr.msrb.gmra.mxu1 %v10615_v20 }
 0x126   :  { %3199 = vmatpush.bf16.msrb.mxu3 %v6884_v25  ;;  %3218 = vmatpush.bf16.msra.mxu1 %v7620_v28  ;;  %v7553_v49 = vld [vmem:[#allocation2 + $0x968] sm:$0xf0] }
 0x127   :  { %3161 = vmatmul.bf16.vlgmr.msrb.gmra.mxu0 %v10628_v37  ;;  %v9854_v50 = vld [vmem:[#allocation2 + $0xb4c] sm:$0xf]  ;;  %3187 = vmatmul.bf16.vlgmr.msrb.gmra.mxu2 %v10617_v21  ;;  %v7556_v55 = vor.u32 %v9790_v47, %v7553_v49 }
 0x128   :  { %3205 = vmatpush.bf16.msra.mxu0 %v7364_v26  ;;  %3231 = vmatpush.bf16.msra.mxu2 %v7876_v29  ;;  %v7809_v51 = vld [vmem:[#allocation2 + $0xb68] sm:$0xf0] }
 0x129   :  { %v9918_v52 = vld [vmem:[#allocation2 + $0xd4c] sm:$0xf]  ;;  %3200 = vmatmul.bf16.vlgmr.msrb.gmra.mxu3 %v10607_v4  ;;  %v7812_v56 = vor.u32 %v9854_v50, %v7809_v51 }
 0x12a   :  { %3244 = vmatpush.bf16.msra.mxu3 %v8132_v33  ;;  %v8065_v53 = vld [vmem:[#allocation2 + $0xd68] sm:$0xf0]  ;;  %3219 = vmatpush.bf16.msra.mxu1 %v7588_v43  ;;  %v2969_v43 = vpop.f32.mrf.mxu1 }
 0x12b   :  { %v9718_v57 = vld [vmem:[#allocation2 + $0x70c] sm:$0xf]  ;;  %v8068_v60 = vor.u32 %v9918_v52, %v8065_v53  ;;  %v9539_v43 = vld [vmem:[#allocation2 + $0x16c] sm:$0xf0] }
 0x12c   :  { %3206 = vmatpush.bf16.msra.mxu0 %v7332_v42  ;;  %3232 = vmatpush.bf16.msra.mxu2 %v7844_v44  ;;  %v7265_v58 = vld [vmem:[#allocation2 + $0x728] sm:$0xf0]  ;;  %v2956_v42 = vpop.f32.mrf.mxu0 }
 0x12d   :  { %v9782_v59 = vld [vmem:[#allocation2 + $0x90c] sm:$0xf]  ;;  %v7268_v2 = vor.u32 %v9718_v57, %v7265_v58 }
 0x12e   :  { %3245 = vmatpush.bf16.msra.mxu3 %v8100_v48  ;;  %v7521_v61 = vld [vmem:[#allocation2 + $0x928] sm:$0xf0]  ;;  %3220 = vmatpush.bf16.msra.mxu1 %v7556_v55 }
 0x12f   :  { %v9846_v62 = vld [vmem:[#allocation2 + $0xb0c] sm:$0xf]  ;;  %v7524_v8 = vor.u32 %v9782_v59, %v7521_v61 }
 0x130   :  { %v7777_v63 = vld [vmem:[#allocation2 + $0xb28] sm:$0xf0]  ;;  %3207 = vmatpush.bf16.msra.mxu0 %v7300_v54  ;;  %3233 = vmatpush.bf16.msra.mxu2 %v7812_v56 }
 0x131   :  { %v9910_v0 = vld [vmem:[#allocation2 + $0xd0c] sm:$0xf]  ;;  %v7780_v9 = vor.u32 %v9846_v62, %v7777_v63  ;;  %v2982_v63 = vpop.f32.mrf.mxu2 }
 0x132   :  { %v8033_v1 = vld [vmem:[#allocation2 + $0xd28] sm:$0xf0]  ;;  %3246 = vmatpush.bf16.msra.mxu3 %v8068_v60  ;;  %3221 = vmatpush.bf16.msra.mxu1 %v7524_v8  ;;  %v9555_v8 = vld [vmem:[#allocation2 + $0x1ec] sm:$0xf0] }
 0x133   :  { %v9710_v10 = vld [vmem:[#allocation2 + $0x6cc] sm:$0xf]  ;;  %v8036_v15 = vor.u32 %v9910_v0, %v8033_v1  ;;  %v6600_v23 = vor.u32 %v9555_v8, %v6599_v5  ;;  %v7271_v63 = vld [vmem:[#allocation2 + $0x710] sm:$0xf] }
 0x134   :  { %v7233_v11 = vld [vmem:[#allocation2 + $0x6e8] sm:$0xf0]  ;;  %3208 = vmatpush.bf16.msra.mxu0 %v7268_v2  ;;  %3234 = vmatpush.bf16.msra.mxu2 %v7780_v9  ;;  %v6855_v9 = vld [vmem:[#allocation2 + $0x3d0] sm:$0xf] }
 0x135   :  { %v9774_v12 = vld [vmem:[#allocation2 + $0x8cc] sm:$0xf]  ;;  %v7236_v24 = vor.u32 %v9710_v10, %v7233_v11  ;;  %v2995_v10 = vpop.f32.mrf.mxu3  ;;  %v6471_v8 = vld [vmem:[#allocation2 + $0xd0] sm:$0xf] }
 0x136   :  { %v7489_v16 = vld [vmem:[#allocation2 + $0x8e8] sm:$0xf0]  ;;  %3247 = vmatpush.bf16.msra.mxu3 %v8036_v15  ;;  %v9683_v15 = vld [vmem:[#allocation2 + $0x5ec] sm:$0xf0] }
 0x137   :  { %v9838_v17 = vld [vmem:[#allocation2 + $0xacc] sm:$0xf]  ;;  %v7492_v25 = vor.u32 %v9774_v12, %v7489_v16  ;;  %v9619_v12 = vld [vmem:[#allocation2 + $0x3ec] sm:$0xf0] }
 0x138   :  { %v7745_v18 = vld [vmem:[#allocation2 + $0xae8] sm:$0xf0]  ;;  %3209 = vmatpush.bf16.msra.mxu0 %v7236_v24  ;;  %v6856_v24 = vor.u32 %v9619_v12, %v6855_v9  ;;  %v9523_v9 = vld [vmem:[#allocation2 + $0xec] sm:$0xf0] }
 0x139   :  { %v9902_v19 = vld [vmem:[#allocation2 + $0xccc] sm:$0xf]  ;;  %v7748_v26 = vor.u32 %v9838_v17, %v7745_v18  ;;  %3222 = vmatpush.bf16.msra.mxu1 %v7492_v25  ;;  %v7367_v18 = vld [vmem:[#allocation2 + $0x7d0] sm:$0xf]  ;;  %v7112_v25 = vor.u32 %v9683_v15, %v7111_v14 }
 0x13a   :  { %v8001_v22 = vld [vmem:[#allocation2 + $0xce8] sm:$0xf0]  ;;  %v9587_v14 = vld [vmem:[#allocation2 + $0x2ec] sm:$0xf0] }
 0x13b   :  { %v9702_v27 = vld [vmem:[#allocation2 + $0x68c] sm:$0xf]  ;;  %v8004_v7 = vor.u32 %v9902_v19, %v8001_v22  ;;  %3235 = vmatpush.bf16.msra.mxu2 %v7748_v26  ;;  %v9747_v19 = vld [vmem:[#allocation2 + $0x7ec] sm:$0xf0] }
 0x13c   :  { %v7201_v28 = vld [vmem:[#allocation2 + $0x6a8] sm:$0xf0]  ;;  %v6567_v26 = vld [vmem:[#allocation2 + $0x190] sm:$0xf] }
 0x13d   :  { %v9766_v29 = vld [vmem:[#allocation2 + $0x88c] sm:$0xf]  ;;  %v7204_v39 = vor.u32 %v9702_v27, %v7201_v28  ;;  %3248 = vmatpush.bf16.msra.mxu3 %v8004_v7  ;;  %v9547_v27 = vld [vmem:[#allocation2 + $0x1ac] sm:$0xf0] }
 0x13e   :  { %v7457_v31 = vld [vmem:[#allocation2 + $0x8a8] sm:$0xf0]  ;;  %v6823_v28 = vld [vmem:[#allocation2 + $0x390] sm:$0xf] }
 0x13f   :  { %v9830_v32 = vld [vmem:[#allocation2 + $0xa8c] sm:$0xf]  ;;  %v7460_v44 = vor.u32 %v9766_v29, %v7457_v31  ;;  %3210 = vmatpush.bf16.msra.mxu0 %v7204_v39  ;;  %v7368_v29 = vor.u32 %v9747_v19, %v7367_v18  ;;  %v7079_v7 = vld [vmem:[#allocation2 + $0x590] sm:$0xf]  ;;  %v6824_v39 = vor.u32 %v9611_v30, %v6823_v28  ;;  %v3032_v28 = vpop.f32.mrf.mxu2 }
 0x140   :  { %v7713_v33 = vld [vmem:[#allocation2 + $0xaa8] sm:$0xf0]  ;;  %v9675_v31 = vld [vmem:[#allocation2 + $0x5ac] sm:$0xf0] }
 0x141   :  { %v9894_v35 = vld [vmem:[#allocation2 + $0xc8c] sm:$0xf]  ;;  %v7716_v45 = vor.u32 %v9830_v32, %v7713_v33  ;;  %3223 = vmatpush.bf16.msra.mxu1 %v7460_v44  ;;  %v7335_v32 = vld [vmem:[#allocation2 + $0x790] sm:$0xf]  ;;  %v7080_v42 = vor.u32 %v9675_v31, %v7079_v7 }
 0x142   :  { %v7969_v36 = vld [vmem:[#allocation2 + $0xca8] sm:$0xf0]  ;;  %v9739_v33 = vld [vmem:[#allocation2 + $0x7ac] sm:$0xf0] }
 0x143   :  { %v9694_v46 = vld [vmem:[#allocation2 + $0x64c] sm:$0xf]  ;;  %v7972_v49 = vor.u32 %v9894_v35, %v7969_v36  ;;  %3236 = vmatpush.bf16.msra.mxu2 %v7716_v45  ;;  %v6568_v35 = vor.u32 %v9547_v27, %v6567_v26  ;;  %v6535_v36 = vld [vmem:[#allocation2 + $0x150] sm:$0xf]  ;;  %v613_v45 = vperm.slane %v10650_v13, 1 }
 0x144   :  { %v7169_v47 = vld [vmem:[#allocation2 + $0x668] sm:$0xf0]  ;;  %v6791_v44 = vld [vmem:[#allocation2 + $0x350] sm:$0xf] }
 0x145   :  { %v9758_v48 = vld [vmem:[#allocation2 + $0x84c] sm:$0xf]  ;;  %v7172_v55 = vor.u32 %v9694_v46, %v7169_v47  ;;  %3249 = vmatpush.bf16.msra.mxu3 %v7972_v49  ;;  %v7336_v46 = vor.u32 %v9739_v33, %v7335_v32  ;;  %v9603_v47 = vld [vmem:[#allocation2 + $0x36c] sm:$0xf0]  ;;  %v3045_v33 = vpop.f32.mrf.mxu3 }
 0x146   :  { %v7425_v50 = vld [vmem:[#allocation2 + $0x868] sm:$0xf0]  ;;  %v9667_v49 = vld [vmem:[#allocation2 + $0x56c] sm:$0xf0] }
 0x147   :  { %v9822_v51 = vld [vmem:[#allocation2 + $0xa4c] sm:$0xf]  ;;  %v7428_v58 = vor.u32 %v9758_v48, %v7425_v50  ;;  %3211 = vmatpush.bf16.msra.mxu0 %v7172_v55  ;;  %v7047_v48 = vld [vmem:[#allocation2 + $0x550] sm:$0xf]  ;;  %v2994_v55 = vadd.f32 %v10662_v38, %v613_v45 }
 0x148   :  { %v7681_v52 = vld [vmem:[#allocation2 + $0xa68] sm:$0xf0]  ;;  %v7303_v50 = vld [vmem:[#allocation2 + $0x750] sm:$0xf] }
 0x149   :  { %v9886_v53 = vld [vmem:[#allocation2 + $0xc4c] sm:$0xf]  ;;  %v7684_v59 = vor.u32 %v9822_v51, %v7681_v52  ;;  %3224 = vmatpush.bf16.msra.mxu1 %v7428_v58  ;;  %v9731_v51 = vld [vmem:[#allocation2 + $0x76c] sm:$0xf0]  ;;  %v6536_v52 = vor.u32 %v9539_v43, %v6535_v36 }
 0x14a   :  { %v7937_v54 = vld [vmem:[#allocation2 + $0xc68] sm:$0xf0]  ;;  %v6759_v58 = vld [vmem:[#allocation2 + $0x310] sm:$0xf] }
 0x14b   :  { %v9686_v56 = vld [vmem:[#allocation2 + $0x60c] sm:$0xf]  ;;  %v7940_v0 = vor.u32 %v9886_v53, %v7937_v54  ;;  %3237 = vmatpush.bf16.msra.mxu2 %v7684_v59  ;;  %v6792_v53 = vor.u32 %v9603_v47, %v6791_v44  ;;  %v7048_v54 = vor.u32 %v9667_v49, %v7047_v48  ;;  %v7304_v59 = vor.u32 %v9731_v51, %v7303_v50  ;;  %v6727_v38 = vld [vmem:[#allocation2 + $0x2d0] sm:$0xf] }
 0x14c   :  { %v7137_v57 = vld [vmem:[#allocation2 + $0x628] sm:$0xf0]  ;;  %v6983_v15 = vld [vmem:[#allocation2 + $0x4d0] sm:$0xf] }
 0x14d   :  { %v9750_v60 = vld [vmem:[#allocation2 + $0x80c] sm:$0xf]  ;;  %v7140_v11 = vor.u32 %v9686_v56, %v7137_v57  ;;  %3250 = vmatpush.bf16.msra.mxu3 %v7940_v0  ;;  %v6503_v56 = vld [vmem:[#allocation2 + $0x110] sm:$0xf] }
 0x14e   :  { %v7393_v61 = vld [vmem:[#allocation2 + $0x828] sm:$0xf0]  ;;  %v9531_v57 = vld [vmem:[#allocation2 + $0x12c] sm:$0xf0] }
 0x14f   :  { %v9814_v62 = vld [vmem:[#allocation2 + $0xa0c] sm:$0xf]  ;;  %v7396_v16 = vor.u32 %v9750_v60, %v7393_v61  ;;  %3212 = vmatpush.bf16.msra.mxu0 %v7140_v11  ;;  %v9595_v60 = vld [vmem:[#allocation2 + $0x32c] sm:$0xf0]  ;;  %v3019_v11 = vpop.f32.mrf.mxu1 }
 0x150   :  { %v7649_v1 = vld [vmem:[#allocation2 + $0xa28] sm:$0xf0]  ;;  %v7015_v61 = vld [vmem:[#allocation2 + $0x510] sm:$0xf] }
 0x151   :  { %v9878_v2 = vld [vmem:[#allocation2 + $0xc0c] sm:$0xf]  ;;  %v7652_v17 = vor.u32 %v9814_v62, %v7649_v1  ;;  %3225 = vmatpush.bf16.msra.mxu1 %v7396_v16  ;;  %v9659_v62 = vld [vmem:[#allocation2 + $0x52c] sm:$0xf0]  ;;  %v6504_v1 = vor.u32 %v9531_v57, %v6503_v56 }
 0x152   :  { %v7905_v3 = vld [vmem:[#allocation2 + $0xc28] sm:$0xf0]  ;;  %3213 = vmatmul.bf16.vlgmr.msra.gmra.mxu0 %v10612_v6  ;;  %v9723_v0 = vld [vmem:[#allocation2 + $0x72c] sm:$0xf0]  ;;  %v7016_v5 = vor.u32 %v9659_v62, %v7015_v61 }
 0x153   :  { %v7908_v22 = vor.u32 %v9878_v2, %v7905_v3  ;;  %3238 = vmatpush.bf16.msra.mxu2 %v7652_v17  ;;  %3257 = vmatpush.bf16.msrb.mxu0 %v6600_v23  ;;  %v3006_v2 = vpop.f32.mrf.mxu0  ;;  %v6760_v3 = vor.u32 %v9595_v60, %v6759_v58  ;;  %v7272_v12 = vor.u32 %v9723_v0, %v7271_v63  ;;  %v9651_v16 = vld [vmem:[#allocation2 + $0x4ec] sm:$0xf0]  ;;  %v3034_v0 = vpop.f32.mrf.mxu2 }
 0x154   :  { %3226 = vmatmul.bf16.vlgmr.msra.gmra.mxu1 %v10630_v40  ;;  %v3007_v10 = vadd.f32 %v3006_v2, %v2994_v55  ;;  %v7239_v17 = vld [vmem:[#allocation2 + $0x6d0] sm:$0xf]  ;;  %v6728_v23 = vor.u32 %v9587_v14, %v6727_v38  ;;  %v6505_v0 = vld [vmem:[#allocation2 + $0x130] sm:$0xf0] }
 0x155   :  { %3251 = vmatpush.bf16.msra.mxu3 %v7908_v22  ;;  %3270 = vmatpush.bf16.msrb.mxu1 %v6856_v24  ;;  %v9715_v18 = vld [vmem:[#allocation2 + $0x6ec] sm:$0xf0]  ;;  %v6472_v22 = vor.u32 %v9523_v9, %v6471_v8  ;;  %v6984_v24 = vor.u32 %v9651_v16, %v6983_v15  ;;  %v3047_v8 = vpop.f32.mrf.mxu3 }
 0x156   :  { %3239 = vmatmul.bf16.vlgmr.msra.gmra.mxu2 %v10632_v41  ;;  %v3020_v19 = vadd.f32 %v3019_v11, %v3007_v10  ;;  %v9515_v26 = vld [vmem:[#allocation2 + $0xac] sm:$0xf0] }
 0x157   :  { %3283 = vmatpush.bf16.msrb.mxu2 %v7112_v25  ;;  %3258 = vmatpush.bf16.msrb.mxu0 %v6568_v35  ;;  %v6439_v25 = vld [vmem:[#allocation2 + $0x90] sm:$0xf]  ;;  %v3021_v49 = vpop.f32.mrf.mxu1 }
 0x158   :  { %3252 = vmatmul.bf16.vlgmr.msra.gmra.mxu3 %v10628_v37  ;;  %v6695_v27 = vld [vmem:[#allocation2 + $0x290] sm:$0xf]  ;;  %v3033_v32 = vadd.f32 %v3032_v28, %v3020_v19  ;;  %v6601_v19 = vld [vmem:[#allocation2 + $0x1f0] sm:$0xf0] }
 0x159   :  { %3296 = vmatpush.bf16.msrb.mxu3 %v7368_v29  ;;  %3271 = vmatpush.bf16.msrb.mxu1 %v6824_v39  ;;  %v7240_v29 = vor.u32 %v9715_v18, %v7239_v17  ;;  %v9579_v30 = vld [vmem:[#allocation2 + $0x2ac] sm:$0xf0]  ;;  %v6440_v39 = vor.u32 %v9515_v26, %v6439_v25  ;;  %v9551_v18 = vld [vmem:[#allocation2 + $0x1d4] sm:$0xf] }
 0x15a   :  { %v6951_v7 = vld [vmem:[#allocation2 + $0x490] sm:$0xf]  ;;  %v6696_v44 = vor.u32 %v9579_v30, %v6695_v27 }
 0x15b   :  { %3284 = vmatpush.bf16.msrb.mxu2 %v7080_v42  ;;  %3259 = vmatpush.bf16.msrb.mxu0 %v6536_v52  ;;  %v9643_v31 = vld [vmem:[#allocation2 + $0x4ac] sm:$0xf0]  ;;  %v10670_v42 = vadd.f32 %v3045_v33, %v3033_v32  ;;  %v3008_v43 = vpop.f32.mrf.mxu0  ;;  %v9543_v32 = vld [vmem:[#allocation2 + $0x194] sm:$0xf] }
 0x15c   :  { %v7207_v35 = vld [vmem:[#allocation2 + $0x690] sm:$0xf]  ;;  %v6952_v45 = vor.u32 %v9643_v31, %v6951_v7  ;;  %v6569_v33 = vld [vmem:[#allocation2 + $0x1b0] sm:$0xf0] }
 0x15d   :  { %3297 = vmatpush.bf16.msrb.mxu3 %v7336_v46  ;;  %3272 = vmatpush.bf16.msrb.mxu1 %v6792_v53  ;;  %v9707_v36 = vld [vmem:[#allocation2 + $0x6ac] sm:$0xf0] }
 0x15e   :  { %v6407_v46 = vld [vmem:[#allocation2 + $0x50] sm:$0xf]  ;;  %v7208_v50 = vor.u32 %v9707_v36, %v7207_v35 }
 0x15f   :  { %3285 = vmatpush.bf16.msrb.mxu2 %v7048_v54  ;;  %3260 = vmatpush.bf16.msrb.mxu0 %v6504_v1  ;;  %v9507_v47 = vld [vmem:[#allocation2 + $0x6c] sm:$0xf0] }
 0x160   :  { %v6663_v48 = vld [vmem:[#allocation2 + $0x250] sm:$0xf]  ;;  %v6408_v56 = vor.u32 %v9507_v47, %v6407_v46  ;;  %v6572_v46 = vor.u32 %v9543_v32, %v6569_v33 }
 0x161   :  { %3298 = vmatpush.bf16.msrb.mxu3 %v7304_v59  ;;  %3273 = vmatpush.bf16.msrb.mxu1 %v6760_v3  ;;  %v9571_v51 = vld [vmem:[#allocation2 + $0x26c] sm:$0xf0] }
 0x162   :  { %v6919_v52 = vld [vmem:[#allocation2 + $0x450] sm:$0xf]  ;;  %v6664_v59 = vor.u32 %v9571_v51, %v6663_v48  ;;  %v6537_v51 = vld [vmem:[#allocation2 + $0x170] sm:$0xf0] }
 0x163   :  { %3286 = vmatpush.bf16.msrb.mxu2 %v7016_v5  ;;  %3261 = vmatpush.bf16.msrb.mxu0 %v6472_v22  ;;  %v9635_v53 = vld [vmem:[#allocation2 + $0x46c] sm:$0xf0] }
 0x164   :  { %v7175_v54 = vld [vmem:[#allocation2 + $0x650] sm:$0xf]  ;;  %v6920_v60 = vor.u32 %v9635_v53, %v6919_v52 }
 0x165   :  { %3299 = vmatpush.bf16.msrb.mxu3 %v7272_v12  ;;  %3274 = vmatpush.bf16.msrb.mxu1 %v6728_v23  ;;  %v9699_v55 = vld [vmem:[#allocation2 + $0x66c] sm:$0xf0] }
 0x166   :  { %v6375_v57 = vld [vmem:[#allocation2 + $0x10] sm:$0xf]  ;;  %v7176_v1 = vor.u32 %v9699_v55, %v7175_v54 }
 0x167   :  { %3287 = vmatpush.bf16.msrb.mxu2 %v6984_v24  ;;  %3262 = vmatpush.bf16.msrb.mxu0 %v6440_v39  ;;  %v9499_v58 = vld [vmem:[#allocation2 + $0x2c] sm:$0xf0] }
 0x168   :  { %v6631_v61 = vld [vmem:[#allocation2 + $0x210] sm:$0xf]  ;;  %v6376_v11 = vor.u32 %v9499_v58, %v6375_v57 }
 0x169   :  { %3300 = vmatpush.bf16.msrb.mxu3 %v7240_v29  ;;  %3275 = vmatpush.bf16.msrb.mxu1 %v6696_v44  ;;  %v9563_v62 = vld [vmem:[#allocation2 + $0x22c] sm:$0xf0]  ;;  %v6604_v29 = vor.u32 %v9551_v18, %v6601_v19  ;;  %v9519_v18 = vld [vmem:[#allocation2 + $0xd4] sm:$0xf] }
 0x16a   :  { %v6887_v63 = vld [vmem:[#allocation2 + $0x410] sm:$0xf]  ;;  %v6632_v16 = vor.u32 %v9563_v62, %v6631_v61  ;;  %v3058_v62 = vpop.f32.mrf.mxu0  ;;  %v6473_v19 = vld [vmem:[#allocation2 + $0xf0] sm:$0xf0] }
 0x16b   :  { %3288 = vmatpush.bf16.msrb.mxu2 %v6952_v45  ;;  %v9627_v2 = vld [vmem:[#allocation2 + $0x42c] sm:$0xf0]  ;;  %3263 = vmatpush.bf16.msrb.mxu0 %v6408_v56 }
 0x16c   :  { %v7143_v3 = vld [vmem:[#allocation2 + $0x610] sm:$0xf]  ;;  %v6888_v17 = vor.u32 %v9627_v2, %v6887_v63  ;;  %v9527_v63 = vld [vmem:[#allocation2 + $0x114] sm:$0xf]  ;;  %v3059_v2 = vadd.f32 %v3058_v62, %v10670_v42  ;;  %v614_v42 = vperm.slane %v10650_v13, 2  ;;  %v3084_v13 = vpop.f32.mrf.mxu2 }
 0x16d   :  { %3301 = vmatpush.bf16.msrb.mxu3 %v7208_v50  ;;  %v9691_v5 = vld [vmem:[#allocation2 + $0x62c] sm:$0xf0]  ;;  %3276 = vmatpush.bf16.msrb.mxu1 %v6664_v59  ;;  %v9535_v50 = vld [vmem:[#allocation2 + $0x154] sm:$0xf] }
 0x16e   :  { %v7623_v9 = vld [vmem:[#allocation2 + $0x9d0] sm:$0xf]  ;;  %v7144_v22 = vor.u32 %v9691_v5, %v7143_v3  ;;  %v6540_v58 = vor.u32 %v9535_v50, %v6537_v51  ;;  %v3071_v5 = vpop.f32.mrf.mxu1 }
 0x16f   :  { %v9811_v38 = vld [vmem:[#allocation2 + $0x9ec] sm:$0xf0]  ;;  %3289 = vmatpush.bf16.msrb.mxu2 %v6920_v60  ;;  %3264 = vmatpush.bf16.msrb.mxu0 %v6376_v11 }
 0x170   :  { %v7879_v10 = vld [vmem:[#allocation2 + $0xbd0] sm:$0xf]  ;;  %v7624_v23 = vor.u32 %v9811_v38, %v7623_v9 }
 0x171   :  { %v9875_v12 = vld [vmem:[#allocation2 + $0xbec] sm:$0xf0]  ;;  %3302 = vmatpush.bf16.msrb.mxu3 %v7176_v1  ;;  %3277 = vmatpush.bf16.msrb.mxu1 %v6632_v16  ;;  %v3629_v1 = vmul.f32 0.2, %v10660_v34 }
 0x172   :  { %v8135_v14 = vld [vmem:[#allocation2 + $0xdd0] sm:$0xf]  ;;  %v7880_v24 = vor.u32 %v9875_v12, %v7879_v10  ;;  %3265 = vmatmul.bf16.vlgmr.msrb.gmra.mxu0 %v10615_v20  ;;  %v6508_v12 = vor.u32 %v9527_v63, %v6505_v0 }
 0x173   :  { %v9939_v15 = vld [vmem:[#allocation2 + $0xdec] sm:$0xf0]  ;;  %3290 = vmatpush.bf16.msrb.mxu2 %v6888_v17  ;;  %3309 = vmatpush.bf16.msra.mxu0 %v7624_v23 }
 0x174   :  { %v8136_v25 = vor.u32 %v9939_v15, %v8135_v14  ;;  %v7591_v26 = vld [vmem:[#allocation2 + $0x990] sm:$0xf]  ;;  %3278 = vmatmul.bf16.vlgmr.msrb.gmra.mxu1 %v10617_v21  ;;  %v3072_v14 = vadd.f32 %v3071_v5, %v3059_v2 }
 0x175   :  { %v9803_v27 = vld [vmem:[#allocation2 + $0x9ac] sm:$0xf0]  ;;  %3303 = vmatpush.bf16.msrb.mxu3 %v7144_v22  ;;  %3322 = vmatpush.bf16.msra.mxu1 %v7880_v24 }
 0x176   :  { %v7847_v28 = vld [vmem:[#allocation2 + $0xb90] sm:$0xf]  ;;  %v7592_v35 = vor.u32 %v9803_v27, %v7591_v26  ;;  %3291 = vmatmul.bf16.vlgmr.msrb.gmra.mxu2 %v10607_v4  ;;  %vm3622_vm1 = vcmp.ge.f32.partialorder %v3072_v14, 0.0  ;;  %v3630_v22 = vmul.f32 0.2, %v3072_v14 }
 0x177   :  { %v9867_v30 = vld [vmem:[#allocation2 + $0xbac] sm:$0xf0]  ;;  %3335 = vmatpush.bf16.msra.mxu2 %v8136_v25 }
 0x178   :  { %v8103_v7 = vld [vmem:[#allocation2 + $0xd90] sm:$0xf]  ;;  %v7848_v36 = vor.u32 %v9867_v30, %v7847_v28  ;;  %3310 = vmatpush.bf16.msra.mxu0 %v7592_v35  ;;  %3304 = vmatmul.bf16.vlgmr.msrb.gmra.mxu3 %v10612_v6  ;;  %v3638_v30 = vsel %vm3622_vm1, %v3072_v14, %v3630_v22  ;;  %v9807_v22 = vld [vmem:[#allocation2 + $0x9d4] sm:$0xf] }
 0x179   :  { %v9931_v31 = vld [vmem:[#allocation2 + $0xdac] sm:$0xf0]  ;;  %3348 = vmatpush.bf16.msra.mxu3 %v6604_v29  ;;  %v3637_v29 = vsel %vm3621_vm0, %v10660_v34, %v3629_v1 }
 0x17a   :  { %v8104_v39 = vor.u32 %v9931_v31, %v8103_v7  ;;  %v7559_v43 = vld [vmem:[#allocation2 + $0x950] sm:$0xf]  ;;  %3323 = vmatpush.bf16.msra.mxu1 %v7848_v36  ;;  %v6476_v7 = vor.u32 %v9519_v18, %v6473_v19  ;;  %v10681_v35 = vpack.c.bf16 %v3638_v30, %v3637_v29  ;;  %v9511_v36 = vld [vmem:[#allocation2 + $0x94] sm:$0xf] }
 0x17b   :  { %v9795_v44 = vld [vmem:[#allocation2 + $0x96c] sm:$0xf0]  ;;  %v7369_v18 = vld [vmem:[#allocation2 + $0x7f0] sm:$0xf0] }
 0x17c   :  { %v7815_v45 = vld [vmem:[#allocation2 + $0xb50] sm:$0xf]  ;;  %v7560_v52 = vor.u32 %v9795_v44, %v7559_v43  ;;  %3336 = vmatpush.bf16.msra.mxu2 %v8104_v39  ;;  %v6441_v39 = vld [vmem:[#allocation2 + $0xb0] sm:$0xf0]  ;;  %v3085_v43 = vadd.f32 %v3084_v13, %v614_v42  ;;  %v3097_v44 = vpop.f32.mrf.mxu3 }
 0x17d   :  { %v9859_v47 = vld [vmem:[#allocation2 + $0xb6c] sm:$0xf0]  ;;  %3349 = vmatpush.bf16.msra.mxu3 %v6572_v46  ;;  %v6825_v29 = vld [vmem:[#allocation2 + $0x3b0] sm:$0xf0] }
 0x17e   :  { %v8071_v48 = vld [vmem:[#allocation2 + $0xd50] sm:$0xf]  ;;  %v7816_v53 = vor.u32 %v9859_v47, %v7815_v45  ;;  %3311 = vmatpush.bf16.msra.mxu0 %v7560_v52  ;;  %v3060_v45 = vpop.f32.mrf.mxu0  ;;  %v3073_v47 = vpop.f32.mrf.mxu1  ;;  %v10683_v52 = vadd.f32 %v3097_v44, %v3085_v43  ;;  %v9671_v30 = vld [vmem:[#allocation2 + $0x594] sm:$0xf] }
 0x17f   :  { %v9923_v49 = vld [vmem:[#allocation2 + $0xd6c] sm:$0xf0]  ;;  %v9799_v13 = vld [vmem:[#allocation2 + $0x994] sm:$0xf] }
 0x180   :  { %v8072_v54 = vor.u32 %v9923_v49, %v8071_v48  ;;  %v7527_v55 = vld [vmem:[#allocation2 + $0x910] sm:$0xf]  ;;  %3324 = vmatpush.bf16.msra.mxu1 %v7816_v53  ;;  %v6444_v53 = vor.u32 %v9511_v36, %v6441_v39  ;;  %v7593_v36 = vld [vmem:[#allocation2 + $0x9b0] sm:$0xf0] }
 0x181   :  { %v9787_v56 = vld [vmem:[#allocation2 + $0x92c] sm:$0xf0]  ;;  %3350 = vmatpush.bf16.msra.mxu3 %v6540_v58  ;;  %v6409_v58 = vld [vmem:[#allocation2 + $0x70] sm:$0xf0] }
 0x182   :  { %v7783_v57 = vld [vmem:[#allocation2 + $0xb10] sm:$0xf]  ;;  %v7528_v3 = vor.u32 %v9787_v56, %v7527_v55  ;;  %3337 = vmatpush.bf16.msra.mxu2 %v8072_v54  ;;  %v9599_v45 = vld [vmem:[#allocation2 + $0x354] sm:$0xf] }
 0x183   :  { %v9851_v59 = vld [vmem:[#allocation2 + $0xb2c] sm:$0xf0]  ;;  %v9663_v47 = vld [vmem:[#allocation2 + $0x554] sm:$0xf] }
 0x184   :  { %v8039_v60 = vld [vmem:[#allocation2 + $0xd10] sm:$0xf]  ;;  %v7784_v8 = vor.u32 %v9851_v59, %v7783_v57  ;;  %3312 = vmatpush.bf16.msra.mxu0 %v7528_v3  ;;  %v9503_v57 = vld [vmem:[#allocation2 + $0x54] sm:$0xf]  ;;  %v3099_v14 = vpop.f32.mrf.mxu3 }
 0x185   :  { %v9915_v61 = vld [vmem:[#allocation2 + $0xd2c] sm:$0xf0]  ;;  %3351 = vmatpush.bf16.msra.mxu3 %v6508_v12  ;;  %v6412_v3 = vor.u32 %v9503_v57, %v6409_v58  ;;  %v9679_v12 = vld [vmem:[#allocation2 + $0x5d4] sm:$0xf] }
 0x186   :  { %v8040_v9 = vor.u32 %v9915_v61, %v8039_v60  ;;  %v7495_v38 = vld [vmem:[#allocation2 + $0x8d0] sm:$0xf]  ;;  %3325 = vmatpush.bf16.msra.mxu1 %v7784_v8  ;;  %v9495_v8 = vld [vmem:[#allocation2 + $0x14] sm:$0xf] }
 0x187   :  { %v9779_v10 = vld [vmem:[#allocation2 + $0x8ec] sm:$0xf0]  ;;  %v9591_v57 = vld [vmem:[#allocation2 + $0x314] sm:$0xf] }
 0x188   :  { %v7751_v11 = vld [vmem:[#allocation2 + $0xad0] sm:$0xf]  ;;  %v7496_v23 = vor.u32 %v9779_v10, %v7495_v38  ;;  %3338 = vmatpush.bf16.msra.mxu2 %v8040_v9  ;;  %v6377_v9 = vld [vmem:[#allocation2 + $0x30] sm:$0xf0]  ;;  %v3086_v38 = vpop.f32.mrf.mxu2 }
 0x189   :  { %v9843_v15 = vld [vmem:[#allocation2 + $0xaec] sm:$0xf0]  ;;  %3352 = vmatpush.bf16.msra.mxu3 %v6476_v7  ;;  %v9615_v10 = vld [vmem:[#allocation2 + $0x3d4] sm:$0xf] }
 0x18a   :  { %v8007_v16 = vld [vmem:[#allocation2 + $0xcd0] sm:$0xf]  ;;  %v7752_v24 = vor.u32 %v9843_v15, %v7751_v11  ;;  %3313 = vmatpush.bf16.msra.mxu0 %v7496_v23  ;;  %v6857_v11 = vld [vmem:[#allocation2 + $0x3f0] sm:$0xf0] }
 0x18b   :  { %v9907_v17 = vld [vmem:[#allocation2 + $0xcec] sm:$0xf0]  ;;  %v7625_v23 = vld [vmem:[#allocation2 + $0x9f0] sm:$0xf0] }
 0x18c   :  { %v8008_v25 = vor.u32 %v9907_v17, %v8007_v16  ;;  %v7463_v26 = vld [vmem:[#allocation2 + $0x890] sm:$0xf]  ;;  %3326 = vmatpush.bf16.msra.mxu1 %v7752_v24  ;;  %v7113_v16 = vld [vmem:[#allocation2 + $0x5f0] sm:$0xf0]  ;;  %v6380_v24 = vor.u32 %v9495_v8, %v6377_v9  ;;  %v7628_v7 = vor.u32 %v9807_v22, %v7625_v23 }
 0x18d   :  { %v9771_v27 = vld [vmem:[#allocation2 + $0x8ac] sm:$0xf0]  ;;  %3353 = vmatpush.bf16.msra.mxu3 %v6444_v53  ;;  %v9743_v17 = vld [vmem:[#allocation2 + $0x7d4] sm:$0xf] }
 0x18e   :  { %v7719_v28 = vld [vmem:[#allocation2 + $0xa90] sm:$0xf]  ;;  %v7464_v46 = vor.u32 %v9771_v27, %v7463_v26  ;;  %3339 = vmatpush.bf16.msra.mxu2 %v8008_v25  ;;  %v6860_v25 = vor.u32 %v9615_v10, %v6857_v11  ;;  %v7116_v26 = vor.u32 %v9679_v12, %v7113_v16  ;;  %v7372_v27 = vor.u32 %v9743_v17, %v7369_v18  ;;  %v7561_v53 = vld [vmem:[#allocation2 + $0x970] sm:$0xf0]  ;;  %v3123_v12 = vpop.f32.mrf.mxu1 }
 0x18f   :  { %v9835_v31 = vld [vmem:[#allocation2 + $0xaac] sm:$0xf0]  ;;  %v6761_v58 = vld [vmem:[#allocation2 + $0x330] sm:$0xf0] }
 0x190   :  { %v7975_v32 = vld [vmem:[#allocation2 + $0xc90] sm:$0xf]  ;;  %v7720_v34 = vor.u32 %v9835_v31, %v7719_v28  ;;  %3314 = vmatpush.bf16.msra.mxu0 %v7464_v46  ;;  %v9607_v28 = vld [vmem:[#allocation2 + $0x394] sm:$0xf] }
 0x191   :  { %v9899_v33 = vld [vmem:[#allocation2 + $0xcac] sm:$0xf0]  ;;  %3354 = vmatpush.bf16.msra.mxu3 %v6412_v3  ;;  %v7081_v31 = vld [vmem:[#allocation2 + $0x5b0] sm:$0xf0]  ;;  %v6828_v39 = vor.u32 %v9607_v28, %v6825_v29  ;;  %v3110_v3 = vpop.f32.mrf.mxu0  ;;  %v3136_v28 = vpop.f32.mrf.mxu2 }
 0x192   :  { %v7976_v48 = vor.u32 %v9899_v33, %v7975_v32  ;;  %v7431_v49 = vld [vmem:[#allocation2 + $0x850] sm:$0xf]  ;;  %3327 = vmatpush.bf16.msra.mxu1 %v7720_v34  ;;  %v9735_v32 = vld [vmem:[#allocation2 + $0x794] sm:$0xf]  ;;  %v7084_v43 = vor.u32 %v9671_v30, %v7081_v31  ;;  %v7596_v34 = vor.u32 %v9799_v13, %v7593_v36  ;;  %v3111_v11 = vadd.f32 %v3110_v3, %v10683_v52 }
 0x193   :  { %v9763_v50 = vld [vmem:[#allocation2 + $0x86c] sm:$0xf0]  ;;  %v7337_v33 = vld [vmem:[#allocation2 + $0x7b0] sm:$0xf0] }
 0x194   :  { %v7687_v51 = vld [vmem:[#allocation2 + $0xa50] sm:$0xf]  ;;  %v7432_v59 = vor.u32 %v9763_v50, %v7431_v49  ;;  %3340 = vmatpush.bf16.msra.mxu2 %v7976_v48  ;;  %v7340_v44 = vor.u32 %v9735_v32, %v7337_v33  ;;  %v6793_v46 = vld [vmem:[#allocation2 + $0x370] sm:$0xf0]  ;;  %v3149_v32 = vpop.f32.mrf.mxu3 }
 0x195   :  { %v9827_v54 = vld [vmem:[#allocation2 + $0xa6c] sm:$0xf0]  ;;  %3355 = vmatpush.bf16.msra.mxu3 %v6380_v24  ;;  %v7049_v48 = vld [vmem:[#allocation2 + $0x570] sm:$0xf0] }
 0x196   :  { %v7943_v55 = vld [vmem:[#allocation2 + $0xc50] sm:$0xf]  ;;  %v7688_v62 = vor.u32 %v9827_v54, %v7687_v51  ;;  %3315 = vmatpush.bf16.msra.mxu0 %v7432_v59  ;;  %v9727_v49 = vld [vmem:[#allocation2 + $0x754] sm:$0xf]  ;;  %v6796_v54 = vor.u32 %v9599_v45, %v6793_v46 }
 0x197   :  { %v9891_v56 = vld [vmem:[#allocation2 + $0xc6c] sm:$0xf0]  ;;  %v7305_v50 = vld [vmem:[#allocation2 + $0x770] sm:$0xf0] }
 0x198   :  { %v7399_v60 = vld [vmem:[#allocation2 + $0x810] sm:$0xf]  ;;  %v7944_v63 = vor.u32 %v9891_v56, %v7943_v55  ;;  %3328 = vmatpush.bf16.msra.mxu1 %v7688_v62  ;;  %v9791_v51 = vld [vmem:[#allocation2 + $0x954] sm:$0xf]  ;;  %3356 = vmatmul.bf16.vlgmr.msra.gmra.mxu3 %v10615_v20  ;;  %v7052_v55 = vor.u32 %v9663_v47, %v7049_v48  ;;  %v7308_v56 = vor.u32 %v9727_v49, %v7305_v50  ;;  %v3125_v48 = vpop.f32.mrf.mxu1 }
 0x199   :  { %v9755_v61 = vld [vmem:[#allocation2 + $0x82c] sm:$0xf0]  ;;  %3400 = vmatpush.bf16.msrb.mxu3 %v7628_v7  ;;  %v9655_v59 = vld [vmem:[#allocation2 + $0x514] sm:$0xf]  ;;  %v6799_v48 = vld [vmem:[#allocation2 + $0x358] sm:$0xf] }
 0x19a   :  { %v7655_v0 = vld [vmem:[#allocation2 + $0xa10] sm:$0xf]  ;;  %v7400_v15 = vor.u32 %v9755_v61, %v7399_v60  ;;  %3341 = vmatpush.bf16.msra.mxu2 %v7944_v63  ;;  %v7564_v60 = vor.u32 %v9791_v51, %v7561_v53  ;;  %v7017_v61 = vld [vmem:[#allocation2 + $0x530] sm:$0xf0] }
 0x19b   :  { %v9819_v1 = vld [vmem:[#allocation2 + $0xa2c] sm:$0xf0]  ;;  %v9719_v62 = vld [vmem:[#allocation2 + $0x714] sm:$0xf] }
 0x19c   :  { %v7911_v2 = vld [vmem:[#allocation2 + $0xc10] sm:$0xf]  ;;  %v7656_v19 = vor.u32 %v9819_v1, %v7655_v0  ;;  %3316 = vmatpush.bf16.msra.mxu0 %v7400_v15  ;;  %v7273_v63 = vld [vmem:[#allocation2 + $0x730] sm:$0xf0] }
 0x19d   :  { %v9883_v5 = vld [vmem:[#allocation2 + $0xc2c] sm:$0xf0]  ;;  %3401 = vmatpush.bf16.msrb.mxu3 %v7596_v34  ;;  %v9783_v0 = vld [vmem:[#allocation2 + $0x914] sm:$0xf]  ;;  %v7276_v8 = vor.u32 %v9719_v62, %v7273_v63 }
 0x19e   :  { %v7912_v42 = vor.u32 %v9883_v5, %v7911_v2  ;;  %3329 = vmatpush.bf16.msra.mxu1 %v7656_v19  ;;  %v7529_v1 = vld [vmem:[#allocation2 + $0x930] sm:$0xf0]  ;;  %v6764_v2 = vor.u32 %v9591_v57, %v6761_v58  ;;  %v7020_v5 = vor.u32 %v9655_v59, %v7017_v61 }
 0x19f   :  { %3317 = vmatmul.bf16.vlgmr.msra.gmra.mxu0 %v10630_v40  ;;  %v9583_v9 = vld [vmem:[#allocation2 + $0x2d4] sm:$0xf]  ;;  %v7532_v14 = vor.u32 %v9783_v0, %v7529_v1  ;;  %v3138_v0 = vpop.f32.mrf.mxu2 }
 0x1a0   :  { %3342 = vmatpush.bf16.msra.mxu2 %v7912_v42  ;;  %3361 = vmatpush.bf16.msrb.mxu0 %v6860_v25  ;;  %v6729_v38 = vld [vmem:[#allocation2 + $0x2f0] sm:$0xf0]  ;;  %v3124_v42 = vadd.f32 %v3123_v12, %v3111_v11  ;;  %v10696_v0 = vld [vmem:[#allocation4] sm:$0xff] }
 0x1a1   :  { %3330 = vmatmul.bf16.vlgmr.msra.gmra.mxu1 %v10632_v41  ;;  %v9647_v10 = vld [vmem:[#allocation2 + $0x4d4] sm:$0xf]  ;;  %3402 = vmatpush.bf16.msrb.mxu3 %v7564_v60  ;;  %v6732_v22 = vor.u32 %v9583_v9, %v6729_v38 }
 0x1a2   :  { %3374 = vmatpush.bf16.msrb.mxu1 %v7116_v26  ;;  %v6985_v15 = vld [vmem:[#allocation2 + $0x4f0] sm:$0xf0]  ;;  %v3137_v31 = vadd.f32 %v3136_v28, %v3124_v42 }
 0x1a3   :  { %3343 = vmatmul.bf16.vlgmr.msra.gmra.mxu2 %v10628_v37  ;;  %v9711_v16 = vld [vmem:[#allocation2 + $0x6d4] sm:$0xf]  ;;  %v6988_v23 = vor.u32 %v9647_v10, %v6985_v15  ;;  %v9556_v15 = vld [vmem:[#allocation2 + $0x1f4] sm:$0xf0] }
 0x1a4   :  { %3387 = vmatpush.bf16.msrb.mxu2 %v7372_v27  ;;  %3362 = vmatpush.bf16.msrb.mxu0 %v6828_v39  ;;  %v7241_v17 = vld [vmem:[#allocation2 + $0x6f0] sm:$0xf0]  ;;  %v10690_v39 = vadd.f32 %v3149_v32, %v3137_v31  ;;  %v9612_v31 = vld [vmem:[#allocation2 + $0x3b4] sm:$0xf0] }
 0x1a5   :  { %v9775_v18 = vld [vmem:[#allocation2 + $0x8d4] sm:$0xf]  ;;  %v7244_v24 = vor.u32 %v9711_v16, %v7241_v17  ;;  %3403 = vmatpush.bf16.msrb.mxu3 %v7532_v14  ;;  %v6607_v14 = vld [vmem:[#allocation2 + $0x1d8] sm:$0xf] }
 0x1a6   :  { %3375 = vmatpush.bf16.msrb.mxu1 %v7084_v43  ;;  %v7497_v19 = vld [vmem:[#allocation2 + $0x8f0] sm:$0xf0]  ;;  %v3112_v43 = vpop.f32.mrf.mxu0 }
 0x1a7   :  { %v9575_v25 = vld [vmem:[#allocation2 + $0x294] sm:$0xf]  ;;  %v7500_v52 = vor.u32 %v9775_v18, %v7497_v19  ;;  %v6863_v18 = vld [vmem:[#allocation2 + $0x3d8] sm:$0xf] }
 0x1a8   :  { %3388 = vmatpush.bf16.msrb.mxu2 %v7340_v44  ;;  %3363 = vmatpush.bf16.msrb.mxu0 %v6796_v54  ;;  %v6697_v26 = vld [vmem:[#allocation2 + $0x2b0] sm:$0xf0]  ;;  %v9620_v19 = vld [vmem:[#allocation2 + $0x3f4] sm:$0xf0] }
 0x1a9   :  { %v9639_v27 = vld [vmem:[#allocation2 + $0x494] sm:$0xf]  ;;  %v6700_v36 = vor.u32 %v9575_v25, %v6697_v26  ;;  %3404 = vmatpush.bf16.msrb.mxu3 %v7500_v52  ;;  %v6864_v28 = vor.u32 %v9620_v19, %v6863_v18  ;;  %v9588_v18 = vld [vmem:[#allocation2 + $0x2f4] sm:$0xf0] }
 0x1aa   :  { %3376 = vmatpush.bf16.msrb.mxu1 %v7052_v55  ;;  %v6953_v29 = vld [vmem:[#allocation2 + $0x4b0] sm:$0xf0] }
 0x1ab   :  { %v9703_v30 = vld [vmem:[#allocation2 + $0x694] sm:$0xf]  ;;  %v6956_v44 = vor.u32 %v9639_v27, %v6953_v29  ;;  %v6575_v29 = vld [vmem:[#allocation2 + $0x198] sm:$0xf] }
 0x1ac   :  { %3389 = vmatpush.bf16.msrb.mxu2 %v7308_v56  ;;  %3364 = vmatpush.bf16.msrb.mxu0 %v6764_v2  ;;  %v7209_v7 = vld [vmem:[#allocation2 + $0x6b0] sm:$0xf0] }
 0x1ad   :  { %v9767_v33 = vld [vmem:[#allocation2 + $0x894] sm:$0xf]  ;;  %v7212_v45 = vor.u32 %v9703_v30, %v7209_v7  ;;  %v9548_v30 = vld [vmem:[#allocation2 + $0x1b4] sm:$0xf0] }
 0x1ae   :  { %3377 = vmatpush.bf16.msrb.mxu1 %v7020_v5  ;;  %v7465_v13 = vld [vmem:[#allocation2 + $0x8b0] sm:$0xf0]  ;;  %v6831_v7 = vld [vmem:[#allocation2 + $0x398] sm:$0xf] }
 0x1af   :  { %v9567_v46 = vld [vmem:[#allocation2 + $0x254] sm:$0xf]  ;;  %v7468_v49 = vor.u32 %v9767_v33, %v7465_v13  ;;  %v6576_v13 = vor.u32 %v9548_v30, %v6575_v29  ;;  %v3188_v29 = vpop.f32.mrf.mxu2 }
 0x1b0   :  { %3390 = vmatpush.bf16.msrb.mxu2 %v7276_v8  ;;  %3365 = vmatpush.bf16.msrb.mxu0 %v6732_v22  ;;  %v6665_v47 = vld [vmem:[#allocation2 + $0x270] sm:$0xf0]  ;;  %v3151_v8 = vpop.f32.mrf.mxu3 }
 0x1b1   :  { %v9631_v34 = vld [vmem:[#allocation2 + $0x454] sm:$0xf]  ;;  %v6668_v56 = vor.u32 %v9567_v46, %v6665_v47  ;;  %3405 = vmatpush.bf16.msrb.mxu3 %v7468_v49  ;;  %v6543_v47 = vld [vmem:[#allocation2 + $0x158] sm:$0xf] }
 0x1b2   :  { %3378 = vmatpush.bf16.msrb.mxu1 %v6988_v23  ;;  %v6921_v50 = vld [vmem:[#allocation2 + $0x470] sm:$0xf0]  ;;  %v9604_v49 = vld [vmem:[#allocation2 + $0x374] sm:$0xf0] }
 0x1b3   :  { %v9695_v51 = vld [vmem:[#allocation2 + $0x654] sm:$0xf]  ;;  %v6924_v59 = vor.u32 %v9631_v34, %v6921_v50  ;;  %v9540_v34 = vld [vmem:[#allocation2 + $0x174] sm:$0xf0] }
 0x1b4   :  { %3391 = vmatpush.bf16.msrb.mxu2 %v7244_v24  ;;  %v7177_v53 = vld [vmem:[#allocation2 + $0x670] sm:$0xf0]  ;;  %3366 = vmatpush.bf16.msrb.mxu0 %v6700_v36  ;;  %v6608_v24 = vor.u32 %v9556_v15, %v6607_v14  ;;  %v6479_v15 = vld [vmem:[#allocation2 + $0xd8] sm:$0xf] }
 0x1b5   :  { %v9759_v54 = vld [vmem:[#allocation2 + $0x854] sm:$0xf]  ;;  %v7180_v60 = vor.u32 %v9695_v51, %v7177_v53  ;;  %v6544_v53 = vor.u32 %v9540_v34, %v6543_v47 }
 0x1b6   :  { %v7433_v55 = vld [vmem:[#allocation2 + $0x870] sm:$0xf0]  ;;  %3379 = vmatpush.bf16.msrb.mxu1 %v6956_v44 }
 0x1b7   :  { %v9559_v57 = vld [vmem:[#allocation2 + $0x214] sm:$0xf]  ;;  %v7436_v1 = vor.u32 %v9759_v54, %v7433_v55 }
 0x1b8   :  { %v6633_v58 = vld [vmem:[#allocation2 + $0x230] sm:$0xf0]  ;;  %3392 = vmatpush.bf16.msrb.mxu2 %v7212_v45  ;;  %3367 = vmatpush.bf16.msrb.mxu0 %v6668_v56  ;;  %v6832_v45 = vor.u32 %v9612_v31, %v6831_v7  ;;  %v3201_v30 = vpop.f32.mrf.mxu3  ;;  %v6703_v7 = vld [vmem:[#allocation2 + $0x298] sm:$0xf] }
 0x1b9   :  { %v9623_v61 = vld [vmem:[#allocation2 + $0x414] sm:$0xf]  ;;  %v6636_v11 = vor.u32 %v9559_v57, %v6633_v58  ;;  %3406 = vmatpush.bf16.msrb.mxu3 %v7436_v1  ;;  %v6800_v57 = vor.u32 %v9604_v49, %v6799_v48  ;;  %v615_v1 = vperm.slane %v10696_v0, 3  ;;  %v9580_v31 = vld [vmem:[#allocation2 + $0x2b4] sm:$0xf0] }
 0x1ba   :  { %v6889_v62 = vld [vmem:[#allocation2 + $0x430] sm:$0xf0]  ;;  %3380 = vmatpush.bf16.msrb.mxu1 %v6924_v59  ;;  %v6511_v59 = vld [vmem:[#allocation2 + $0x118] sm:$0xf]  ;;  %v6704_v48 = vor.u32 %v9580_v31, %v6703_v7 }
 0x1bb   :  { %v9687_v63 = vld [vmem:[#allocation2 + $0x614] sm:$0xf]  ;;  %v6892_v16 = vor.u32 %v9623_v61, %v6889_v62  ;;  %v3162_v61 = vpop.f32.mrf.mxu0  ;;  %v6767_v62 = vld [vmem:[#allocation2 + $0x318] sm:$0xf] }
 0x1bc   :  { %v7145_v2 = vld [vmem:[#allocation2 + $0x630] sm:$0xf0]  ;;  %3393 = vmatpush.bf16.msrb.mxu2 %v7180_v60  ;;  %3368 = vmatpush.bf16.msrb.mxu0 %v6636_v11  ;;  %v9532_v60 = vld [vmem:[#allocation2 + $0x134] sm:$0xf0]  ;;  %v3175_v11 = vpop.f32.mrf.mxu1 }
 0x1bd   :  { %v9751_v3 = vld [vmem:[#allocation2 + $0x814] sm:$0xf]  ;;  %v7148_v17 = vor.u32 %v9687_v63, %v7145_v2  ;;  %v9596_v63 = vld [vmem:[#allocation2 + $0x334] sm:$0xf0]  ;;  %v10700_v2 = vadd.f32 %v3162_v61, %v10690_v39  ;;  %v6512_v8 = vor.u32 %v9532_v60, %v6511_v59  ;;  %v3176_v19 = vadd.f32 %v3175_v11, %v615_v1 }
 0x1be   :  { %v7401_v5 = vld [vmem:[#allocation2 + $0x830] sm:$0xf0]  ;;  %3381 = vmatpush.bf16.msrb.mxu1 %v6892_v16  ;;  %v9524_v16 = vld [vmem:[#allocation2 + $0xf4] sm:$0xf0] }
 0x1bf   :  { %v9871_v9 = vld [vmem:[#allocation2 + $0xbd4] sm:$0xf]  ;;  %v7404_v42 = vor.u32 %v9751_v3, %v7401_v5  ;;  %3369 = vmatmul.bf16.vlgmr.msrb.gmra.mxu0 %v10617_v21  ;;  %v9500_v1 = vld [vmem:[#allocation2 + $0x34] sm:$0xf0]  ;;  %vm3623_vm2 = vcmp.ge.f32.partialorder %v10700_v2, 0.0 }
 0x1c0   :  { %v7881_v38 = vld [vmem:[#allocation2 + $0xbf0] sm:$0xf0]  ;;  %3394 = vmatpush.bf16.msrb.mxu2 %v7148_v17  ;;  %v6735_v17 = vld [vmem:[#allocation2 + $0x2d8] sm:$0xf] }
 0x1c1   :  { %v9935_v10 = vld [vmem:[#allocation2 + $0xdd4] sm:$0xf]  ;;  %v7884_v22 = vor.u32 %v9871_v9, %v7881_v38  ;;  %3407 = vmatpush.bf16.msrb.mxu3 %v7404_v42  ;;  %3382 = vmatmul.bf16.vlgmr.msrb.gmra.mxu1 %v10607_v4  ;;  %v7375_v11 = vld [vmem:[#allocation2 + $0x7d8] sm:$0xf] }
 0x1c2   :  { %v8137_v12 = vld [vmem:[#allocation2 + $0xdf0] sm:$0xf0]  ;;  %v7855_v7 = vld [vmem:[#allocation2 + $0xb98] sm:$0xf] }
 0x1c3   :  { %v8140_v23 = vor.u32 %v9935_v10, %v8137_v12  ;;  %v9863_v25 = vld [vmem:[#allocation2 + $0xb94] sm:$0xf]  ;;  %3413 = vmatpush.bf16.msra.mxu0 %v7884_v22  ;;  %3395 = vmatmul.bf16.vlgmr.msrb.gmra.mxu2 %v10612_v6  ;;  %v6768_v12 = vor.u32 %v9596_v63, %v6767_v62  ;;  %v6480_v22 = vor.u32 %v9524_v16, %v6479_v15  ;;  %v6383_v62 = vld [vmem:[#allocation2 + $0x18] sm:$0xf] }
 0x1c4   :  { %v7849_v26 = vld [vmem:[#allocation2 + $0xbb0] sm:$0xf0]  ;;  %3439 = vmatpush.bf16.msra.mxu2 %v6608_v24  ;;  %3408 = vmatmul.bf16.vlgmr.msrb.gmra.mxu3 %v10630_v40  ;;  %v3177_v34 = vpop.f32.mrf.mxu1  ;;  %v7631_v15 = vld [vmem:[#allocation2 + $0x9d8] sm:$0xf] }
 0x1c5   :  { %v9927_v27 = vld [vmem:[#allocation2 + $0xd94] sm:$0xf]  ;;  %v7852_v32 = vor.u32 %v9863_v25, %v7849_v26  ;;  %3426 = vmatpush.bf16.msra.mxu1 %v8140_v23  ;;  %3452 = vmatpush.bf16.msra.mxu3 %v6864_v28  ;;  %v6736_v26 = vor.u32 %v9588_v18, %v6735_v17  ;;  %v6447_v28 = vld [vmem:[#allocation2 + $0x98] sm:$0xf]  ;;  %v6384_v18 = vor.u32 %v9500_v1, %v6383_v62 }
 0x1c6   :  { %v8105_v52 = vld [vmem:[#allocation2 + $0xdb0] sm:$0xf0]  ;;  %v9812_v16 = vld [vmem:[#allocation2 + $0x9f4] sm:$0xf0] }
 0x1c7   :  { %v8108_v33 = vor.u32 %v9927_v27, %v8105_v52  ;;  %v9855_v36 = vld [vmem:[#allocation2 + $0xb54] sm:$0xf]  ;;  %3414 = vmatpush.bf16.msra.mxu0 %v7852_v32  ;;  %v9516_v52 = vld [vmem:[#allocation2 + $0xb4] sm:$0xf0]  ;;  %v3189_v32 = vadd.f32 %v3188_v29, %v3176_v19 }
 0x1c8   :  { %v7817_v43 = vld [vmem:[#allocation2 + $0xb70] sm:$0xf0]  ;;  %3440 = vmatpush.bf16.msra.mxu2 %v6576_v13  ;;  %v7887_v19 = vld [vmem:[#allocation2 + $0xbd8] sm:$0xf] }
 0x1c9   :  { %v9919_v44 = vld [vmem:[#allocation2 + $0xd54] sm:$0xf]  ;;  %v7820_v50 = vor.u32 %v9855_v36, %v7817_v43  ;;  %3427 = vmatpush.bf16.msra.mxu1 %v8108_v33  ;;  %3453 = vmatpush.bf16.msra.mxu3 %v6832_v45  ;;  %v3164_v33 = vpop.f32.mrf.mxu0  ;;  %v6448_v43 = vor.u32 %v9516_v52, %v6447_v28  ;;  %v10702_v47 = vadd.f32 %v3201_v30, %v3189_v32  ;;  %v9740_v52 = vld [vmem:[#allocation2 + $0x7b4] sm:$0xf0] }
 0x1ca   :  { %v8073_v46 = vld [vmem:[#allocation2 + $0xd70] sm:$0xf0]  ;;  %v7599_v29 = vld [vmem:[#allocation2 + $0x998] sm:$0xf] }
 0x1cb   :  { %v8076_v51 = vor.u32 %v9919_v44, %v8073_v46  ;;  %v9847_v54 = vld [vmem:[#allocation2 + $0xb14] sm:$0xf]  ;;  %3415 = vmatpush.bf16.msra.mxu0 %v7820_v50  ;;  %v6415_v50 = vld [vmem:[#allocation2 + $0x58] sm:$0xf] }
 0x1cc   :  { %v7785_v55 = vld [vmem:[#allocation2 + $0xb30] sm:$0xf0]  ;;  %3441 = vmatpush.bf16.msra.mxu2 %v6544_v53  ;;  %v6671_v53 = vld [vmem:[#allocation2 + $0x258] sm:$0xf] }
 0x1cd   :  { %v9911_v56 = vld [vmem:[#allocation2 + $0xd14] sm:$0xf]  ;;  %v7788_v3 = vor.u32 %v9847_v54, %v7785_v55  ;;  %3428 = vmatpush.bf16.msra.mxu1 %v8076_v51  ;;  %3454 = vmatpush.bf16.msra.mxu3 %v6800_v57  ;;  %v9508_v51 = vld [vmem:[#allocation2 + $0x74] sm:$0xf0] }
 0x1ce   :  { %v8041_v58 = vld [vmem:[#allocation2 + $0xd30] sm:$0xf0]  ;;  %v9572_v54 = vld [vmem:[#allocation2 + $0x274] sm:$0xf0]  ;;  %v6416_v59 = vor.u32 %v9508_v51, %v6415_v50 }
 0x1cf   :  { %v8044_v5 = vor.u32 %v9911_v56, %v8041_v58  ;;  %v9839_v9 = vld [vmem:[#allocation2 + $0xad4] sm:$0xf]  ;;  %3416 = vmatpush.bf16.msra.mxu0 %v7788_v3  ;;  %v6672_v63 = vor.u32 %v9572_v54, %v6671_v53  ;;  %v6639_v3 = vld [vmem:[#allocation2 + $0x218] sm:$0xf] }
 0x1d0   :  { %v7753_v38 = vld [vmem:[#allocation2 + $0xaf0] sm:$0xf0]  ;;  %3442 = vmatpush.bf16.msra.mxu2 %v6512_v8  ;;  %v3190_v8 = vpop.f32.mrf.mxu2  ;;  %v9804_v30 = vld [vmem:[#allocation2 + $0x9b4] sm:$0xf0] }
 0x1d1   :  { %v9903_v10 = vld [vmem:[#allocation2 + $0xcd4] sm:$0xf]  ;;  %v7756_v39 = vor.u32 %v9839_v9, %v7753_v38  ;;  %3429 = vmatpush.bf16.msra.mxu1 %v8044_v5  ;;  %3455 = vmatpush.bf16.msra.mxu3 %v6768_v12  ;;  %v9564_v5 = vld [vmem:[#allocation2 + $0x234] sm:$0xf0]  ;;  %v3203_v9 = vpop.f32.mrf.mxu3 }
 0x1d2   :  { %v8009_v14 = vld [vmem:[#allocation2 + $0xcf0] sm:$0xf0]  ;;  %v7119_v38 = vld [vmem:[#allocation2 + $0x5d8] sm:$0xf] }
 0x1d3   :  { %v8012_v42 = vor.u32 %v9903_v10, %v8009_v14  ;;  %v9831_v23 = vld [vmem:[#allocation2 + $0xa94] sm:$0xf]  ;;  %3417 = vmatpush.bf16.msra.mxu0 %v7756_v39  ;;  %v9684_v10 = vld [vmem:[#allocation2 + $0x5f4] sm:$0xf0] }
 0x1d4   :  { %v7721_v24 = vld [vmem:[#allocation2 + $0xab0] sm:$0xf0]  ;;  %3443 = vmatpush.bf16.msra.mxu2 %v6480_v22  ;;  %v9748_v14 = vld [vmem:[#allocation2 + $0x7f4] sm:$0xf0]  ;;  %v7120_v22 = vor.u32 %v9684_v10, %v7119_v38  ;;  %v3227_v38 = vpop.f32.mrf.mxu1 }
 0x1d5   :  { %v9895_v25 = vld [vmem:[#allocation2 + $0xc94] sm:$0xf]  ;;  %v7724_v13 = vor.u32 %v9831_v23, %v7721_v24  ;;  %3430 = vmatpush.bf16.msra.mxu1 %v8012_v42  ;;  %3456 = vmatpush.bf16.msra.mxu3 %v6736_v26  ;;  %v9876_v39 = vld [vmem:[#allocation2 + $0xbf4] sm:$0xf0]  ;;  %v6640_v42 = vor.u32 %v9564_v5, %v6639_v3  ;;  %v7376_v23 = vor.u32 %v9748_v14, %v7375_v11  ;;  %v3214_v3 = vpop.f32.mrf.mxu0 }
 0x1d6   :  { %v7977_v27 = vld [vmem:[#allocation2 + $0xcb0] sm:$0xf0]  ;;  %v7632_v24 = vor.u32 %v9812_v16, %v7631_v15  ;;  %v9676_v26 = vld [vmem:[#allocation2 + $0x5b4] sm:$0xf0]  ;;  %v7888_v28 = vor.u32 %v9876_v39, %v7887_v19  ;;  %v3215_v9 = vadd.f32 %v3214_v3, %v10702_v47 }
 0x1d7   :  { %v7980_v36 = vor.u32 %v9895_v25, %v7977_v27  ;;  %v9823_v44 = vld [vmem:[#allocation2 + $0xa54] sm:$0xf]  ;;  %3418 = vmatpush.bf16.msra.mxu0 %v7724_v13  ;;  %v7087_v25 = vld [vmem:[#allocation2 + $0x598] sm:$0xf]  ;;  %v7600_v13 = vor.u32 %v9804_v30, %v7599_v29 }
 0x1d8   :  { %v7689_v45 = vld [vmem:[#allocation2 + $0xa70] sm:$0xf0]  ;;  %3444 = vmatpush.bf16.msra.mxu2 %v6448_v43  ;;  %v7343_v27 = vld [vmem:[#allocation2 + $0x798] sm:$0xf]  ;;  %v7088_v32 = vor.u32 %v9676_v26, %v7087_v25 }
 0x1d9   :  { %v9887_v46 = vld [vmem:[#allocation2 + $0xc54] sm:$0xf]  ;;  %v7692_v55 = vor.u32 %v9823_v44, %v7689_v45  ;;  %3431 = vmatpush.bf16.msra.mxu1 %v7980_v36  ;;  %3457 = vmatpush.bf16.msra.mxu3 %v6704_v48  ;;  %v9868_v31 = vld [vmem:[#allocation2 + $0xbb4] sm:$0xf0]  ;;  %v7344_v33 = vor.u32 %v9740_v52, %v7343_v27 }
 0x1da   :  { %v7945_v49 = vld [vmem:[#allocation2 + $0xc70] sm:$0xf0]  ;;  %v7055_v36 = vld [vmem:[#allocation2 + $0x558] sm:$0xf]  ;;  %v7856_v45 = vor.u32 %v9868_v31, %v7855_v7 }
 0x1db   :  { %v9815_v56 = vld [vmem:[#allocation2 + $0xa14] sm:$0xf]  ;;  %v7948_v58 = vor.u32 %v9887_v46, %v7945_v49  ;;  %3419 = vmatpush.bf16.msra.mxu0 %v7692_v55  ;;  %v9668_v43 = vld [vmem:[#allocation2 + $0x574] sm:$0xf0]  ;;  %v3253_v52 = vpop.f32.mrf.mxu3 }
 0x1dc   :  { %v7657_v57 = vld [vmem:[#allocation2 + $0xa30] sm:$0xf0]  ;;  %3445 = vmatpush.bf16.msra.mxu2 %v6416_v59  ;;  %v7311_v44 = vld [vmem:[#allocation2 + $0x758] sm:$0xf]  ;;  %v7056_v51 = vor.u32 %v9668_v43, %v7055_v36 }
 0x1dd   :  { %v9879_v60 = vld [vmem:[#allocation2 + $0xc14] sm:$0xf]  ;;  %v7660_v12 = vor.u32 %v9815_v56, %v7657_v57  ;;  %3432 = vmatpush.bf16.msra.mxu1 %v7948_v58  ;;  %3458 = vmatpush.bf16.msra.mxu3 %v6672_v63  ;;  %v9732_v46 = vld [vmem:[#allocation2 + $0x774] sm:$0xf0] }
 0x1de   :  { %v7913_v61 = vld [vmem:[#allocation2 + $0xc30] sm:$0xf0]  ;;  %v7567_v34 = vld [vmem:[#allocation2 + $0x958] sm:$0xf]  ;;  %v7312_v53 = vor.u32 %v9732_v46, %v7311_v44 }
 0x1df   :  { %v7916_v17 = vor.u32 %v9879_v60, %v7913_v61  ;;  %3420 = vmatpush.bf16.msra.mxu0 %v7660_v12  ;;  %v9796_v48 = vld [vmem:[#allocation2 + $0x974] sm:$0xf0] }
 0x1e0   :  { %3446 = vmatpush.bf16.msra.mxu2 %v6384_v18  ;;  %v7823_v49 = vld [vmem:[#allocation2 + $0xb58] sm:$0xf]  ;;  %v7568_v54 = vor.u32 %v9796_v48, %v7567_v34  ;;  %v3228_v18 = vadd.f32 %v3227_v38, %v3215_v9 }
 0x1e1   :  { %3433 = vmatpush.bf16.msra.mxu1 %v7916_v17  ;;  %3459 = vmatpush.bf16.msra.mxu3 %v6640_v42  ;;  %v9860_v50 = vld [vmem:[#allocation2 + $0xb74] sm:$0xf0] }
 0x1e2   :  { %3421 = vmatmul.bf16.vlgmr.msra.gmra.mxu0 %v10632_v41  ;;  %v7023_v55 = vld [vmem:[#allocation2 + $0x518] sm:$0xf]  ;;  %v7824_v58 = vor.u32 %v9860_v50, %v7823_v49 }
 0x1e3   :  { %3465 = vmatpush.bf16.msrb.mxu0 %v7120_v22  ;;  %3447 = vmatmul.bf16.vlgmr.msra.gmra.mxu2 %v10615_v20  ;;  %v9660_v56 = vld [vmem:[#allocation2 + $0x534] sm:$0xf0] }
 0x1e4   :  { %3491 = vmatpush.bf16.msrb.mxu2 %v7632_v24  ;;  %3434 = vmatmul.bf16.vlgmr.msra.gmra.mxu1 %v10628_v37  ;;  %v7279_v57 = vld [vmem:[#allocation2 + $0x718] sm:$0xf]  ;;  %v7024_v1 = vor.u32 %v9660_v56, %v7023_v55  ;;  %v3240_v24 = vpop.f32.mrf.mxu2 }
 0x1e5   :  { %3478 = vmatpush.bf16.msrb.mxu1 %v7376_v23  ;;  %3504 = vmatpush.bf16.msrb.mxu3 %v7888_v28  ;;  %v9724_v59 = vld [vmem:[#allocation2 + $0x734] sm:$0xf0]  ;;  %v3241_v28 = vadd.f32 %v3240_v24, %v3228_v18  ;;  %v9680_v24 = vld [vmem:[#allocation2 + $0x5dc] sm:$0xf] }
 0x1e6   :  { %3460 = vmatmul.bf16.vlgmr.msra.gmra.mxu3 %v10617_v21  ;;  %v7535_v60 = vld [vmem:[#allocation2 + $0x918] sm:$0xf]  ;;  %v7280_v5 = vor.u32 %v9724_v59, %v7279_v57 }
 0x1e7   :  { %3466 = vmatpush.bf16.msrb.mxu0 %v7088_v32  ;;  %v9788_v61 = vld [vmem:[#allocation2 + $0x934] sm:$0xf0] }
 0x1e8   :  { %3492 = vmatpush.bf16.msrb.mxu2 %v7600_v13  ;;  %v7791_v62 = vld [vmem:[#allocation2 + $0xb18] sm:$0xf]  ;;  %v7536_v8 = vor.u32 %v9788_v61, %v7535_v60  ;;  %v3254_v13 = vadd.f32 %v3253_v52, %v3241_v28 }
 0x1e9   :  { %3479 = vmatpush.bf16.msrb.mxu1 %v7344_v33  ;;  %3505 = vmatpush.bf16.msrb.mxu3 %v7856_v45  ;;  %v9852_v63 = vld [vmem:[#allocation2 + $0xb34] sm:$0xf0]  ;;  %v3631_v33 = vmul.f32 0.2, %v10700_v2  ;;  %v3216_v45 = vpop.f32.mrf.mxu0 }
 0x1ea   :  { %v6991_v10 = vld [vmem:[#allocation2 + $0x4d8] sm:$0xf]  ;;  %v7792_v14 = vor.u32 %v9852_v63, %v7791_v62  ;;  %vm3624_vm3 = vcmp.ge.f32.partialorder %v3254_v13, 0.0 }
 0x1eb   :  { %3467 = vmatpush.bf16.msrb.mxu0 %v7056_v51  ;;  %v9652_v11 = vld [vmem:[#allocation2 + $0x4f4] sm:$0xf0]  ;;  %v3229_v51 = vpop.f32.mrf.mxu1 }
 0x1ec   :  { %3493 = vmatpush.bf16.msrb.mxu2 %v7568_v54  ;;  %v7247_v12 = vld [vmem:[#allocation2 + $0x6d8] sm:$0xf]  ;;  %v6992_v42 = vor.u32 %v9652_v11, %v6991_v10  ;;  %v3242_v38 = vpop.f32.mrf.mxu2  ;;  %v9600_v51 = vld [vmem:[#allocation2 + $0x35c] sm:$0xf] }
 0x1ed   :  { %3480 = vmatpush.bf16.msrb.mxu1 %v7312_v53  ;;  %3506 = vmatpush.bf16.msrb.mxu3 %v7824_v58  ;;  %v9716_v15 = vld [vmem:[#allocation2 + $0x6f4] sm:$0xf0]  ;;  %v3632_v53 = vmul.f32 0.2, %v3254_v13  ;;  %v3639_v58 = vsel %vm3623_vm2, %v10700_v2, %v3631_v33  ;;  %v6833_v33 = vld [vmem:[#allocation2 + $0x3b8] sm:$0xf0] }
 0x1ee   :  { %v7503_v16 = vld [vmem:[#allocation2 + $0x8d8] sm:$0xf]  ;;  %v7248_v22 = vor.u32 %v9716_v15, %v7247_v12  ;;  %v7025_v38 = vld [vmem:[#allocation2 + $0x538] sm:$0xf0] }
 0x1ef   :  { %v9780_v17 = vld [vmem:[#allocation2 + $0x8f4] sm:$0xf0]  ;;  %3468 = vmatpush.bf16.msrb.mxu0 %v7024_v1  ;;  %v3640_v59 = vsel %vm3624_vm3, %v3254_v13, %v3632_v53  ;;  %v9672_v13 = vld [vmem:[#allocation2 + $0x59c] sm:$0xf] }
 0x1f0   :  { %v7759_v19 = vld [vmem:[#allocation2 + $0xad8] sm:$0xf]  ;;  %3494 = vmatpush.bf16.msrb.mxu2 %v7536_v8  ;;  %v7504_v23 = vor.u32 %v9780_v17, %v7503_v16  ;;  %v10714_v63 = vpack.c.bf16 %v3640_v59, %v3639_v58  ;;  %v9552_v17 = vld [vmem:[#allocation2 + $0x1dc] sm:$0xf] }
 0x1f1   :  { %v9844_v39 = vld [vmem:[#allocation2 + $0xaf4] sm:$0xf0]  ;;  %3481 = vmatpush.bf16.msrb.mxu1 %v7280_v5  ;;  %3507 = vmatpush.bf16.msrb.mxu3 %v7792_v14  ;;  %v3255_v14 = vpop.f32.mrf.mxu3  ;;  %v6801_v53 = vld [vmem:[#allocation2 + $0x378] sm:$0xf0] }
 0x1f2   :  { %v6959_v47 = vld [vmem:[#allocation2 + $0x498] sm:$0xf]  ;;  %v7760_v27 = vor.u32 %v9844_v39, %v7759_v19  ;;  %v6609_v19 = vld [vmem:[#allocation2 + $0x1f8] sm:$0xf0]  ;;  %v6804_v59 = vor.u32 %v9600_v51, %v6801_v53 }
 0x1f3   :  { %v9644_v25 = vld [vmem:[#allocation2 + $0x4b4] sm:$0xf0]  ;;  %3469 = vmatpush.bf16.msrb.mxu0 %v6992_v42  ;;  %v9616_v39 = vld [vmem:[#allocation2 + $0x3dc] sm:$0xf] }
 0x1f4   :  { %v7215_v26 = vld [vmem:[#allocation2 + $0x698] sm:$0xf]  ;;  %v6960_v36 = vor.u32 %v9644_v25, %v6959_v47  ;;  %3495 = vmatpush.bf16.msrb.mxu2 %v7504_v23  ;;  %v6865_v42 = vld [vmem:[#allocation2 + $0x3f8] sm:$0xf0] }
 0x1f5   :  { %v9708_v29 = vld [vmem:[#allocation2 + $0x6b4] sm:$0xf0]  ;;  %3482 = vmatpush.bf16.msrb.mxu1 %v7248_v22  ;;  %3508 = vmatpush.bf16.msrb.mxu3 %v7760_v27  ;;  %v7121_v47 = vld [vmem:[#allocation2 + $0x5f8] sm:$0xf0]  ;;  %v6612_v27 = vor.u32 %v9552_v17, %v6609_v19  ;;  %v6868_v28 = vor.u32 %v9616_v39, %v6865_v42 }
 0x1f6   :  { %v7471_v30 = vld [vmem:[#allocation2 + $0x898] sm:$0xf]  ;;  %v7216_v46 = vor.u32 %v9708_v29, %v7215_v26  ;;  %v9520_v17 = vld [vmem:[#allocation2 + $0xdc] sm:$0xf] }
 0x1f7   :  { %v9772_v7 = vld [vmem:[#allocation2 + $0x8b4] sm:$0xf0]  ;;  %3470 = vmatpush.bf16.msrb.mxu0 %v6960_v36  ;;  %v7089_v36 = vld [vmem:[#allocation2 + $0x5b8] sm:$0xf0] }
 0x1f8   :  { %v7727_v31 = vld [vmem:[#allocation2 + $0xa98] sm:$0xf]  ;;  %v7472_v34 = vor.u32 %v9772_v7, %v7471_v30  ;;  %v9544_v30 = vld [vmem:[#allocation2 + $0x19c] sm:$0xf]  ;;  %v7124_v7 = vor.u32 %v9680_v24, %v7121_v47 }
 0x1f9   :  { %v9836_v32 = vld [vmem:[#allocation2 + $0xab4] sm:$0xf0]  ;;  %3483 = vmatpush.bf16.msrb.mxu1 %v7216_v46  ;;  %v6481_v19 = vld [vmem:[#allocation2 + $0xf8] sm:$0xf0] }
 0x1fa   :  { %v6927_v43 = vld [vmem:[#allocation2 + $0x458] sm:$0xf]  ;;  %v7728_v54 = vor.u32 %v9836_v32, %v7727_v31  ;;  %3496 = vmatpush.bf16.msrb.mxu2 %v7472_v34  ;;  %v6577_v31 = vld [vmem:[#allocation2 + $0x1b8] sm:$0xf0] }
 0x1fb   :  { %v9636_v44 = vld [vmem:[#allocation2 + $0x474] sm:$0xf0]  ;;  %v9608_v32 = vld [vmem:[#allocation2 + $0x39c] sm:$0xf] }
 0x1fc   :  { %v7183_v48 = vld [vmem:[#allocation2 + $0x658] sm:$0xf]  ;;  %v6928_v60 = vor.u32 %v9636_v44, %v6927_v43  ;;  %3509 = vmatpush.bf16.msrb.mxu3 %v7728_v54  ;;  %v6580_v44 = vor.u32 %v9544_v30, %v6577_v31  ;;  %v6836_v45 = vor.u32 %v9608_v32, %v6833_v33  ;;  %v9664_v54 = vld [vmem:[#allocation2 + $0x55c] sm:$0xf] }
 0x1fd   :  { %v9700_v49 = vld [vmem:[#allocation2 + $0x674] sm:$0xf0]  ;;  %v9584_v39 = vld [vmem:[#allocation2 + $0x2dc] sm:$0xf] }
 0x1fe   :  { %v7439_v50 = vld [vmem:[#allocation2 + $0x858] sm:$0xf]  ;;  %v7184_v1 = vor.u32 %v9700_v49, %v7183_v48  ;;  %3471 = vmatpush.bf16.msrb.mxu0 %v6928_v60  ;;  %v9536_v48 = vld [vmem:[#allocation2 + $0x15c] sm:$0xf]  ;;  %v7092_v49 = vor.u32 %v9672_v13, %v7089_v36 }
 0x1ff   :  { %v9764_v55 = vld [vmem:[#allocation2 + $0x874] sm:$0xf0]  ;;  %v6737_v42 = vld [vmem:[#allocation2 + $0x2f8] sm:$0xf0] }
 0x200   :  { %v7695_v56 = vld [vmem:[#allocation2 + $0xa58] sm:$0xf]  ;;  %v7440_v3 = vor.u32 %v9764_v55, %v7439_v50  ;;  %3484 = vmatpush.bf16.msrb.mxu1 %v7184_v1  ;;  %v6545_v50 = vld [vmem:[#allocation2 + $0x178] sm:$0xf0] }
 0x201   :  { %v9828_v57 = vld [vmem:[#allocation2 + $0xa74] sm:$0xf0]  ;;  %v7057_v55 = vld [vmem:[#allocation2 + $0x578] sm:$0xf0]  ;;  %v6548_v58 = vor.u32 %v9536_v48, %v6545_v50 }
 0x202   :  { %v6895_v61 = vld [vmem:[#allocation2 + $0x418] sm:$0xf]  ;;  %v7696_v10 = vor.u32 %v9828_v57, %v7695_v56  ;;  %3497 = vmatpush.bf16.msrb.mxu2 %v7440_v3  ;;  %v7060_v1 = vor.u32 %v9664_v54, %v7057_v55  ;;  %v6513_v3 = vld [vmem:[#allocation2 + $0x138] sm:$0xf0] }
 0x203   :  { %v9628_v62 = vld [vmem:[#allocation2 + $0x434] sm:$0xf0]  ;;  %v9576_v31 = vld [vmem:[#allocation2 + $0x29c] sm:$0xf] }
 0x204   :  { %v7151_v5 = vld [vmem:[#allocation2 + $0x618] sm:$0xf]  ;;  %v6896_v18 = vor.u32 %v9628_v62, %v6895_v61  ;;  %3510 = vmatpush.bf16.msrb.mxu3 %v7696_v10  ;;  %v9528_v61 = vld [vmem:[#allocation2 + $0x11c] sm:$0xf]  ;;  %v616_v62 = vperm.slane %v10696_v0, 4 }
 0x205   :  { %v9692_v8 = vld [vmem:[#allocation2 + $0x634] sm:$0xf0]  ;;  %v6705_v32 = vld [vmem:[#allocation2 + $0x2b8] sm:$0xf0] }
 0x206   :  { %v7407_v9 = vld [vmem:[#allocation2 + $0x818] sm:$0xf]  ;;  %v7152_v22 = vor.u32 %v9692_v8, %v7151_v5  ;;  %3472 = vmatpush.bf16.msrb.mxu0 %v6896_v18  ;;  %v9592_v5 = vld [vmem:[#allocation2 + $0x31c] sm:$0xf] }
 0x207   :  { %v9756_v11 = vld [vmem:[#allocation2 + $0x834] sm:$0xf0]  ;;  %v6769_v8 = vld [vmem:[#allocation2 + $0x338] sm:$0xf0] }
 0x208   :  { %v7663_v12 = vld [vmem:[#allocation2 + $0xa18] sm:$0xf]  ;;  %v7408_v23 = vor.u32 %v9756_v11, %v7407_v9  ;;  %3485 = vmatpush.bf16.msrb.mxu1 %v7152_v22  ;;  %v9656_v9 = vld [vmem:[#allocation2 + $0x51c] sm:$0xf]  ;;  %v3266_v11 = vpop.f32.mrf.mxu0  ;;  %v6772_v14 = vor.u32 %v9592_v5, %v6769_v8 }
 0x209   :  { %v9820_v2 = vld [vmem:[#allocation2 + $0xa34] sm:$0xf0]  ;;  %3473 = vmatmul.bf16.vlgmr.msrb.gmra.mxu0 %v10607_v4  ;;  %v3267_v18 = vadd.f32 %v3266_v11, %v616_v62  ;;  %v7028_v0 = vor.u32 %v9656_v9, %v7025_v38  ;;  %v9648_v22 = vld [vmem:[#allocation2 + $0x4dc] sm:$0xf] }
 0x20a   :  { %v8143_v15 = vld [vmem:[#allocation2 + $0xdd8] sm:$0xf]  ;;  %v7664_v25 = vor.u32 %v9820_v2, %v7663_v12  ;;  %3498 = vmatpush.bf16.msrb.mxu2 %v7408_v23  ;;  %v3279_v12 = vpop.f32.mrf.mxu1  ;;  %v6516_v2 = vor.u32 %v9528_v61, %v6513_v3  ;;  %v6993_v23 = vld [vmem:[#allocation2 + $0x4f8] sm:$0xf0] }
 0x20b   :  { %v9940_v16 = vld [vmem:[#allocation2 + $0xdf4] sm:$0xf0]  ;;  %3486 = vmatmul.bf16.vlgmr.msrb.gmra.mxu1 %v10612_v6  ;;  %v3280_v24 = vadd.f32 %v3279_v12, %v3267_v18  ;;  %v6996_v30 = vor.u32 %v9648_v22, %v6993_v23  ;;  %v9640_v13 = vld [vmem:[#allocation2 + $0x49c] sm:$0xf] }
 0x20c   :  { %v8144_v26 = vor.u32 %v9940_v16, %v8143_v15  ;;  %v8111_v52 = vld [vmem:[#allocation2 + $0xd98] sm:$0xf]  ;;  %3511 = vmatpush.bf16.msrb.mxu3 %v7664_v25  ;;  %3530 = vmatpush.bf16.msra.mxu1 %v6612_v27  ;;  %v6484_v25 = vor.u32 %v9520_v17, %v6481_v19  ;;  %v6961_v36 = vld [vmem:[#allocation2 + $0x4b8] sm:$0xf0] }
 0x20d   :  { %v9932_v29 = vld [vmem:[#allocation2 + $0xdb4] sm:$0xf0]  ;;  %3499 = vmatmul.bf16.vlgmr.msrb.gmra.mxu2 %v10630_v40  ;;  %v9504_v53 = vld [vmem:[#allocation2 + $0x5c] sm:$0xf]  ;;  %v6964_v54 = vor.u32 %v9640_v13, %v6961_v36 }
 0x20e   :  { %3517 = vmatpush.bf16.msra.mxu0 %v8144_v26  ;;  %v8112_v43 = vor.u32 %v9932_v29, %v8111_v52  ;;  %3543 = vmatpush.bf16.msra.mxu2 %v6868_v28  ;;  %v8079_v46 = vld [vmem:[#allocation2 + $0xd58] sm:$0xf]  ;;  %v6740_v26 = vor.u32 %v9584_v39, %v6737_v42  ;;  %v9512_v52 = vld [vmem:[#allocation2 + $0x9c] sm:$0xf]  ;;  %v3292_v29 = vpop.f32.mrf.mxu2 }
 0x20f   :  { %v9924_v34 = vld [vmem:[#allocation2 + $0xd74] sm:$0xf0]  ;;  %3512 = vmatmul.bf16.vlgmr.msrb.gmra.mxu3 %v10632_v41  ;;  %v3293_v33 = vadd.f32 %v3292_v29, %v3280_v24  ;;  %v6417_v55 = vld [vmem:[#allocation2 + $0x78] sm:$0xf0] }
 0x210   :  { %3556 = vmatpush.bf16.msra.mxu3 %v7124_v7  ;;  %v8080_v56 = vor.u32 %v9924_v34, %v8079_v46  ;;  %v8047_v57 = vld [vmem:[#allocation2 + $0xd18] sm:$0xf]  ;;  %3531 = vmatpush.bf16.msra.mxu1 %v6580_v44  ;;  %v6449_v7 = vld [vmem:[#allocation2 + $0xb8] sm:$0xf0] }
 0x211   :  { %v9916_v60 = vld [vmem:[#allocation2 + $0xd34] sm:$0xf0]  ;;  %v6452_v48 = vor.u32 %v9512_v52, %v6449_v7  ;;  %v9496_v5 = vld [vmem:[#allocation2 + $0x1c] sm:$0xf] }
 0x212   :  { %3518 = vmatpush.bf16.msra.mxu0 %v8112_v43  ;;  %3544 = vmatpush.bf16.msra.mxu2 %v6836_v45  ;;  %v8048_v10 = vor.u32 %v9916_v60, %v8047_v57  ;;  %v8015_v15 = vld [vmem:[#allocation2 + $0xcd8] sm:$0xf]  ;;  %v3305_v43 = vpop.f32.mrf.mxu3  ;;  %v3268_v45 = vpop.f32.mrf.mxu0  ;;  %v6673_v57 = vld [vmem:[#allocation2 + $0x278] sm:$0xf0] }
 0x213   :  { %v9908_v16 = vld [vmem:[#allocation2 + $0xcf4] sm:$0xf0]  ;;  %v10721_v46 = vadd.f32 %v3305_v43, %v3293_v33  ;;  %v3281_v34 = vpop.f32.mrf.mxu1  ;;  %v6385_v8 = vld [vmem:[#allocation2 + $0x38] sm:$0xf0] }
 0x214   :  { %3557 = vmatpush.bf16.msra.mxu3 %v7092_v49  ;;  %3532 = vmatpush.bf16.msra.mxu1 %v6548_v58  ;;  %v8016_v47 = vor.u32 %v9908_v16, %v8015_v15  ;;  %v7983_v27 = vld [vmem:[#allocation2 + $0xc98] sm:$0xf]  ;;  %v6708_v49 = vor.u32 %v9576_v31, %v6705_v32  ;;  %v9632_v58 = vld [vmem:[#allocation2 + $0x45c] sm:$0xf]  ;;  %v6388_v42 = vor.u32 %v9496_v5, %v6385_v8 }
 0x215   :  { %v9900_v28 = vld [vmem:[#allocation2 + $0xcb4] sm:$0xf0]  ;;  %v9560_v9 = vld [vmem:[#allocation2 + $0x21c] sm:$0xf] }
 0x216   :  { %3519 = vmatpush.bf16.msra.mxu0 %v8080_v56  ;;  %3545 = vmatpush.bf16.msra.mxu2 %v6804_v59  ;;  %v7984_v44 = vor.u32 %v9900_v28, %v7983_v27  ;;  %v7951_v50 = vld [vmem:[#allocation2 + $0xc58] sm:$0xf]  ;;  %v9568_v56 = vld [vmem:[#allocation2 + $0x25c] sm:$0xf]  ;;  %v3294_v38 = vpop.f32.mrf.mxu2 }
 0x217   :  { %v9892_v51 = vld [vmem:[#allocation2 + $0xc74] sm:$0xf0]  ;;  %v6929_v59 = vld [vmem:[#allocation2 + $0x478] sm:$0xf0]  ;;  %v6676_v3 = vor.u32 %v9568_v56, %v6673_v57 }
 0x218   :  { %3558 = vmatpush.bf16.msra.mxu3 %v7060_v1  ;;  %3533 = vmatpush.bf16.msra.mxu1 %v6516_v2  ;;  %v7952_v60 = vor.u32 %v9892_v51, %v7951_v50  ;;  %v7919_v61 = vld [vmem:[#allocation2 + $0xc18] sm:$0xf]  ;;  %v6420_v1 = vor.u32 %v9504_v53, %v6417_v55  ;;  %v6641_v11 = vld [vmem:[#allocation2 + $0x238] sm:$0xf0] }
 0x219   :  { %v9884_v62 = vld [vmem:[#allocation2 + $0xc34] sm:$0xf0]  ;;  %v9624_v12 = vld [vmem:[#allocation2 + $0x41c] sm:$0xf]  ;;  %v6644_v22 = vor.u32 %v9560_v9, %v6641_v11 }
 0x21a   :  { %3520 = vmatpush.bf16.msra.mxu0 %v8048_v10  ;;  %3546 = vmatpush.bf16.msra.mxu2 %v6772_v14  ;;  %v6932_v10 = vor.u32 %v9632_v58, %v6929_v59  ;;  %v6897_v2 = vld [vmem:[#allocation2 + $0x438] sm:$0xf0]  ;;  %v3307_v17 = vpop.f32.mrf.mxu3  ;;  %v7920_v18 = vor.u32 %v9884_v62, %v7919_v61 }
 0x21b   :  { %v9744_v14 = vld [vmem:[#allocation2 + $0x7dc] sm:$0xf] }
 0x21c   :  { %3559 = vmatpush.bf16.msra.mxu3 %v7028_v0  ;;  %3534 = vmatpush.bf16.msra.mxu1 %v6484_v25  ;;  %v7377_v15 = vld [vmem:[#allocation2 + $0x7f8] sm:$0xf0]  ;;  %v3318_v9 = vpop.f32.mrf.mxu0 }
 0x21d   :  { %v9808_v16 = vld [vmem:[#allocation2 + $0x9dc] sm:$0xf]  ;;  %v7380_v25 = vor.u32 %v9744_v14, %v7377_v15  ;;  %v3319_v14 = vadd.f32 %v3318_v9, %v10721_v46  ;;  %v9971_v9 = vld [vmem:[#allocation6 + $0xec] sm:$0xf0] }
 0x21e   :  { %3521 = vmatpush.bf16.msra.mxu0 %v8016_v47  ;;  %3547 = vmatpush.bf16.msra.mxu2 %v6740_v26  ;;  %v7633_v0 = vld [vmem:[#allocation2 + $0x9f8] sm:$0xf0]  ;;  %v6900_v47 = vor.u32 %v9624_v12, %v6897_v2  ;;  %v3331_v38 = vpop.f32.mrf.mxu1 }
 0x21f   :  { %v9872_v19 = vld [vmem:[#allocation2 + $0xbdc] sm:$0xf]  ;;  %v7636_v26 = vor.u32 %v9808_v16, %v7633_v0 }
 0x220   :  { %3560 = vmatpush.bf16.msra.mxu3 %v6996_v30  ;;  %3535 = vmatpush.bf16.msra.mxu1 %v6452_v48  ;;  %v7889_v39 = vld [vmem:[#allocation2 + $0xbf8] sm:$0xf0] }
 0x221   :  { %v9936_v23 = vld [vmem:[#allocation2 + $0xddc] sm:$0xf]  ;;  %v7892_v27 = vor.u32 %v9872_v19, %v7889_v39  ;;  %v3332_v39 = vadd.f32 %v3331_v38, %v3319_v14  ;;  %v8391_v38 = vld [vmem:[#allocation6 + $0x1e0] sm:$0xf] }
 0x222   :  { %3522 = vmatpush.bf16.msra.mxu0 %v7984_v44  ;;  %3548 = vmatpush.bf16.msra.mxu2 %v6708_v49  ;;  %v8145_v24 = vld [vmem:[#allocation2 + $0xdf8] sm:$0xf0] }
 0x223   :  { %v9736_v28 = vld [vmem:[#allocation2 + $0x79c] sm:$0xf]  ;;  %v8148_v30 = vor.u32 %v9936_v23, %v8145_v24 }
 0x224   :  { %3561 = vmatpush.bf16.msra.mxu3 %v6964_v54  ;;  %3536 = vmatpush.bf16.msra.mxu1 %v6420_v1  ;;  %v7345_v52 = vld [vmem:[#allocation2 + $0x7b8] sm:$0xf0] }
 0x225   :  { %v9800_v29 = vld [vmem:[#allocation2 + $0x99c] sm:$0xf]  ;;  %v7348_v36 = vor.u32 %v9736_v28, %v7345_v52 }
 0x226   :  { %3523 = vmatpush.bf16.msra.mxu0 %v7952_v60  ;;  %3549 = vmatpush.bf16.msra.mxu2 %v6676_v3  ;;  %v7601_v7 = vld [vmem:[#allocation2 + $0x9b8] sm:$0xf0] }
 0x227   :  { %v9864_v31 = vld [vmem:[#allocation2 + $0xb9c] sm:$0xf]  ;;  %v7604_v43 = vor.u32 %v9800_v29, %v7601_v7 }
 0x228   :  { %3562 = vmatpush.bf16.msra.mxu3 %v6932_v10  ;;  %v7857_v32 = vld [vmem:[#allocation2 + $0xbb8] sm:$0xf0]  ;;  %3537 = vmatpush.bf16.msra.mxu1 %v6388_v42 }
 0x229   :  { %v9928_v33 = vld [vmem:[#allocation2 + $0xd9c] sm:$0xf]  ;;  %v7860_v44 = vor.u32 %v9864_v31, %v7857_v32  ;;  %v10730_v31 = vpop.f32.mrf.mxu3 }
 0x22a   :  { %3524 = vmatpush.bf16.msra.mxu0 %v7920_v18  ;;  %3550 = vmatpush.bf16.msra.mxu2 %v6644_v22  ;;  %v8113_v13 = vld [vmem:[#allocation2 + $0xdb8] sm:$0xf0] }
 0x22b   :  { %v9728_v45 = vld [vmem:[#allocation2 + $0x75c] sm:$0xf]  ;;  %v8116_v49 = vor.u32 %v9928_v33, %v8113_v13  ;;  %3538 = vmatmul.bf16.vlgmr.msra.gmra.mxu1 %v10615_v20  ;;  %v3320_v33 = vpop.f32.mrf.mxu0  ;;  %v3333_v13 = vpop.f32.mrf.mxu1 }
 0x22c   :  { %3563 = vmatpush.bf16.msra.mxu3 %v6900_v47  ;;  %3582 = vmatpush.bf16.msrb.mxu1 %v7636_v26  ;;  %v7313_v34 = vld [vmem:[#allocation2 + $0x778] sm:$0xf0]  ;;  %v3344_v26 = vpop.f32.mrf.mxu2  ;;  %v8359_v33 = vld [vmem:[#allocation6 + $0x1a0] sm:$0xf] }
 0x22d   :  { %v9792_v48 = vld [vmem:[#allocation2 + $0x95c] sm:$0xf]  ;;  %3525 = vmatmul.bf16.vlgmr.msra.gmra.mxu0 %v10628_v37  ;;  %3551 = vmatmul.bf16.vlgmr.msra.gmra.mxu2 %v10617_v21  ;;  %v7316_v56 = vor.u32 %v9728_v45, %v7313_v34  ;;  %v10728_v29 = vadd.f32 %v3344_v26, %v3332_v39  ;;  %v10031_v26 = vld [vmem:[#allocation6 + $0x2cc] sm:$0xf0] }
 0x22e   :  { %3569 = vmatpush.bf16.msrb.mxu0 %v7380_v25  ;;  %3595 = vmatpush.bf16.msrb.mxu2 %v7892_v27  ;;  %v7569_v50 = vld [vmem:[#allocation2 + $0x978] sm:$0xf0] }
 0x22f   :  { %v9856_v51 = vld [vmem:[#allocation2 + $0xb5c] sm:$0xf]  ;;  %3564 = vmatmul.bf16.vlgmr.msra.gmra.mxu3 %v10607_v4  ;;  %v7572_v57 = vor.u32 %v9792_v48, %v7569_v50  ;;  %vm3625_vm5 = vcmp.ge.f32.partialorder %v10728_v29, 0.0 }
 0x230   :  { %3608 = vmatpush.bf16.msrb.mxu3 %v8148_v30  ;;  %v7825_v53 = vld [vmem:[#allocation2 + $0xb78] sm:$0xf0]  ;;  %3583 = vmatpush.bf16.msrb.mxu1 %v7604_v43 }
 0x231   :  { %v9920_v54 = vld [vmem:[#allocation2 + $0xd5c] sm:$0xf]  ;;  %v7828_v58 = vor.u32 %v9856_v51, %v7825_v53 }
 0x232   :  { %v8081_v55 = vld [vmem:[#allocation2 + $0xd78] sm:$0xf0]  ;;  %3570 = vmatpush.bf16.msrb.mxu0 %v7348_v36  ;;  %3596 = vmatpush.bf16.msrb.mxu2 %v7860_v44 }
 0x233   :  { %v9720_v59 = vld [vmem:[#allocation2 + $0x71c] sm:$0xf]  ;;  %v8084_v62 = vor.u32 %v9920_v54, %v8081_v55 }
 0x234   :  { %v7281_v60 = vld [vmem:[#allocation2 + $0x738] sm:$0xf0]  ;;  %3609 = vmatpush.bf16.msrb.mxu3 %v8116_v49  ;;  %3584 = vmatpush.bf16.msrb.mxu1 %v7572_v57 }
 0x235   :  { %v9784_v61 = vld [vmem:[#allocation2 + $0x91c] sm:$0xf]  ;;  %v7284_v4 = vor.u32 %v9720_v59, %v7281_v60 }
 0x236   :  { %v7537_v1 = vld [vmem:[#allocation2 + $0x938] sm:$0xf0]  ;;  %3571 = vmatpush.bf16.msrb.mxu0 %v7316_v56  ;;  %3597 = vmatpush.bf16.msrb.mxu2 %v7828_v58 }
 0x237   :  { %v9848_v3 = vld [vmem:[#allocation2 + $0xb1c] sm:$0xf]  ;;  %v7540_v20 = vor.u32 %v9784_v61, %v7537_v1  ;;  %v3346_v1 = vpop.f32.mrf.mxu2 }
 0x238   :  { %v7793_v21 = vld [vmem:[#allocation2 + $0xb38] sm:$0xf0]  ;;  %3610 = vmatpush.bf16.msrb.mxu3 %v8084_v62  ;;  %v8327_v1 = vld [vmem:[#allocation6 + $0x160] sm:$0xf] }
 0x239   :  { %v9912_v5 = vld [vmem:[#allocation2 + $0xd1c] sm:$0xf]  ;;  %v7796_v10 = vor.u32 %v9848_v3, %v7793_v21  ;;  %3585 = vmatpush.bf16.msrb.mxu1 %v7540_v20  ;;  %v3359_v20 = vpop.f32.mrf.mxu3 }
 0x23a   :  { %v8049_v8 = vld [vmem:[#allocation2 + $0xd38] sm:$0xf0]  ;;  %3572 = vmatpush.bf16.msrb.mxu0 %v7284_v4  ;;  %v8263_v4 = vld [vmem:[#allocation6 + $0xe0] sm:$0xf] }
 0x23b   :  { %v9712_v11 = vld [vmem:[#allocation2 + $0x6dc] sm:$0xf]  ;;  %v8052_v15 = vor.u32 %v9912_v5, %v8049_v8  ;;  %3598 = vmatpush.bf16.msrb.mxu2 %v7796_v10 }
 0x23c   :  { %v7249_v12 = vld [vmem:[#allocation2 + $0x6f8] sm:$0xf0] }
 0x23d   :  { %v9776_v2 = vld [vmem:[#allocation2 + $0x8dc] sm:$0xf]  ;;  %v7252_v42 = vor.u32 %v9712_v11, %v7249_v12  ;;  %3611 = vmatpush.bf16.msrb.mxu3 %v8052_v15  ;;  %v10003_v11 = vld [vmem:[#allocation6 + $0x1ec] sm:$0xf0]  ;;  %v8519_v12 = vld [vmem:[#allocation6 + $0x2e0] sm:$0xf] }
 0x23e   :  { %v7505_v16 = vld [vmem:[#allocation2 + $0x8f8] sm:$0xf0] }
 0x23f   :  { %v9840_v17 = vld [vmem:[#allocation2 + $0xadc] sm:$0xf]  ;;  %v7508_v22 = vor.u32 %v9776_v2, %v7505_v16  ;;  %3573 = vmatpush.bf16.msrb.mxu0 %v7252_v42  ;;  %v10035_v2 = vld [vmem:[#allocation6 + $0x2ec] sm:$0xf0]  ;;  %v8647_v16 = vld [vmem:[#allocation6 + $0x3e0] sm:$0xf] }
 0x240   :  { %v7761_v18 = vld [vmem:[#allocation2 + $0xaf8] sm:$0xf0]  ;;  %v8520_v39 = vor.u32 %v10035_v2, %v8519_v12  ;;  %v8247_v42 = vld [vmem:[#allocation6 + $0xc0] sm:$0xf]  ;;  %v9951_v2 = vld [vmem:[#allocation6 + $0x4c] sm:$0xf0] }
 0x241   :  { %v9904_v0 = vld [vmem:[#allocation2 + $0xcdc] sm:$0xf]  ;;  %v7764_v23 = vor.u32 %v9840_v17, %v7761_v18  ;;  %3586 = vmatpush.bf16.msrb.mxu1 %v7508_v22  ;;  %v10067_v17 = vld [vmem:[#allocation6 + $0x3ec] sm:$0xf0]  ;;  %v8183_v12 = vld [vmem:[#allocation6 + $0x40] sm:$0xf] }
 0x242   :  { %v8017_v19 = vld [vmem:[#allocation2 + $0xcf8] sm:$0xf0]  ;;  %v9967_v22 = vld [vmem:[#allocation6 + $0xcc] sm:$0xf0] }
 0x243   :  { %v9704_v24 = vld [vmem:[#allocation2 + $0x69c] sm:$0xf]  ;;  %v8020_v46 = vor.u32 %v9904_v0, %v8017_v19  ;;  %3599 = vmatpush.bf16.msrb.mxu2 %v7764_v23  ;;  %v8264_v0 = vor.u32 %v9971_v9, %v8263_v4  ;;  %v8392_v19 = vor.u32 %v10003_v11, %v8391_v38  ;;  %v8375_v23 = vld [vmem:[#allocation6 + $0x1c0] sm:$0xf]  ;;  %v10019_v4 = vld [vmem:[#allocation6 + $0x26c] sm:$0xf0] }
 0x244   :  { %v7217_v47 = vld [vmem:[#allocation2 + $0x6b8] sm:$0xf0]  ;;  %v8583_v9 = vld [vmem:[#allocation6 + $0x360] sm:$0xf]  ;;  %v10051_v38 = vld [vmem:[#allocation6 + $0x36c] sm:$0xf0] }
 0x245   :  { %v9768_v25 = vld [vmem:[#allocation2 + $0x89c] sm:$0xf]  ;;  %v7220_v32 = vor.u32 %v9704_v24, %v7217_v47  ;;  %3612 = vmatpush.bf16.msrb.mxu3 %v8020_v46  ;;  %v8648_v24 = vor.u32 %v10067_v17, %v8647_v16  ;;  %v9999_v47 = vld [vmem:[#allocation6 + $0x1cc] sm:$0xf0]  ;;  %v8631_v46 = vld [vmem:[#allocation6 + $0x3c0] sm:$0xf]  ;;  %v8584_v16 = vor.u32 %v10051_v38, %v8583_v9 }
 0x246   :  { %v7473_v27 = vld [vmem:[#allocation2 + $0x8b8] sm:$0xf0]  ;;  %v9983_v17 = vld [vmem:[#allocation6 + $0x14c] sm:$0xf0] }
 0x247   :  { %v9832_v28 = vld [vmem:[#allocation2 + $0xa9c] sm:$0xf]  ;;  %v7476_v36 = vor.u32 %v9768_v25, %v7473_v27  ;;  %3574 = vmatpush.bf16.msrb.mxu0 %v7220_v32  ;;  %v8503_v25 = vld [vmem:[#allocation6 + $0x2c0] sm:$0xf]  ;;  %v10063_v27 = vld [vmem:[#allocation6 + $0x3cc] sm:$0xf0] }
 0x248   :  { %v7729_v52 = vld [vmem:[#allocation2 + $0xab8] sm:$0xf0]  ;;  %v9963_v32 = vld [vmem:[#allocation6 + $0xac] sm:$0xf0]  ;;  %v8632_v13 = vor.u32 %v10063_v27, %v8631_v46  ;;  %v8167_v27 = vld [vmem:[#allocation6 + $0x20] sm:$0xf] }
 0x249   :  { %v9896_v30 = vld [vmem:[#allocation2 + $0xc9c] sm:$0xf]  ;;  %v7732_v43 = vor.u32 %v9832_v28, %v7729_v52  ;;  %3587 = vmatpush.bf16.msrb.mxu1 %v7476_v36  ;;  %v8248_v28 = vor.u32 %v9967_v22, %v8247_v42  ;;  %v8376_v52 = vor.u32 %v9999_v47, %v8375_v23  ;;  %v9995_v36 = vld [vmem:[#allocation6 + $0x1ac] sm:$0xf0]  ;;  %v3649_v22 = vld [vmem:[%s10915_s1] sm:$0xff]  ;;  %v8184_v47 = vor.u32 %v9951_v2, %v8183_v12 }
 0x24a   :  { %v7985_v7 = vld [vmem:[#allocation2 + $0xcb8] sm:$0xf0]  ;;  %v10047_v42 = vld [vmem:[#allocation6 + $0x34c] sm:$0xf0]  ;;  %v10747_v23 = vld [vmem:[#allocation4] sm:$0xff] }
 0x24b   :  { %v9696_v44 = vld [vmem:[#allocation2 + $0x65c] sm:$0xf]  ;;  %v7988_v48 = vor.u32 %v9896_v30, %v7985_v7  ;;  %3600 = vmatpush.bf16.msrb.mxu2 %v7732_v43  ;;  %v8504_v30 = vor.u32 %v10031_v26, %v8503_v25  ;;  %v8231_v7 = vld [vmem:[#allocation6 + $0xa0] sm:$0xf] }
 0x24c   :  { %v7185_v45 = vld [vmem:[#allocation2 + $0x678] sm:$0xf0]  ;;  %v8487_v43 = vld [vmem:[#allocation6 + $0x2a0] sm:$0xf] }
 0x24d   :  { %v9760_v34 = vld [vmem:[#allocation2 + $0x85c] sm:$0xf]  ;;  %v7188_v55 = vor.u32 %v9696_v44, %v7185_v45  ;;  %3613 = vmatpush.bf16.msrb.mxu3 %v7988_v48  ;;  %v10027_v44 = vld [vmem:[#allocation6 + $0x2ac] sm:$0xf0]  ;;  %v8615_v45 = vld [vmem:[#allocation6 + $0x3a0] sm:$0xf]  ;;  %v8232_v48 = vor.u32 %v9963_v32, %v8231_v7 }
 0x24e   :  { %v7441_v49 = vld [vmem:[#allocation2 + $0x878] sm:$0xf0]  ;;  %v9979_v32 = vld [vmem:[#allocation6 + $0x12c] sm:$0xf0] }
 0x24f   :  { %v9824_v50 = vld [vmem:[#allocation2 + $0xa5c] sm:$0xf]  ;;  %v7444_v58 = vor.u32 %v9760_v34, %v7441_v49  ;;  %3575 = vmatpush.bf16.msrb.mxu0 %v7188_v55  ;;  %v10059_v34 = vld [vmem:[#allocation6 + $0x3ac] sm:$0xf0]  ;;  %v8360_v49 = vor.u32 %v9995_v36, %v8359_v33  ;;  %v8423_v33 = vld [vmem:[#allocation6 + $0x220] sm:$0xf] }
 0x250   :  { %v7697_v51 = vld [vmem:[#allocation2 + $0xa78] sm:$0xf0]  ;;  %v9991_v55 = vld [vmem:[#allocation6 + $0x18c] sm:$0xf0]  ;;  %v3650_v36 = vld [vmem:[%s10915_s1 + $0x8] sm:$0xff] }
 0x251   :  { %v9888_v53 = vld [vmem:[#allocation2 + $0xc5c] sm:$0xf]  ;;  %v7700_v59 = vor.u32 %v9824_v50, %v7697_v51  ;;  %3588 = vmatpush.bf16.msrb.mxu1 %v7444_v58  ;;  %v8488_v50 = vor.u32 %v10027_v44, %v8487_v43  ;;  %v8215_v51 = vld [vmem:[#allocation6 + $0x80] sm:$0xf]  ;;  %v10043_v44 = vld [vmem:[#allocation6 + $0x32c] sm:$0xf0] }
 0x252   :  { %v7953_v54 = vld [vmem:[#allocation2 + $0xc78] sm:$0xf0]  ;;  %v8551_v43 = vld [vmem:[#allocation6 + $0x320] sm:$0xf] }
 0x253   :  { %v9688_v56 = vld [vmem:[#allocation2 + $0x61c] sm:$0xf]  ;;  %v7956_v3 = vor.u32 %v9888_v53, %v7953_v54  ;;  %3601 = vmatpush.bf16.msrb.mxu2 %v7700_v59  ;;  %v8343_v53 = vld [vmem:[#allocation6 + $0x180] sm:$0xf]  ;;  %v8616_v54 = vor.u32 %v10059_v34, %v8615_v45  ;;  %v10736_v59 = vpop.f32.mrf.mxu0  ;;  %v3661_v45 = vunpack.c.l.bf16 %v3649_v22 }
 0x254   :  { %v7153_v57 = vld [vmem:[#allocation2 + $0x638] sm:$0xf0] }
 0x255   :  { %v9752_v60 = vld [vmem:[#allocation2 + $0x81c] sm:$0xf]  ;;  %v7156_v10 = vor.u32 %v9688_v56, %v7153_v57  ;;  %3614 = vmatpush.bf16.msrb.mxu3 %v7956_v3  ;;  %v8471_v56 = vld [vmem:[#allocation6 + $0x280] sm:$0xf]  ;;  %v10738_v3 = vpop.f32.mrf.mxu1 }
 0x256   :  { %v7409_v61 = vld [vmem:[#allocation2 + $0x838] sm:$0xf0]  ;;  %v8599_v57 = vld [vmem:[#allocation6 + $0x380] sm:$0xf] }
 0x257   :  { %v9816_v62 = vld [vmem:[#allocation2 + $0xa1c] sm:$0xf]  ;;  %v7412_v14 = vor.u32 %v9752_v60, %v7409_v61  ;;  %3576 = vmatpush.bf16.msrb.mxu0 %v7156_v10  ;;  %v8199_v61 = vld [vmem:[#allocation6 + $0x60] sm:$0xf] }
 0x258   :  { %v7665_v21 = vld [vmem:[#allocation2 + $0xa38] sm:$0xf0] }
 0x259   :  { %v9880_v5 = vld [vmem:[#allocation2 + $0xc1c] sm:$0xf]  ;;  %v7668_v15 = vor.u32 %v9816_v62, %v7665_v21  ;;  %3589 = vmatpush.bf16.msrb.mxu1 %v7412_v14  ;;  %v9955_v62 = vld [vmem:[#allocation6 + $0x6c] sm:$0xf0]  ;;  %v8311_v14 = vld [vmem:[#allocation6 + $0x140] sm:$0xf] }
 0x25a   :  { %v7921_v8 = vld [vmem:[#allocation2 + $0xc38] sm:$0xf0]  ;;  %3577 = vmatmul.bf16.vlgmr.msrb.gmra.mxu0 %v10612_v6  ;;  %v9959_v6 = vld [vmem:[#allocation6 + $0x8c] sm:$0xf0]  ;;  %v8200_v20 = vor.u32 %v9955_v62, %v8199_v61  ;;  %v8312_v26 = vor.u32 %v9983_v17, %v8311_v14  ;;  %v8535_v61 = vld [vmem:[#allocation6 + $0x300] sm:$0xf] }
 0x25b   :  { %v7924_v18 = vor.u32 %v9880_v5, %v7921_v8  ;;  %3602 = vmatpush.bf16.msrb.mxu2 %v7668_v15  ;;  %5231 = vmatpush.bf16.msra.mxu0 %v8264_v0  ;;  %v8216_v58 = vor.u32 %v9959_v6, %v8215_v51  ;;  %v9987_v5 = vld [vmem:[#allocation6 + $0x16c] sm:$0xf0]  ;;  %v8455_v8 = vld [vmem:[#allocation6 + $0x260] sm:$0xf]  ;;  %v10740_v15 = vpop.f32.mrf.mxu2  ;;  %v3372_v25 = vpop.f32.mrf.mxu0  ;;  %v3662_v51 = vunpack.c.h.bf16 %v3649_v22 }
 0x25c   :  { %3590 = vmatmul.bf16.vlgmr.msrb.gmra.mxu1 %v10630_v40  ;;  %v10023_v40 = vld [vmem:[#allocation6 + $0x28c] sm:$0xf0]  ;;  %v8328_v10 = vor.u32 %v9987_v5, %v8327_v1  ;;  %v8456_v11 = vor.u32 %v10019_v4, %v8455_v8  ;;  %v3656_v1 = vunpack.c.h.bf16 %v10714_v63  ;;  %v8775_v8 = vld [vmem:[#allocation6 + $0x4e0] sm:$0xf] }
 0x25d   :  { %3615 = vmatpush.bf16.msrb.mxu3 %v7924_v18  ;;  %5244 = vmatpush.bf16.msra.mxu1 %v8392_v19  ;;  %v8472_v60 = vor.u32 %v10023_v40, %v8471_v56  ;;  %v8439_v18 = vld [vmem:[#allocation6 + $0x240] sm:$0xf]  ;;  %v10015_v0 = vld [vmem:[#allocation6 + $0x24c] sm:$0xf0]  ;;  %v10742_v19 = vpop.f32.mrf.mxu3 }
 0x25e   :  { %3603 = vmatmul.bf16.vlgmr.msrb.gmra.mxu2 %v10632_v41  ;;  %v10055_v41 = vld [vmem:[#allocation6 + $0x38c] sm:$0xf0]  ;;  %v8440_v46 = vor.u32 %v10015_v0, %v8439_v18  ;;  %v8759_v0 = vld [vmem:[#allocation6 + $0x4c0] sm:$0xf] }
 0x25f   :  { %5257 = vmatpush.bf16.msra.mxu2 %v8520_v39  ;;  %5232 = vmatpush.bf16.msra.mxu0 %v8248_v28  ;;  %v8600_v21 = vor.u32 %v10055_v41, %v8599_v57  ;;  %v8567_v39 = vld [vmem:[#allocation6 + $0x340] sm:$0xf]  ;;  %v9947_v28 = vld [vmem:[#allocation6 + $0x2c] sm:$0xf0]  ;;  %v3654_v57 = vunpack.c.h.bf16 %v10681_v35  ;;  %v3655_v41 = vunpack.c.l.bf16 %v10714_v63 }
 0x260   :  { %3616 = vmatmul.bf16.vlgmr.msrb.gmra.mxu3 %v10628_v37  ;;  %v8344_v37 = vor.u32 %v9991_v55, %v8343_v53  ;;  %v8568_v7 = vor.u32 %v10047_v42, %v8567_v39  ;;  %v8279_v55 = vld [vmem:[#allocation6 + $0x100] sm:$0xf]  ;;  %v9975_v56 = vld [vmem:[#allocation6 + $0x10c] sm:$0xf0] }
 0x261   :  { %5270 = vmatpush.bf16.msra.mxu3 %v8648_v24  ;;  %5245 = vmatpush.bf16.msra.mxu1 %v8376_v52  ;;  %v617_v24 = vperm.slane %v10747_v23, 5  ;;  %v8295_v52 = vld [vmem:[#allocation6 + $0x120] sm:$0xf]  ;;  %v10039_v5 = vld [vmem:[#allocation6 + $0x30c] sm:$0xf0]  ;;  %v3670_v2 = vmul.f32 %v3662_v51, %v3654_v57 }
 0x262   :  { %v8296_v6 = vor.u32 %v9979_v32, %v8295_v52  ;;  %v10099_v4 = vld [vmem:[#allocation6 + $0x4ec] sm:$0xf0]  ;;  %v8887_v42 = vld [vmem:[#allocation6 + $0x5c0] sm:$0xf] }
 0x263   :  { %5258 = vmatpush.bf16.msra.mxu2 %v8504_v30  ;;  %5233 = vmatpush.bf16.msra.mxu0 %v8232_v48  ;;  %v3385_v30 = vpop.f32.mrf.mxu1  ;;  %v3358_v34 = vadd.f32 %v10730_v31, %v617_v24  ;;  %v8168_v48 = vor.u32 %v9947_v28, %v8167_v27  ;;  %v3398_v40 = vpop.f32.mrf.mxu2  ;;  %v8552_v31 = vor.u32 %v10043_v44, %v8551_v43  ;;  %v10095_v39 = vld [vmem:[#allocation6 + $0x4cc] sm:$0xf0]  ;;  %v8743_v27 = vld [vmem:[#allocation6 + $0x4a0] sm:$0xf] }
 0x264   :  { %v8776_v63 = vor.u32 %v10099_v4, %v8775_v8  ;;  %v10127_v22 = vld [vmem:[#allocation6 + $0x5cc] sm:$0xf0]  ;;  %v8871_v30 = vld [vmem:[#allocation6 + $0x5a0] sm:$0xf]  ;;  %v3633_v40 = vmul.f32 0.2, %v10728_v29 }
 0x265   :  { %5271 = vmatpush.bf16.msra.mxu3 %v8632_v13  ;;  %5246 = vmatpush.bf16.msra.mxu1 %v8360_v49  ;;  %v10011_v13 = vld [vmem:[#allocation6 + $0x22c] sm:$0xf0]  ;;  %v8151_v49 = vld [vmem:[#allocation6] sm:$0xf]  ;;  %v3411_v62 = vpop.f32.mrf.mxu3  ;;  %v3371_v9 = vadd.f32 %v10736_v59, %v3358_v34  ;;  %v3422_v34 = vpop.f32.mrf.mxu0 }
 0x266   :  { %v8424_v53 = vor.u32 %v10011_v13, %v8423_v33  ;;  %v10091_v28 = vld [vmem:[#allocation6 + $0x4ac] sm:$0xf0]  ;;  %v8727_v13 = vld [vmem:[#allocation6 + $0x480] sm:$0xf]  ;;  %v3641_v8 = vsel %vm3625_vm5, %v10728_v29, %v3633_v40 }
 0x267   :  { %5259 = vmatpush.bf16.msra.mxu2 %v8488_v50  ;;  %5234 = vmatpush.bf16.msra.mxu0 %v8216_v58  ;;  %v3653_v50 = vunpack.c.l.bf16 %v10681_v35  ;;  %v3663_v58 = vunpack.c.l.bf16 %v3650_v36  ;;  %v8903_v35 = vld [vmem:[#allocation6 + $0x5e0] sm:$0xf]  ;;  %v3384_v59 = vadd.f32 %v10738_v3, %v3371_v9  ;;  %v8888_v3 = vor.u32 %v10127_v22, %v8887_v42  ;;  %v10103_v22 = vld [vmem:[#allocation6 + $0x50c] sm:$0xf0] }
 0x268   :  { %v8744_v32 = vor.u32 %v10091_v28, %v8743_v27  ;;  %v8855_v44 = vld [vmem:[#allocation6 + $0x580] sm:$0xf]  ;;  %v10001_v28 = vld [vmem:[#allocation6 + $0x1e4] sm:$0xf] }
 0x269   :  { %5272 = vmatpush.bf16.msra.mxu3 %v8616_v54  ;;  %5247 = vmatpush.bf16.msra.mxu1 %v8344_v37  ;;  %v9943_v54 = vld [vmem:[#allocation6 + $0xc] sm:$0xf0]  ;;  %v8407_v37 = vld [vmem:[#allocation6 + $0x200] sm:$0xf]  ;;  %v3671_v14 = vmul.f32 %v3663_v58, %v3655_v41  ;;  %v3397_v52 = vadd.f32 %v10740_v15, %v3384_v59 }
 0x26a   :  { %v8152_v38 = vor.u32 %v9943_v54, %v8151_v49  ;;  %v8711_v51 = vld [vmem:[#allocation6 + $0x460] sm:$0xf] }
 0x26b   :  { %5260 = vmatpush.bf16.msra.mxu2 %v8472_v60  ;;  %5235 = vmatpush.bf16.msra.mxu0 %v8200_v20  ;;  %v10007_v60 = vld [vmem:[#allocation6 + $0x20c] sm:$0xf0]  ;;  %v10764_v25 = vpack.c.bf16 %v3671_v14, %v3671_v14  ;;  %v3410_v43 = vadd.f32 %v10742_v19, %v3397_v52  ;;  %v3435_v49 = vpop.f32.mrf.mxu1  ;;  %v8839_v54 = vld [vmem:[#allocation6 + $0x560] sm:$0xf]  ;;  %v3448_v62 = vpop.f32.mrf.mxu2  ;;  %v8393_v52 = vld [vmem:[#allocation6 + $0x1f0] sm:$0xf0] }
 0x26c   :  { %v10131_v20 = vld [vmem:[#allocation6 + $0x5ec] sm:$0xf0]  ;;  %v8408_v12 = vor.u32 %v10007_v60, %v8407_v37  ;;  %v8695_v58 = vld [vmem:[#allocation6 + $0x440] sm:$0xf] }
 0x26d   :  { %5273 = vmatpush.bf16.msra.mxu3 %v8600_v21  ;;  %5248 = vmatpush.bf16.msra.mxu1 %v8328_v10  ;;  %v3664_v21 = vunpack.c.h.bf16 %v3650_v36  ;;  %v3669_v10 = vmul.f32 %v3661_v45, %v3653_v50  ;;  %v8904_v18 = vor.u32 %v10131_v20, %v8903_v35  ;;  %v10087_v36 = vld [vmem:[#allocation6 + $0x48c] sm:$0xf0]  ;;  %v3423_v15 = vadd.f32 %v3422_v34, %v3410_v43  ;;  %v8823_v60 = vld [vmem:[#allocation6 + $0x540] sm:$0xf]  ;;  %v9997_v34 = vld [vmem:[#allocation6 + $0x1c4] sm:$0xf] }
 0x26e   :  { %v10119_v45 = vld [vmem:[#allocation6 + $0x58c] sm:$0xf0]  ;;  %v8679_v20 = vld [vmem:[#allocation6 + $0x420] sm:$0xf]  ;;  %v8396_v43 = vor.u32 %v10001_v28, %v8393_v52 }
 0x26f   :  { %5261 = vmatpush.bf16.msra.mxu2 %v8456_v11  ;;  %5236 = vmatpush.bf16.msra.mxu0 %v8184_v47  ;;  %v8280_v11 = vor.u32 %v9975_v56, %v8279_v55  ;;  %v3672_v17 = vmul.f32 %v3664_v21, %v3656_v1  ;;  %v10760_v24 = vpack.c.bf16 %v3669_v10, %v3669_v10  ;;  %v10115_v55 = vld [vmem:[#allocation6 + $0x56c] sm:$0xf0]  ;;  %v618_v56 = vperm.slane %v10747_v23, 6  ;;  %v3461_v21 = vpop.f32.mrf.mxu3 }
 0x270   :  { %v10762_v47 = vpack.c.bf16 %v3670_v2, %v3670_v2  ;;  %v8856_v50 = vor.u32 %v10119_v45, %v8855_v44  ;;  %v8840_v41 = vor.u32 %v10115_v55, %v8839_v54  ;;  %v10075_v10 = vld [vmem:[#allocation6 + $0x42c] sm:$0xf0]  ;;  %v8807_v2 = vld [vmem:[#allocation6 + $0x520] sm:$0xf]  ;;  %v9965_v44 = vld [vmem:[#allocation6 + $0xc4] sm:$0xf] }
 0x271   :  { %5274 = vmatpush.bf16.msra.mxu3 %v8584_v16  ;;  %5249 = vmatpush.bf16.msra.mxu1 %v8312_v26  ;;  %v8536_v16 = vor.u32 %v10039_v5, %v8535_v61  ;;  %v8760_v26 = vor.u32 %v10095_v39, %v8759_v0  ;;  %v10111_v61 = vld [vmem:[#allocation6 + $0x54c] sm:$0xf0]  ;;  %v3449_v1 = vadd.f32 %v3448_v62, %v618_v56  ;;  %v3424_v5 = vpop.f32.mrf.mxu0  ;;  %v8791_v39 = vld [vmem:[#allocation6 + $0x500] sm:$0xf]  ;;  %v8249_v45 = vld [vmem:[#allocation6 + $0xd0] sm:$0xf0] }
 0x272   :  { %v8824_v35 = vor.u32 %v10111_v61, %v8823_v60  ;;  %v10107_v14 = vld [vmem:[#allocation6 + $0x52c] sm:$0xf0]  ;;  %v9143_v60 = vld [vmem:[#allocation6 + $0x7c0] sm:$0xf] }
 0x273   :  { %5262 = vmatpush.bf16.msra.mxu2 %v8440_v46  ;;  %5237 = vmatpush.bf16.msra.mxu0 %v8168_v48  ;;  %v10766_v46 = vpack.c.bf16 %v3672_v17, %v3672_v17  ;;  %v8728_v48 = vor.u32 %v10087_v36, %v8727_v13  ;;  %v3437_v9 = vpop.f32.mrf.mxu1  ;;  %v8808_v17 = vor.u32 %v10107_v14, %v8807_v2  ;;  %v10071_v0 = vld [vmem:[#allocation6 + $0x40c] sm:$0xf0]  ;;  %v3450_v27 = vpop.f32.mrf.mxu2 }
 0x274   :  { %v10195_v55 = vld [vmem:[#allocation6 + $0x7ec] sm:$0xf0]  ;;  %v9989_v9 = vld [vmem:[#allocation6 + $0x184] sm:$0xf] }
 0x275   :  { %5275 = vmatpush.bf16.msra.mxu3 %v8568_v7  ;;  %5250 = vmatpush.bf16.msra.mxu1 %v8296_v6  ;;  %v10123_v7 = vld [vmem:[#allocation6 + $0x5ac] sm:$0xf0] }
 0x276   :  { %v8872_v33 = vor.u32 %v10123_v7, %v8871_v30  ;;  %v10083_v6 = vld [vmem:[#allocation6 + $0x46c] sm:$0xf0] }
 0x277   :  { %5263 = vmatpush.bf16.msra.mxu2 %v8424_v53  ;;  %5238 = vmatpush.bf16.msra.mxu0 %v8152_v38  ;;  %v3436_v53 = vadd.f32 %v3435_v49, %v3423_v15  ;;  %v8712_v57 = vor.u32 %v10083_v6, %v8711_v51  ;;  %v3463_v30 = vpop.f32.mrf.mxu3  ;;  %v8377_v15 = vld [vmem:[#allocation6 + $0x1d0] sm:$0xf0]  ;;  %v10163_v49 = vld [vmem:[#allocation6 + $0x6ec] sm:$0xf0]  ;;  %v8252_v6 = vor.u32 %v9965_v44, %v8249_v45 }
 0x278   :  { %v8380_v40 = vor.u32 %v9997_v34, %v8377_v15  ;;  %v10191_v62 = vld [vmem:[#allocation6 + $0x7cc] sm:$0xf0]  ;;  %v9949_v30 = vld [vmem:[#allocation6 + $0x44] sm:$0xf]  ;;  %v9095_v15 = vld [vmem:[#allocation6 + $0x760] sm:$0xf] }
 0x279   :  { %5276 = vmatpush.bf16.msra.mxu3 %v8552_v31  ;;  %5251 = vmatpush.bf16.msra.mxu1 %v8280_v11  ;;  %vm3626_vm4 = vcmp.ge.f32.partialorder %v3436_v53, 0.0  ;;  %v3634_v19 = vmul.f32 0.2, %v3436_v53  ;;  %v10079_v31 = vld [vmem:[#allocation6 + $0x44c] sm:$0xf0]  ;;  %v10778_v11 = vadd.f32 %v3461_v21, %v3449_v1  ;;  %v9144_v21 = vor.u32 %v10191_v62, %v9143_v60 }
 0x27a   :  { %5239 = vmatmul.bf16.vlgmr.msra.gmra.mxu0 %v10760_v24  ;;  %v8696_v4 = vor.u32 %v10079_v31, %v8695_v58  ;;  %v9015_v31 = vld [vmem:[#allocation6 + $0x6c0] sm:$0xf]  ;;  %v10187_v14 = vld [vmem:[#allocation6 + $0x7ac] sm:$0xf0]  ;;  %v9941_v62 = vld [vmem:[#allocation6 + $0x4] sm:$0xf] }
 0x27b   :  { %5264 = vmatpush.bf16.msra.mxu2 %v8408_v12  ;;  %5283 = vmatpush.bf16.msrb.mxu0 %v8776_v63  ;;  %v3642_v37 = vsel %vm3626_vm4, %v3436_v53, %v3634_v19  ;;  %v3651_v12 = vld [vmem:[%s10915_s1 + $0x10] sm:$0xff]  ;;  %v9961_v53 = vld [vmem:[#allocation6 + $0xa4] sm:$0xf]  ;;  %v8233_v19 = vld [vmem:[#allocation6 + $0xb0] sm:$0xf0] }
 0x27c   :  { %5252 = vmatmul.bf16.vlgmr.msra.gmra.mxu1 %v10762_v47  ;;  %v3647_v38 = vpack.c.bf16 %v3642_v37, %v3641_v8  ;;  %v3665_v29 = vunpack.c.l.bf16 %v3651_v12  ;;  %v3666_v42 = vunpack.c.h.bf16 %v3651_v12  ;;  %v10159_v37 = vld [vmem:[#allocation6 + $0x6cc] sm:$0xf0]  ;;  %v8236_v1 = vor.u32 %v9961_v53, %v8233_v19  ;;  %v9957_v8 = vld [vmem:[#allocation6 + $0x84] sm:$0xf] }
 0x27d   :  { %5277 = vmatpush.bf16.msra.mxu3 %v8536_v16  ;;  %5296 = vmatpush.bf16.msrb.mxu1 %v8904_v18  ;;  %v8680_v16 = vor.u32 %v10075_v10, %v8679_v20  ;;  %v8663_v18 = vld [vmem:[#allocation6 + $0x400] sm:$0xf]  ;;  %v9016_v61 = vor.u32 %v10159_v37, %v9015_v31  ;;  %v10155_v20 = vld [vmem:[#allocation6 + $0x6ac] sm:$0xf0] }
 0x27e   :  { %5265 = vmatmul.bf16.vlgmr.msra.gmra.mxu2 %v10764_v25  ;;  %v3657_v63 = vunpack.c.l.bf16 %v3647_v38  ;;  %v3658_v59 = vunpack.c.h.bf16 %v3647_v38  ;;  %v8664_v7 = vor.u32 %v10071_v0, %v8663_v18  ;;  %v8345_v38 = vld [vmem:[#allocation6 + $0x190] sm:$0xf0]  ;;  %v9127_v10 = vld [vmem:[#allocation6 + $0x7a0] sm:$0xf]  ;;  %v9985_v0 = vld [vmem:[#allocation6 + $0x164] sm:$0xf] }
 0x27f   :  { %5284 = vmatpush.bf16.msrb.mxu0 %v8760_v26  ;;  %v9969_v26 = vld [vmem:[#allocation6 + $0xe4] sm:$0xf]  ;;  %v9128_v18 = vor.u32 %v10187_v14, %v9127_v10  ;;  %v10183_v28 = vld [vmem:[#allocation6 + $0x78c] sm:$0xf0]  ;;  %v9079_v31 = vld [vmem:[#allocation6 + $0x740] sm:$0xf] }
 0x280   :  { %5278 = vmatmul.bf16.vlgmr.msra.gmra.mxu3 %v10766_v46  ;;  %v3674_v36 = vmul.f32 %v3666_v42, %v3658_v59  ;;  %v8983_v42 = vld [vmem:[#allocation6 + $0x680] sm:$0xf]  ;;  %v10147_v44 = vld [vmem:[#allocation6 + $0x66c] sm:$0xf0]  ;;  %v8905_v14 = vld [vmem:[#allocation6 + $0x5f0] sm:$0xf0] }
 0x281   :  { %5297 = vmatpush.bf16.msrb.mxu1 %v8888_v3  ;;  %v8265_v3 = vld [vmem:[#allocation6 + $0xf0] sm:$0xf0]  ;;  %v10175_v60 = vld [vmem:[#allocation6 + $0x74c] sm:$0xf0] }
 0x282   :  { %v8268_v13 = vor.u32 %v9969_v26, %v8265_v3  ;;  %v10785_v56 = vpack.c.bf16 %v3674_v36, %v3674_v36  ;;  %v9111_v26 = vld [vmem:[#allocation6 + $0x780] sm:$0xf]  ;;  %v10139_v10 = vld [vmem:[#allocation6 + $0x62c] sm:$0xf0] }
 0x283   :  { %5285 = vmatpush.bf16.msrb.mxu0 %v8744_v32  ;;  %v3673_v32 = vmul.f32 %v3665_v29, %v3657_v63  ;;  %v9953_v63 = vld [vmem:[#allocation6 + $0x64] sm:$0xf]  ;;  %v8201_v29 = vld [vmem:[#allocation6 + $0x70] sm:$0xf0] }
 0x284   :  { %v8204_v3 = vor.u32 %v9953_v63, %v8201_v29  ;;  %v10171_v29 = vld [vmem:[#allocation6 + $0x72c] sm:$0xf0] }
 0x285   :  { %5298 = vmatpush.bf16.msrb.mxu1 %v8872_v33  ;;  %v8792_v33 = vor.u32 %v10103_v22, %v8791_v39  ;;  %v10783_v51 = vpack.c.bf16 %v3673_v32, %v3673_v32  ;;  %v8329_v39 = vld [vmem:[#allocation6 + $0x170] sm:$0xf0]  ;;  %v10151_v22 = vld [vmem:[#allocation6 + $0x68c] sm:$0xf0]  ;;  %v9981_v32 = vld [vmem:[#allocation6 + $0x144] sm:$0xf] }
 0x286   :  { %v8984_v27 = vor.u32 %v10151_v22, %v8983_v42  ;;  %v8332_v52 = vor.u32 %v9985_v0, %v8329_v39  ;;  %v10093_v22 = vld [vmem:[#allocation6 + $0x4c4] sm:$0xf] }
 0x287   :  { %5286 = vmatpush.bf16.msrb.mxu0 %v8728_v48  ;;  %v9031_v48 = vld [vmem:[#allocation6 + $0x6e0] sm:$0xf] }
 0x288   :  { %v9032_v54 = vor.u32 %v10163_v49, %v9031_v48  ;;  %v10791_v59 = vpop.f32.mrf.mxu1  ;;  %v10179_v48 = vld [vmem:[#allocation6 + $0x76c] sm:$0xf0] }
 0x289   :  { %5299 = vmatpush.bf16.msrb.mxu1 %v8856_v50  ;;  %v9159_v50 = vld [vmem:[#allocation6 + $0x7e0] sm:$0xf] }
 0x28a   :  { %v9160_v58 = vor.u32 %v10195_v55, %v9159_v50  ;;  %5309 = vmatpush.bf16.msrb.mxu2 %v9032_v54  ;;  %v9945_v50 = vld [vmem:[#allocation6 + $0x24] sm:$0xf]  ;;  %v8169_v54 = vld [vmem:[#allocation6 + $0x30] sm:$0xf0] }
 0x28b   :  { %5287 = vmatpush.bf16.msrb.mxu0 %v8712_v57  ;;  %v9993_v57 = vld [vmem:[#allocation6 + $0x1a4] sm:$0xf] }
 0x28c   :  { %5322 = vmatpush.bf16.msrb.mxu3 %v9160_v58  ;;  %v9977_v55 = vld [vmem:[#allocation6 + $0x124] sm:$0xf]  ;;  %v10143_v58 = vld [vmem:[#allocation6 + $0x64c] sm:$0xf0] }
 0x28d   :  { %5300 = vmatpush.bf16.msrb.mxu1 %v8840_v41  ;;  %v8361_v41 = vld [vmem:[#allocation6 + $0x1b0] sm:$0xf0] }
 0x28e   :  { %v8364_v5 = vor.u32 %v9993_v57, %v8361_v41  ;;  %5310 = vmatpush.bf16.msrb.mxu2 %v9016_v61  ;;  %v8951_v41 = vld [vmem:[#allocation6 + $0x640] sm:$0xf]  ;;  %v8172_v61 = vor.u32 %v9945_v50, %v8169_v54  ;;  %v8649_v50 = vld [vmem:[#allocation6 + $0x3f0] sm:$0xf0]  ;;  %v10121_v54 = vld [vmem:[#allocation6 + $0x5a4] sm:$0xf] }
 0x28f   :  { %5288 = vmatpush.bf16.msrb.mxu0 %v8696_v4  ;;  %v8217_v4 = vld [vmem:[#allocation6 + $0x90] sm:$0xf0]  ;;  %v8952_v37 = vor.u32 %v10143_v58, %v8951_v41  ;;  %v10061_v41 = vld [vmem:[#allocation6 + $0x3c4] sm:$0xf] }
 0x290   :  { %5323 = vmatpush.bf16.msrb.mxu3 %v9144_v21  ;;  %v8220_v12 = vor.u32 %v9957_v8, %v8217_v4  ;;  %v10793_v36 = vpop.f32.mrf.mxu2  ;;  %v3489_v57 = vpop.f32.mrf.mxu1  ;;  %v9973_v21 = vld [vmem:[#allocation6 + $0x104] sm:$0xf]  ;;  %v8281_v4 = vld [vmem:[#allocation6 + $0x110] sm:$0xf0] }
 0x291   :  { %5301 = vmatpush.bf16.msrb.mxu1 %v8824_v35  ;;  %v8999_v35 = vld [vmem:[#allocation6 + $0x6a0] sm:$0xf]  ;;  %v8284_v39 = vor.u32 %v9973_v21, %v8281_v4  ;;  %v8505_v57 = vld [vmem:[#allocation6 + $0x2d0] sm:$0xf0]  ;;  %v10117_v21 = vld [vmem:[#allocation6 + $0x584] sm:$0xf] }
 0x292   :  { %v9000_v2 = vor.u32 %v10155_v20, %v8999_v35  ;;  %v10795_v45 = vpop.f32.mrf.mxu3  ;;  %v8935_v20 = vld [vmem:[#allocation6 + $0x620] sm:$0xf]  ;;  %v8489_v4 = vld [vmem:[#allocation6 + $0x2b0] sm:$0xf0] }
 0x293   :  { %5289 = vmatpush.bf16.msrb.mxu0 %v8680_v16  ;;  %v8348_v16 = vor.u32 %v9989_v9, %v8345_v38  ;;  %v10097_v9 = vld [vmem:[#allocation6 + $0x4e4] sm:$0xf]  ;;  %v8777_v38 = vld [vmem:[#allocation6 + $0x4f0] sm:$0xf0]  ;;  %v8936_v63 = vor.u32 %v10139_v10, %v8935_v20 }
 0x294   :  { %5311 = vmatpush.bf16.msrb.mxu2 %v9000_v2  ;;  %5324 = vmatpush.bf16.msrb.mxu3 %v9128_v18  ;;  %v10129_v2 = vld [vmem:[#allocation6 + $0x5e4] sm:$0xf]  ;;  %v8780_v42 = vor.u32 %v10097_v9, %v8777_v38  ;;  %v8617_v10 = vld [vmem:[#allocation6 + $0x3b0] sm:$0xf0] }
 0x295   :  { %5302 = vmatpush.bf16.msrb.mxu1 %v8808_v17  ;;  %v10789_v17 = vpop.f32.mrf.mxu0  ;;  %v10057_v9 = vld [vmem:[#allocation6 + $0x3a4] sm:$0xf] }
 0x297   :  { %5290 = vmatpush.bf16.msrb.mxu0 %v8664_v7  ;;  %v8185_v7 = vld [vmem:[#allocation6 + $0x50] sm:$0xf0] }
 0x298   :  { %5312 = vmatpush.bf16.msrb.mxu2 %v8984_v27  ;;  %v8188_v49 = vor.u32 %v9949_v30, %v8185_v7  ;;  %v3502_v35 = vpop.f32.mrf.mxu2  ;;  %v10125_v27 = vld [vmem:[#allocation6 + $0x5c4] sm:$0xf]  ;;  %v10135_v30 = vld [vmem:[#allocation6 + $0x60c] sm:$0xf0]  ;;  %v9047_v7 = vld [vmem:[#allocation6 + $0x700] sm:$0xf] }
 0x299   :  { %5303 = vmatpush.bf16.msrb.mxu1 %v8792_v33  ;;  %v9112_v33 = vor.u32 %v10183_v28, %v9111_v26  ;;  %v8908_v26 = vor.u32 %v10129_v2, %v8905_v14  ;;  %v8889_v28 = vld [vmem:[#allocation6 + $0x5d0] sm:$0xf0]  ;;  %v10081_v35 = vld [vmem:[#allocation6 + $0x464] sm:$0xf] }
 0x29a   :  { %5291 = vmatmul.bf16.vlgmr.msrb.gmra.mxu0 %v10783_v51  ;;  %v8713_v14 = vld [vmem:[#allocation6 + $0x470] sm:$0xf0] }
 0x29b   :  { %5335 = vmatpush.bf16.msra.mxu0 %v8268_v13  ;;  %v8313_v13 = vld [vmem:[#allocation6 + $0x150] sm:$0xf0]  ;;  %5325 = vmatpush.bf16.msrb.mxu3 %v9112_v33  ;;  %v10167_v33 = vld [vmem:[#allocation6 + $0x70c] sm:$0xf0] }
 0x29c   :  { %5304 = vmatmul.bf16.vlgmr.msrb.gmra.mxu1 %v10785_v56  ;;  %v8316_v53 = vor.u32 %v9981_v32, %v8313_v13  ;;  %v10033_v13 = vld [vmem:[#allocation6 + $0x2e4] sm:$0xf] }
 0x29d   :  { %5348 = vmatpush.bf16.msra.mxu1 %v8396_v43  ;;  %v8967_v43 = vld [vmem:[#allocation6 + $0x660] sm:$0xf]  ;;  %v3476_v19 = vpop.f32.mrf.mxu0 }
 0x29e   :  { %v8968_v34 = vor.u32 %v10147_v44, %v8967_v43  ;;  %v8521_v43 = vld [vmem:[#allocation6 + $0x2f0] sm:$0xf0]  ;;  %v10029_v19 = vld [vmem:[#allocation6 + $0x2c4] sm:$0xf] }
 0x29f   :  { %5336 = vmatpush.bf16.msra.mxu0 %v8252_v6  ;;  %v9096_v6 = vor.u32 %v10179_v48, %v9095_v15  ;;  %v9048_v15 = vor.u32 %v10167_v33, %v9047_v7  ;;  %v8524_v48 = vor.u32 %v10033_v13, %v8521_v43  ;;  %v8508_v58 = vor.u32 %v10029_v19, %v8505_v57  ;;  %v10109_v7 = vld [vmem:[#allocation6 + $0x544] sm:$0xf]  ;;  %v8457_v13 = vld [vmem:[#allocation6 + $0x270] sm:$0xf0] }
 0x2a0   :  { %5313 = vmatpush.bf16.msrb.mxu2 %v8968_v34  ;;  %v10089_v34 = vld [vmem:[#allocation6 + $0x4a4] sm:$0xf]  ;;  %v8809_v19 = vld [vmem:[#allocation6 + $0x530] sm:$0xf0] }
 0x2a1   :  { %5349 = vmatpush.bf16.msra.mxu1 %v8380_v40  ;;  %v8297_v40 = vld [vmem:[#allocation6 + $0x130] sm:$0xf0]  ;;  %5326 = vmatpush.bf16.msrb.mxu3 %v9096_v6  ;;  %v8892_v6 = vor.u32 %v10125_v27, %v8889_v28  ;;  %v10017_v33 = vld [vmem:[#allocation6 + $0x264] sm:$0xf] }
 0x2a2   :  { %v8300_v8 = vor.u32 %v9977_v55, %v8297_v40  ;;  %v8873_v55 = vld [vmem:[#allocation6 + $0x5b0] sm:$0xf0]  ;;  %v10049_v43 = vld [vmem:[#allocation6 + $0x364] sm:$0xf] }
 0x2a3   :  { %5337 = vmatpush.bf16.msra.mxu0 %v8236_v1  ;;  %v8153_v1 = vld [vmem:[#allocation6 + $0x10] sm:$0xf0] }
 0x2a4   :  { %5314 = vmatpush.bf16.msrb.mxu2 %v8952_v37  ;;  %v8156_v18 = vor.u32 %v9941_v62, %v8153_v1  ;;  %v10085_v62 = vld [vmem:[#allocation6 + $0x484] sm:$0xf]  ;;  %v8729_v1 = vld [vmem:[#allocation6 + $0x490] sm:$0xf0] }
 0x2a5   :  { %5350 = vmatpush.bf16.msra.mxu1 %v8364_v5  ;;  %v9080_v5 = vor.u32 %v10175_v60, %v9079_v31  ;;  %v8633_v31 = vld [vmem:[#allocation6 + $0x3d0] sm:$0xf0]  ;;  %v8732_v38 = vor.u32 %v10085_v62, %v8729_v1 }
 0x2a6   :  { %v8636_v60 = vor.u32 %v10061_v41, %v8633_v31  ;;  %v10013_v41 = vld [vmem:[#allocation6 + $0x244] sm:$0xf]  ;;  %v8569_v1 = vld [vmem:[#allocation6 + $0x350] sm:$0xf0] }
 0x2a7   :  { %5338 = vmatpush.bf16.msra.mxu0 %v8220_v12  ;;  %v9063_v12 = vld [vmem:[#allocation6 + $0x720] sm:$0xf]  ;;  %5327 = vmatpush.bf16.msrb.mxu3 %v9080_v5  ;;  %v8857_v5 = vld [vmem:[#allocation6 + $0x590] sm:$0xf0]  ;;  %v10045_v31 = vld [vmem:[#allocation6 + $0x344] sm:$0xf] }
 0x2a8   :  { %v9064_v0 = vor.u32 %v10171_v29, %v9063_v12  ;;  %5315 = vmatpush.bf16.msrb.mxu2 %v8936_v63  ;;  %v8860_v2 = vor.u32 %v10117_v21, %v8857_v5  ;;  %v8841_v63 = vld [vmem:[#allocation6 + $0x570] sm:$0xf0]  ;;  %v8620_v29 = vor.u32 %v10057_v9, %v8617_v10  ;;  %v10101_v5 = vld [vmem:[#allocation6 + $0x504] sm:$0xf]  ;;  %v8572_v9 = vor.u32 %v10045_v31, %v8569_v1  ;;  %v8351_v31 = vld [vmem:[#allocation6 + $0x188] sm:$0xf] }
 0x2a9   :  { %5351 = vmatpush.bf16.msra.mxu1 %v8348_v16  ;;  %v3515_v16 = vpop.f32.mrf.mxu3  ;;  %v10009_v10 = vld [vmem:[#allocation6 + $0x224] sm:$0xf]  ;;  %v9956_v1 = vld [vmem:[#allocation6 + $0x74] sm:$0xf0] }
 0x2aa   :  { %v10799_v12 = vpop.f32.mrf.mxu0  ;;  %v10113_v16 = vld [vmem:[#allocation6 + $0x564] sm:$0xf] }
 0x2ab   :  { %5339 = vmatpush.bf16.msra.mxu0 %v8204_v3  ;;  %v8761_v3 = vld [vmem:[#allocation6 + $0x4d0] sm:$0xf0]  ;;  %5328 = vmatpush.bf16.msrb.mxu3 %v9064_v0  ;;  %v8844_v28 = vor.u32 %v10113_v16, %v8841_v63 }
 0x2ac   :  { %v8764_v44 = vor.u32 %v10093_v22, %v8761_v3  ;;  %v8473_v0 = vld [vmem:[#allocation6 + $0x290] sm:$0xf0]  ;;  %v8716_v3 = vor.u32 %v10081_v35, %v8713_v14  ;;  %v8399_v35 = vld [vmem:[#allocation6 + $0x1e8] sm:$0xf]  ;;  %v10041_v14 = vld [vmem:[#allocation6 + $0x324] sm:$0xf] }
 0x2ad   :  { %5352 = vmatpush.bf16.msra.mxu1 %v8332_v52  ;;  %v8919_v52 = vld [vmem:[#allocation6 + $0x600] sm:$0xf] }
 0x2ae   :  { %v8920_v32 = vor.u32 %v10135_v30, %v8919_v52  ;;  %v10077_v52 = vld [vmem:[#allocation6 + $0x444] sm:$0xf]  ;;  %v8697_v30 = vld [vmem:[#allocation6 + $0x450] sm:$0xf0] }
 0x2af   :  { %5340 = vmatpush.bf16.msra.mxu0 %v8188_v49  ;;  %v10065_v49 = vld [vmem:[#allocation6 + $0x3e4] sm:$0xf]  ;;  %5329 = vmatpush.bf16.msrb.mxu3 %v9048_v15 }
 0x2b0   :  { %5316 = vmatpush.bf16.msrb.mxu2 %v8920_v32  ;;  %v8652_v40 = vor.u32 %v10065_v49, %v8649_v50  ;;  %v8825_v32 = vld [vmem:[#allocation6 + $0x550] sm:$0xf0] }
 0x2b1   :  { %5353 = vmatpush.bf16.msra.mxu1 %v8316_v53  ;;  %v8745_v53 = vld [vmem:[#allocation6 + $0x4b0] sm:$0xf0]  ;;  %v8828_v50 = vor.u32 %v10109_v7, %v8825_v32  ;;  %v10000_v7 = vld [vmem:[#allocation6 + $0x1d4] sm:$0xf0]  ;;  %v10005_v32 = vld [vmem:[#allocation6 + $0x204] sm:$0xf] }
 0x2b2   :  { %v8748_v37 = vor.u32 %v10089_v34, %v8745_v53  ;;  %v10803_v34 = vpop.f32.mrf.mxu2  ;;  %v10805_v15 = vpop.f32.mrf.mxu3  ;;  %v8585_v49 = vld [vmem:[#allocation6 + $0x370] sm:$0xf0] }
 0x2b3   :  { %5341 = vmatpush.bf16.msra.mxu0 %v8172_v61  ;;  %5374 = vmatpush.bf16.msra.mxu3 %v8652_v40  ;;  %v8876_v61 = vor.u32 %v10121_v54, %v8873_v55  ;;  %v8681_v53 = vld [vmem:[#allocation6 + $0x430] sm:$0xf0]  ;;  %v3528_v54 = vpop.f32.mrf.mxu0  ;;  %v8588_v55 = vor.u32 %v10049_v43, %v8585_v49  ;;  %v10105_v40 = vld [vmem:[#allocation6 + $0x524] sm:$0xf]  ;;  %v3475_v49 = vadd.f32 %v10789_v17, %v10778_v11  ;;  %v8223_v17 = vld [vmem:[#allocation6 + $0x88] sm:$0xf] }
 0x2b4   :  { %5361 = vmatpush.bf16.msra.mxu2 %v8524_v48  ;;  %v8460_v48 = vor.u32 %v10017_v33, %v8457_v13  ;;  %v8812_v21 = vor.u32 %v10105_v40, %v8809_v19  ;;  %v8409_v33 = vld [vmem:[#allocation6 + $0x210] sm:$0xf0]  ;;  %v10037_v13 = vld [vmem:[#allocation6 + $0x304] sm:$0xf]  ;;  %v9996_v40 = vld [vmem:[#allocation6 + $0x1b4] sm:$0xf0] }
 0x2b5   :  { %5354 = vmatpush.bf16.msra.mxu1 %v8300_v8  ;;  %v10025_v8 = vld [vmem:[#allocation6 + $0x2a4] sm:$0xf]  ;;  %v8412_v43 = vor.u32 %v10005_v32, %v8409_v33  ;;  %v9944_v32 = vld [vmem:[#allocation6 + $0x14] sm:$0xf0] }
 0x2b6   :  { %v8492_v20 = vor.u32 %v10025_v8, %v8489_v4  ;;  %v8793_v8 = vld [vmem:[#allocation6 + $0x510] sm:$0xf0]  ;;  %v8271_v4 = vld [vmem:[#allocation6 + $0xe8] sm:$0xf] }
 0x2b7   :  { %5342 = vmatpush.bf16.msra.mxu0 %v8156_v18  ;;  %5375 = vmatpush.bf16.msra.mxu3 %v8636_v60  ;;  %v10021_v18 = vld [vmem:[#allocation6 + $0x284] sm:$0xf] }
 0x2b8   :  { %5362 = vmatpush.bf16.msra.mxu2 %v8508_v58  ;;  %v8476_v22 = vor.u32 %v10021_v18, %v8473_v0  ;;  %v8441_v58 = vld [vmem:[#allocation6 + $0x250] sm:$0xf0]  ;;  %v10069_v60 = vld [vmem:[#allocation6 + $0x404] sm:$0xf] }
 0x2b9   :  { %5355 = vmatpush.bf16.msra.mxu1 %v8284_v39  ;;  %v10053_v39 = vld [vmem:[#allocation6 + $0x384] sm:$0xf]  ;;  %v8444_v62 = vor.u32 %v10013_v41, %v8441_v58  ;;  %v8553_v0 = vld [vmem:[#allocation6 + $0x330] sm:$0xf0]  ;;  %v9960_v41 = vld [vmem:[#allocation6 + $0x94] sm:$0xf0] }
 0x2ba   :  { %5343 = vmatmul.bf16.vlgmr.msra.gmra.mxu0 %v10760_v24  ;;  %v3554_v63 = vpop.f32.mrf.mxu2 }
 0x2bb   :  { %5387 = vmatpush.bf16.msrb.mxu0 %v8780_v42  ;;  %v10801_v42 = vpop.f32.mrf.mxu1  ;;  %5376 = vmatpush.bf16.msra.mxu3 %v8620_v29  ;;  %v3567_v29 = vpop.f32.mrf.mxu3 }
 0x2bc   :  { %5356 = vmatmul.bf16.vlgmr.msra.gmra.mxu1 %v10762_v47  ;;  %5363 = vmatpush.bf16.msra.mxu2 %v8492_v20  ;;  %v10004_v20 = vld [vmem:[#allocation6 + $0x1f4] sm:$0xf0] }
 0x2bd   :  { %5400 = vmatpush.bf16.msrb.mxu1 %v8908_v26  ;;  %v8601_v26 = vld [vmem:[#allocation6 + $0x390] sm:$0xf0] }
 0x2be   :  { %v8604_v27 = vor.u32 %v10053_v39, %v8601_v26  ;;  %v619_v39 = vperm.slane %v10747_v23, 7 }
 0x2bf   :  { %5388 = vmatpush.bf16.msrb.mxu0 %v8764_v44  ;;  %v8700_v44 = vor.u32 %v10077_v52, %v8697_v30  ;;  %v9968_v52 = vld [vmem:[#allocation6 + $0xd4] sm:$0xf0]  ;;  %v8383_v30 = vld [vmem:[#allocation6 + $0x1c8] sm:$0xf] }
 0x2c0   :  { %5364 = vmatpush.bf16.msra.mxu2 %v8476_v22  ;;  %5377 = vmatpush.bf16.msra.mxu3 %v8604_v27  ;;  %v8796_v22 = vor.u32 %v10101_v5, %v8793_v8  ;;  %v8556_v27 = vor.u32 %v10041_v14, %v8553_v0  ;;  %v3540_v54 = vadd.f32 %v10801_v42, %v619_v39  ;;  %v9992_v42 = vld [vmem:[#allocation6 + $0x194] sm:$0xf0] }
 0x2c1   :  { %5401 = vmatpush.bf16.msrb.mxu1 %v8892_v6  ;;  %v10073_v6 = vld [vmem:[#allocation6 + $0x424] sm:$0xf]  ;;  %v9988_v8 = vld [vmem:[#allocation6 + $0x174] sm:$0xf0] }
 0x2c2   :  { %v3553_v58 = vadd.f32 %v10803_v34, %v3540_v54  ;;  %v9948_v0 = vld [vmem:[#allocation6 + $0x34] sm:$0xf0] }
 0x2c3   :  { %5389 = vmatpush.bf16.msrb.mxu0 %v8748_v37  ;;  %v3541_v57 = vpop.f32.mrf.mxu1  ;;  %v8684_v37 = vor.u32 %v10073_v6, %v8681_v53  ;;  %v8239_v6 = vld [vmem:[#allocation6 + $0xa8] sm:$0xf]  ;;  %v9964_v53 = vld [vmem:[#allocation6 + $0xb4] sm:$0xf0] }
 0x2c4   :  { %5365 = vmatpush.bf16.msra.mxu2 %v8460_v48  ;;  %5378 = vmatpush.bf16.msra.mxu3 %v8588_v55  ;;  %v8367_v55 = vld [vmem:[#allocation6 + $0x1a8] sm:$0xf]  ;;  %v8240_v19 = vor.u32 %v9964_v53, %v8239_v6  ;;  %v3488_v57 = vadd.f32 %v10791_v59, %v3475_v49 }
 0x2c5   :  { %5402 = vmatpush.bf16.msrb.mxu1 %v8876_v61  ;;  %v8665_v61 = vld [vmem:[#allocation6 + $0x410] sm:$0xf0]  ;;  %v8368_v11 = vor.u32 %v9996_v40, %v8367_v55  ;;  %v8335_v59 = vld [vmem:[#allocation6 + $0x168] sm:$0xf] }
 0x2c6   :  { %v8668_v16 = vor.u32 %v10069_v60, %v8665_v61  ;;  %v3501_v60 = vadd.f32 %v10793_v36, %v3488_v57  ;;  %v8352_v61 = vor.u32 %v9992_v42, %v8351_v31  ;;  %v8319_v36 = vld [vmem:[#allocation6 + $0x148] sm:$0xf]  ;;  %v10161_v31 = vld [vmem:[#allocation6 + $0x6e4] sm:$0xf]  ;;  %v9033_v42 = vld [vmem:[#allocation6 + $0x6f0] sm:$0xf0] }
 0x2c7   :  { %5390 = vmatpush.bf16.msrb.mxu0 %v8732_v38  ;;  %v9972_v38 = vld [vmem:[#allocation6 + $0xf4] sm:$0xf0]  ;;  %v8911_v49 = vld [vmem:[#allocation6 + $0x5e8] sm:$0xf] }
 0x2c8   :  { %5366 = vmatpush.bf16.msra.mxu2 %v8444_v62  ;;  %5379 = vmatpush.bf16.msra.mxu3 %v8572_v9  ;;  %v8272_v26 = vor.u32 %v9972_v38, %v8271_v4  ;;  %v8207_v62 = vld [vmem:[#allocation6 + $0x68] sm:$0xf]  ;;  %v3514_v34 = vadd.f32 %v10795_v45, %v3501_v60 }
 0x2c9   :  { %5403 = vmatpush.bf16.msrb.mxu1 %v8860_v2  ;;  %v8425_v2 = vld [vmem:[#allocation6 + $0x230] sm:$0xf0]  ;;  %v8208_v38 = vor.u32 %v9956_v1, %v8207_v62  ;;  %v8303_v45 = vld [vmem:[#allocation6 + $0x128] sm:$0xf] }
 0x2ca   :  { %v8428_v18 = vor.u32 %v10009_v10, %v8425_v2  ;;  %v9952_v10 = vld [vmem:[#allocation6 + $0x54] sm:$0xf0]  ;;  %v3527_v14 = vadd.f32 %v10799_v12, %v3514_v34  ;;  %v3652_v12 = vld [vmem:[%s10915_s1 + $0x18] sm:$0xff]  ;;  %v8767_v1 = vld [vmem:[#allocation6 + $0x4c8] sm:$0xf] }
 0x2cb   :  { %5391 = vmatpush.bf16.msrb.mxu0 %v8716_v3  ;;  %v8255_v3 = vld [vmem:[#allocation6 + $0xc8] sm:$0xf]  ;;  %v9984_v2 = vld [vmem:[#allocation6 + $0x154] sm:$0xf0]  ;;  %v3667_v54 = vunpack.c.l.bf16 %v3652_v12  ;;  %v9161_v62 = vld [vmem:[#allocation6 + $0x7f0] sm:$0xf0] }
 0x2cc   :  { %5367 = vmatpush.bf16.msra.mxu2 %v8428_v18  ;;  %5380 = vmatpush.bf16.msra.mxu3 %v8556_v27  ;;  %v8256_v23 = vor.u32 %v9968_v52, %v8255_v3  ;;  %v8320_v29 = vor.u32 %v9984_v2, %v8319_v36  ;;  %v8175_v18 = vld [vmem:[#allocation6 + $0x28] sm:$0xf]  ;;  %v9980_v3 = vld [vmem:[#allocation6 + $0x134] sm:$0xf0]  ;;  %v3635_v27 = vmul.f32 0.2, %v3527_v14 }
 0x2cd   :  { %5404 = vmatpush.bf16.msrb.mxu1 %v8844_v28  ;;  %v8400_v28 = vor.u32 %v10004_v20, %v8399_v35  ;;  %v8336_v35 = vor.u32 %v9988_v8, %v8335_v59  ;;  %v8191_v20 = vld [vmem:[#allocation6 + $0x48] sm:$0xf]  ;;  %vm3627_vm6 = vcmp.ge.f32.partialorder %v3527_v14, 0.0  ;;  %v8304_v33 = vor.u32 %v9980_v3, %v8303_v45  ;;  %v10128_v59 = vld [vmem:[#allocation6 + $0x5d4] sm:$0xf0] }
 0x2ce   :  { %v3643_v6 = vsel %vm3627_vm6, %v3527_v14, %v3635_v27  ;;  %v10157_v34 = vld [vmem:[#allocation6 + $0x6c4] sm:$0xf]  ;;  %v9001_v3 = vld [vmem:[#allocation6 + $0x6b0] sm:$0xf0] }
 0x2cf   :  { %5392 = vmatpush.bf16.msrb.mxu0 %v8700_v44  ;;  %v8537_v44 = vld [vmem:[#allocation6 + $0x310] sm:$0xf0]  ;;  %v10153_v45 = vld [vmem:[#allocation6 + $0x6a4] sm:$0xf] }
 0x2d0   :  { %v8540_v48 = vor.u32 %v10037_v13, %v8537_v44  ;;  %5368 = vmatpush.bf16.msra.mxu2 %v8412_v43  ;;  %v8287_v13 = vld [vmem:[#allocation6 + $0x108] sm:$0xf]  ;;  %v9976_v43 = vld [vmem:[#allocation6 + $0x114] sm:$0xf0] }
 0x2d1   :  { %5405 = vmatpush.bf16.msrb.mxu1 %v8828_v50  ;;  %v8384_v50 = vor.u32 %v10000_v7, %v8383_v30  ;;  %v8176_v30 = vor.u32 %v9948_v0, %v8175_v18  ;;  %v8159_v7 = vld [vmem:[#allocation6 + $0x8] sm:$0xf]  ;;  %v10124_v0 = vld [vmem:[#allocation6 + $0x5b4] sm:$0xf0] }
 0x2d2   :  { %5381 = vmatpush.bf16.msra.mxu3 %v8540_v48  ;;  %v8783_v44 = vld [vmem:[#allocation6 + $0x4e8] sm:$0xf]  ;;  %v10100_v48 = vld [vmem:[#allocation6 + $0x4f4] sm:$0xf0]  ;;  %v8160_v55 = vor.u32 %v9944_v32, %v8159_v7 }
 0x2d3   :  { %5393 = vmatpush.bf16.msrb.mxu0 %v8684_v37  ;;  %v8224_v37 = vor.u32 %v9960_v41, %v8223_v17  ;;  %v8784_v17 = vor.u32 %v10100_v48, %v8783_v44  ;;  %v8879_v18 = vld [vmem:[#allocation6 + $0x5a8] sm:$0xf]  ;;  %v10088_v7 = vld [vmem:[#allocation6 + $0x494] sm:$0xf0]  ;;  %v10149_v44 = vld [vmem:[#allocation6 + $0x684] sm:$0xf] }
 0x2d4   :  { %v8863_v32 = vld [vmem:[#allocation6 + $0x588] sm:$0xf] }
 0x2d5   :  { %5406 = vmatpush.bf16.msrb.mxu1 %v8812_v21  ;;  %v3566_v21 = vadd.f32 %v10805_v15, %v3553_v58  ;;  %v8192_v15 = vor.u32 %v9952_v10, %v8191_v20  ;;  %v10189_v20 = vld [vmem:[#allocation6 + $0x7c4] sm:$0xf] }
 0x2d7   :  { %5394 = vmatpush.bf16.msrb.mxu0 %v8668_v16  ;;  %v3578_v5 = vpop.f32.mrf.mxu0 }
 0x2d8   :  { %v3579_v9 = vadd.f32 %v3578_v5, %v3566_v21  ;;  %v10096_v21 = vld [vmem:[#allocation6 + $0x4d4] sm:$0xf0]  ;;  %v8895_v5 = vld [vmem:[#allocation6 + $0x5c8] sm:$0xf] }
 0x2d9   :  { %5407 = vmatpush.bf16.msrb.mxu1 %v8796_v22  ;;  %v3591_v4 = vpop.f32.mrf.mxu1  ;;  %v8768_v2 = vor.u32 %v10096_v21, %v8767_v1  ;;  %v8896_v14 = vor.u32 %v10128_v59, %v8895_v5  ;;  %v8703_v1 = vld [vmem:[#allocation6 + $0x448] sm:$0xf]  ;;  %v10080_v21 = vld [vmem:[#allocation6 + $0x454] sm:$0xf0] }
 0x2da   :  { %5395 = vmatmul.bf16.vlgmr.msrb.gmra.mxu0 %v10783_v51  ;;  %v3592_v16 = vadd.f32 %v3591_v4, %v3579_v9  ;;  %v9036_v9 = vor.u32 %v10161_v31, %v9033_v42  ;;  %v10145_v31 = vld [vmem:[#allocation6 + $0x664] sm:$0xf]  ;;  %v8969_v42 = vld [vmem:[#allocation6 + $0x670] sm:$0xf0]  ;;  %v8831_v5 = vld [vmem:[#allocation6 + $0x548] sm:$0xf] }
 0x2db   :  { %5439 = vmatpush.bf16.msra.mxu0 %v8272_v26  ;;  %v10112_v59 = vld [vmem:[#allocation6 + $0x554] sm:$0xf0] }
 0x2dc   :  { %5408 = vmatmul.bf16.vlgmr.msrb.gmra.mxu1 %v10785_v56 }
 0x2dd   :  { %5452 = vmatpush.bf16.msra.mxu1 %v8400_v28 }
 0x2df   :  { %5440 = vmatpush.bf16.msra.mxu0 %v8256_v23  ;;  %v3580_v26 = vpop.f32.mrf.mxu0 }
 0x2e1   :  { %5453 = vmatpush.bf16.msra.mxu1 %v8384_v50  ;;  %v3604_v63 = vpop.f32.mrf.mxu2  ;;  %v3593_v28 = vpop.f32.mrf.mxu1  ;;  %v10132_v50 = vld [vmem:[#allocation6 + $0x5f4] sm:$0xf0] }
 0x2e2   :  { %v3605_v39 = vadd.f32 %v3604_v63, %v3592_v16  ;;  %v8912_v58 = vor.u32 %v10132_v50, %v8911_v49  ;;  %v9145_v16 = vld [vmem:[#allocation6 + $0x7d0] sm:$0xf0]  ;;  %v10828_v63 = vld [vmem:[#allocation7] sm:$0xf]  ;;  %v8880_v28 = vor.u32 %v10124_v0, %v8879_v18  ;;  %v8687_v18 = vld [vmem:[#allocation6 + $0x428] sm:$0xf] }
 0x2e3   :  { %5441 = vmatpush.bf16.msra.mxu0 %v8240_v19  ;;  %v3617_v22 = vpop.f32.mrf.mxu3  ;;  %v3668_v19 = vunpack.c.h.bf16 %v3652_v12  ;;  %v3943_v26 = vperm.slane %v10828_v63, 0  ;;  %v9129_v12 = vld [vmem:[#allocation6 + $0x7b0] sm:$0xf0] }
 0x2e4   :  { %v3618_v52 = vadd.f32 %v3617_v22, %v3605_v39  ;;  %v9148_v22 = vor.u32 %v10189_v20, %v9145_v16  ;;  %v8832_v16 = vor.u32 %v10112_v59, %v8831_v5  ;;  %v8385_v5 = vld [vmem:[#allocation6 + $0x1d8] sm:$0xf0] }
 0x2e5   :  { %5454 = vmatpush.bf16.msra.mxu1 %v8368_v11  ;;  %v8288_v11 = vor.u32 %v9976_v43, %v8287_v13  ;;  %v9004_v13 = vor.u32 %v10153_v45, %v9001_v3 }
 0x2e6   :  { %vm3628_vm7 = vcmp.ge.f32.partialorder %v3618_v52, 0.0  ;;  %v3636_v23 = vmul.f32 0.2, %v3618_v52 }
 0x2e7   :  { %5442 = vmatpush.bf16.msra.mxu0 %v8224_v37 }
 0x2e8   :  { %v3644_v53 = vsel %vm3628_vm7, %v3618_v52, %v3636_v23  ;;  %v10185_v52 = vld [vmem:[#allocation6 + $0x7a4] sm:$0xf]  ;;  %v8985_v23 = vld [vmem:[#allocation6 + $0x690] sm:$0xf0] }
 0x2e9   :  { %5455 = vmatpush.bf16.msra.mxu1 %v8352_v61  ;;  %v3648_v40 = vpack.c.bf16 %v3644_v53, %v3643_v6  ;;  %v3606_v57 = vpop.f32.mrf.mxu2  ;;  %v10193_v61 = vld [vmem:[#allocation6 + $0x7e4] sm:$0xf]  ;;  %v9132_v43 = vor.u32 %v10185_v52, %v9129_v12  ;;  %v9113_v53 = vld [vmem:[#allocation6 + $0x790] sm:$0xf0] }
 0x2ea   :  { %v10181_v6 = vld [vmem:[#allocation6 + $0x784] sm:$0xf]  ;;  %v8847_v57 = vld [vmem:[#allocation6 + $0x568] sm:$0xf]  ;;  %v8937_v52 = vld [vmem:[#allocation6 + $0x630] sm:$0xf0] }
 0x2eb   :  { %5443 = vmatpush.bf16.msra.mxu0 %v8208_v38  ;;  %v3619_v41 = vpop.f32.mrf.mxu3  ;;  %v3659_v37 = vunpack.c.l.bf16 %v3648_v40  ;;  %v3660_v60 = vunpack.c.h.bf16 %v3648_v40  ;;  %v9164_v38 = vor.u32 %v10193_v61, %v9161_v62  ;;  %v10177_v61 = vld [vmem:[#allocation6 + $0x764] sm:$0xf]  ;;  %v9097_v62 = vld [vmem:[#allocation6 + $0x770] sm:$0xf0] }
 0x2ec   :  { %v8988_v41 = vor.u32 %v10149_v44, %v8985_v23  ;;  %v10169_v12 = vld [vmem:[#allocation6 + $0x724] sm:$0xf]  ;;  %v10104_v44 = vld [vmem:[#allocation6 + $0x514] sm:$0xf0]  ;;  %v9970_v23 = vld [vmem:[#allocation6 + $0xec] sm:$0xf] }
 0x2ed   :  { %5456 = vmatpush.bf16.msra.mxu1 %v8336_v35  ;;  %v3675_v8 = vmul.f32 %v3667_v54, %v3659_v37  ;;  %v3676_v4 = vmul.f32 %v3668_v19, %v3660_v60  ;;  %v9017_v35 = vld [vmem:[#allocation6 + $0x6d0] sm:$0xf0]  ;;  %v8719_v54 = vld [vmem:[#allocation6 + $0x468] sm:$0xf]  ;;  %v10084_v19 = vld [vmem:[#allocation6 + $0x474] sm:$0xf0] }
 0x2ee   :  { %v9020_v39 = vor.u32 %v10157_v34, %v9017_v35  ;;  %v8720_v37 = vor.u32 %v10084_v19, %v8719_v54  ;;  %v8953_v34 = vld [vmem:[#allocation6 + $0x650] sm:$0xf0] }
 0x2ef   :  { %5444 = vmatpush.bf16.msra.mxu0 %v8192_v15  ;;  %v10823_v10 = vpack.c.bf16 %v3675_v8, %v3675_v8  ;;  %v10825_v36 = vpack.c.bf16 %v3676_v4, %v3676_v4  ;;  %v8751_v15 = vld [vmem:[#allocation6 + $0x4a8] sm:$0xf]  ;;  %v8972_v4 = vor.u32 %v10145_v31, %v8969_v42  ;;  %v9049_v31 = vld [vmem:[#allocation6 + $0x710] sm:$0xf0] }
 0x2f0   :  { %v8527_v42 = vld [vmem:[#allocation6 + $0x2e8] sm:$0xf] }
 0x2f1   :  { %5457 = vmatpush.bf16.msra.mxu1 %v8320_v29  ;;  %v10092_v29 = vld [vmem:[#allocation6 + $0x4b4] sm:$0xf0]  ;;  %5317 = vmatmul.bf16.vlgmr.msrb.gmra.mxu2 %v10823_v10 }
 0x2f2   :  { %5330 = vmatmul.bf16.vlgmr.msrb.gmra.mxu3 %v10825_v36  ;;  %5413 = vmatpush.bf16.msrb.mxu2 %v9036_v9  ;;  %v8752_v27 = vor.u32 %v10092_v29, %v8751_v15  ;;  %v9100_v9 = vor.u32 %v10177_v61, %v9097_v62  ;;  %v10173_v15 = vld [vmem:[#allocation6 + $0x744] sm:$0xf]  ;;  %v9081_v29 = vld [vmem:[#allocation6 + $0x750] sm:$0xf0]  ;;  %v10068_v61 = vld [vmem:[#allocation6 + $0x3f4] sm:$0xf0] }
 0x2f3   :  { %5445 = vmatpush.bf16.msra.mxu0 %v8176_v30  ;;  %5426 = vmatpush.bf16.msrb.mxu3 %v9164_v38  ;;  %v8735_v30 = vld [vmem:[#allocation6 + $0x488] sm:$0xf]  ;;  %v10141_v38 = vld [vmem:[#allocation6 + $0x644] sm:$0xf]  ;;  %v9966_v62 = vld [vmem:[#allocation6 + $0xcc] sm:$0xf] }
 0x2f4   :  { %v8736_v49 = vor.u32 %v10088_v7, %v8735_v30  ;;  %v8956_v3 = vor.u32 %v10141_v38, %v8953_v34  ;;  %v8511_v38 = vld [vmem:[#allocation6 + $0x2c8] sm:$0xf]  ;;  %v10032_v34 = vld [vmem:[#allocation6 + $0x2d4] sm:$0xf0] }
 0x2f5   :  { %5458 = vmatpush.bf16.msra.mxu1 %v8304_v33  ;;  %v10120_v33 = vld [vmem:[#allocation6 + $0x594] sm:$0xf0] }
 0x2f6   :  { %5414 = vmatpush.bf16.msrb.mxu2 %v9020_v39  ;;  %v8864_v50 = vor.u32 %v10120_v33, %v8863_v32  ;;  %v10076_v39 = vld [vmem:[#allocation6 + $0x434] sm:$0xf0]  ;;  %v9065_v32 = vld [vmem:[#allocation6 + $0x730] sm:$0xf0]  ;;  %v8671_v33 = vld [vmem:[#allocation6 + $0x408] sm:$0xf] }
 0x2f7   :  { %5446 = vmatpush.bf16.msra.mxu0 %v8160_v55  ;;  %5427 = vmatpush.bf16.msrb.mxu3 %v9148_v22  ;;  %v5240_v48 = vpop.f32.mrf.mxu0  ;;  %v8815_v22 = vld [vmem:[#allocation6 + $0x528] sm:$0xf]  ;;  %v8688_v30 = vor.u32 %v10076_v39, %v8687_v18  ;;  %v9068_v54 = vor.u32 %v10169_v12, %v9065_v32  ;;  %v8369_v18 = vld [vmem:[#allocation6 + $0x1b8] sm:$0xf0]  ;;  %v9958_v12 = vld [vmem:[#allocation6 + $0x8c] sm:$0xf] }
 0x2f8   :  { %v5241_v55 = vadd.f32 %v5240_v48, %v3943_v26  ;;  %v10108_v26 = vld [vmem:[#allocation6 + $0x534] sm:$0xf0]  ;;  %v8273_v48 = vld [vmem:[#allocation6 + $0xf8] sm:$0xf0] }
 0x2f9   :  { %5459 = vmatpush.bf16.msra.mxu1 %v8288_v11  ;;  %v5253_v40 = vpop.f32.mrf.mxu1  ;;  %v10116_v11 = vld [vmem:[#allocation6 + $0x574] sm:$0xf0]  ;;  %v8816_v7 = vor.u32 %v10108_v26, %v8815_v22  ;;  %v8495_v22 = vld [vmem:[#allocation6 + $0x2a8] sm:$0xf]  ;;  %v8353_v32 = vld [vmem:[#allocation6 + $0x198] sm:$0xf0] }
 0x2fa   :  { %5447 = vmatmul.bf16.vlgmr.msra.gmra.mxu0 %v10760_v24  ;;  %5415 = vmatpush.bf16.msrb.mxu2 %v9004_v13  ;;  %v8848_v60 = vor.u32 %v10116_v11, %v8847_v57  ;;  %v10072_v13 = vld [vmem:[#allocation6 + $0x414] sm:$0xf0]  ;;  %v10133_v57 = vld [vmem:[#allocation6 + $0x604] sm:$0xf]  ;;  %v8921_v11 = vld [vmem:[#allocation6 + $0x610] sm:$0xf0] }
 0x2fb   :  { %5491 = vmatpush.bf16.msrb.mxu0 %v8784_v17  ;;  %v5254_v17 = vadd.f32 %v5253_v40, %v5241_v55  ;;  %5428 = vmatpush.bf16.msrb.mxu3 %v9132_v43  ;;  %v8799_v43 = vld [vmem:[#allocation6 + $0x508] sm:$0xf]  ;;  %v8672_v40 = vor.u32 %v10072_v13, %v8671_v33  ;;  %v8924_v59 = vor.u32 %v10133_v57, %v8921_v11  ;;  %v10028_v26 = vld [vmem:[#allocation6 + $0x2b4] sm:$0xf0]  ;;  %v8337_v57 = vld [vmem:[#allocation6 + $0x178] sm:$0xf0] }
 0x2fc   :  { %5460 = vmatmul.bf16.vlgmr.msra.gmra.mxu1 %v10762_v47  ;;  %v8800_v19 = vor.u32 %v10104_v44, %v8799_v43  ;;  %v8496_v33 = vor.u32 %v10028_v26, %v8495_v22  ;;  %v8479_v43 = vld [vmem:[#allocation6 + $0x288] sm:$0xf]  ;;  %v10024_v44 = vld [vmem:[#allocation6 + $0x294] sm:$0xf0] }
 0x2fd   :  { %5504 = vmatpush.bf16.msrb.mxu1 %v8912_v58  ;;  %v9116_v58 = vor.u32 %v10181_v6, %v9113_v53  ;;  %v10012_v22 = vld [vmem:[#allocation6 + $0x234] sm:$0xf0]  ;;  %v8559_v26 = vld [vmem:[#allocation6 + $0x328] sm:$0xf] }
 0x2fe   :  { %5416 = vmatpush.bf16.msrb.mxu2 %v8988_v41  ;;  %v8276_v41 = vor.u32 %v9970_v23, %v8273_v48 }
 0x2ff   :  { %5492 = vmatpush.bf16.msrb.mxu0 %v8768_v2  ;;  %5429 = vmatpush.bf16.msrb.mxu3 %v9116_v58  ;;  %v5242_v2 = vpop.f32.mrf.mxu0 }
 0x300   :  { %v8639_v2 = vld [vmem:[#allocation6 + $0x3c8] sm:$0xf] }
 0x301   :  { %5505 = vmatpush.bf16.msrb.mxu1 %v8896_v14  ;;  %v5266_v8 = vpop.f32.mrf.mxu2  ;;  %v8704_v14 = vor.u32 %v10080_v21, %v8703_v1  ;;  %v5255_v0 = vpop.f32.mrf.mxu1  ;;  %5369 = vmatmul.bf16.vlgmr.msra.gmra.mxu2 %v10764_v25  ;;  %v8257_v1 = vld [vmem:[#allocation6 + $0xd8] sm:$0xf0]  ;;  %v9998_v21 = vld [vmem:[#allocation6 + $0x1cc] sm:$0xf] }
 0x302   :  { %v5267_v35 = vadd.f32 %v5266_v8, %v5254_v17  ;;  %5382 = vmatmul.bf16.vlgmr.msra.gmra.mxu3 %v10766_v46  ;;  %5417 = vmatpush.bf16.msrb.mxu2 %v8972_v4  ;;  %v10165_v17 = vld [vmem:[#allocation6 + $0x704] sm:$0xf]  ;;  %v8512_v0 = vor.u32 %v10032_v34, %v8511_v38 }
 0x303   :  { %5493 = vmatpush.bf16.msrb.mxu0 %v8752_v27  ;;  %v5279_v20 = vpop.f32.mrf.mxu3  ;;  %5430 = vmatpush.bf16.msrb.mxu3 %v9100_v9  ;;  %v9084_v27 = vor.u32 %v10173_v15, %v9081_v29  ;;  %v9052_v8 = vor.u32 %v10165_v17, %v9049_v31  ;;  %v8241_v15 = vld [vmem:[#allocation6 + $0xb8] sm:$0xf0]  ;;  %v9994_v29 = vld [vmem:[#allocation6 + $0x1ac] sm:$0xf]  ;;  %v8480_v17 = vor.u32 %v10024_v44, %v8479_v43  ;;  %v10020_v31 = vld [vmem:[#allocation6 + $0x274] sm:$0xf0] }
 0x304   :  { %v10834_v45 = vadd.f32 %v5279_v20, %v5267_v35  ;;  %v8260_v35 = vor.u32 %v9966_v62, %v8257_v1  ;;  %v8388_v20 = vor.u32 %v9998_v21, %v8385_v5  ;;  %v9950_v62 = vld [vmem:[#allocation6 + $0x4c] sm:$0xf]  ;;  %v8321_v21 = vld [vmem:[#allocation6 + $0x158] sm:$0xf0] }
 0x305   :  { %5506 = vmatpush.bf16.msrb.mxu1 %v8880_v28  ;;  %v10137_v28 = vld [vmem:[#allocation6 + $0x624] sm:$0xf]  ;;  %v9982_v1 = vld [vmem:[#allocation6 + $0x14c] sm:$0xf]  ;;  %v8913_v43 = vld [vmem:[#allocation6 + $0x5f8] sm:$0xf0] }
 0x306   :  { %5418 = vmatpush.bf16.msrb.mxu2 %v8956_v3  ;;  %v8940_v53 = vor.u32 %v10137_v28, %v8937_v52  ;;  %v8623_v28 = vld [vmem:[#allocation6 + $0x3a8] sm:$0xf]  ;;  %v10060_v52 = vld [vmem:[#allocation6 + $0x3b4] sm:$0xf0]  ;;  %v8324_v34 = vor.u32 %v9982_v1, %v8321_v21 }
 0x307   :  { %5494 = vmatpush.bf16.msrb.mxu0 %v8736_v49  ;;  %v10002_v49 = vld [vmem:[#allocation6 + $0x1ec] sm:$0xf]  ;;  %5431 = vmatpush.bf16.msrb.mxu3 %v9084_v27  ;;  %v8372_v27 = vor.u32 %v9994_v29, %v8369_v18  ;;  %v8624_v13 = vor.u32 %v10060_v52, %v8623_v28  ;;  %v8305_v29 = vld [vmem:[#allocation6 + $0x138] sm:$0xf0]  ;;  %v10044_v28 = vld [vmem:[#allocation6 + $0x334] sm:$0xf0] }
 0x308   :  { %v9942_v52 = vld [vmem:[#allocation6 + $0xc] sm:$0xf]  ;;  %v9023_v1 = vld [vmem:[#allocation6 + $0x6c8] sm:$0xf]  ;;  %v10160_v21 = vld [vmem:[#allocation6 + $0x6d4] sm:$0xf0] }
 0x309   :  { %5507 = vmatpush.bf16.msrb.mxu1 %v8864_v50  ;;  %v8401_v50 = vld [vmem:[#allocation6 + $0x1f8] sm:$0xf0]  ;;  %v5268_v6 = vpop.f32.mrf.mxu2 }
 0x30a   :  { %v8404_v58 = vor.u32 %v10002_v49, %v8401_v50  ;;  %5419 = vmatpush.bf16.msrb.mxu2 %v8940_v53  ;;  %v8607_v50 = vld [vmem:[#allocation6 + $0x388] sm:$0xf]  ;;  %v10056_v6 = vld [vmem:[#allocation6 + $0x394] sm:$0xf0]  ;;  %v9954_v53 = vld [vmem:[#allocation6 + $0x6c] sm:$0xf] }
 0x30b   :  { %5495 = vmatpush.bf16.msrb.mxu0 %v8720_v37  ;;  %v5281_v55 = vpop.f32.mrf.mxu3  ;;  %v10036_v37 = vld [vmem:[#allocation6 + $0x2f4] sm:$0xf0]  ;;  %5432 = vmatpush.bf16.msrb.mxu3 %v9068_v54 }
 0x30c   :  { %v8528_v4 = vor.u32 %v10036_v37, %v8527_v42 }
 0x30d   :  { %5508 = vmatpush.bf16.msrb.mxu1 %v8848_v60  ;;  %v8655_v60 = vld [vmem:[#allocation6 + $0x3e8] sm:$0xf] }
 0x30e   :  { %v8656_v9 = vor.u32 %v10068_v61, %v8655_v60  ;;  %5420 = vmatpush.bf16.msrb.mxu2 %v8924_v59  ;;  %v8591_v60 = vld [vmem:[#allocation6 + $0x368] sm:$0xf]  ;;  %v10052_v61 = vld [vmem:[#allocation6 + $0x374] sm:$0xf0] }
 0x30f   :  { %5496 = vmatpush.bf16.msrb.mxu0 %v8704_v14  ;;  %v10064_v14 = vld [vmem:[#allocation6 + $0x3d4] sm:$0xf0]  ;;  %5433 = vmatpush.bf16.msrb.mxu3 %v9052_v8  ;;  %v8592_v59 = vor.u32 %v10052_v61, %v8591_v60  ;;  %v8447_v8 = vld [vmem:[#allocation6 + $0x248] sm:$0xf] }
 0x310   :  { %v8640_v39 = vor.u32 %v10064_v14, %v8639_v2  ;;  %v9946_v2 = vld [vmem:[#allocation6 + $0x2c] sm:$0xf] }
 0x311   :  { %5509 = vmatpush.bf16.msrb.mxu1 %v8832_v16  ;;  %v9962_v16 = vld [vmem:[#allocation6 + $0xac] sm:$0xf]  ;;  %5421 = vmatmul.bf16.vlgmr.msrb.gmra.mxu2 %v10823_v10 }
 0x312   :  { %5465 = vmatpush.bf16.msra.mxu2 %v8528_v4  ;;  %v8244_v3 = vor.u32 %v9962_v16, %v8241_v15  ;;  %5434 = vmatmul.bf16.vlgmr.msrb.gmra.mxu3 %v10825_v36  ;;  %v10016_v4 = vld [vmem:[#allocation6 + $0x254] sm:$0xf0]  ;;  %v8177_v16 = vld [vmem:[#allocation6 + $0x38] sm:$0xf0]  ;;  %v9978_v15 = vld [vmem:[#allocation6 + $0x12c] sm:$0xf] }
 0x313   :  { %5497 = vmatpush.bf16.msrb.mxu0 %v8688_v30  ;;  %5478 = vmatpush.bf16.msra.mxu3 %v8656_v9  ;;  %v8225_v30 = vld [vmem:[#allocation6 + $0x98] sm:$0xf0]  ;;  %v8448_v18 = vor.u32 %v10016_v4, %v8447_v8  ;;  %v9151_v8 = vld [vmem:[#allocation6 + $0x7c8] sm:$0xf]  ;;  %v10192_v4 = vld [vmem:[#allocation6 + $0x7d4] sm:$0xf0] }
 0x314   :  { %v8228_v48 = vor.u32 %v9958_v12, %v8225_v30  ;;  %v8161_v12 = vld [vmem:[#allocation6 + $0x18] sm:$0xf0]  ;;  %v9974_v30 = vld [vmem:[#allocation6 + $0x10c] sm:$0xf] }
 0x315   :  { %5510 = vmatpush.bf16.msrb.mxu1 %v8816_v7  ;;  %v9990_v7 = vld [vmem:[#allocation6 + $0x18c] sm:$0xf] }
 0x316   :  { %5466 = vmatpush.bf16.msra.mxu2 %v8512_v0  ;;  %v8356_v49 = vor.u32 %v9990_v7, %v8353_v32  ;;  %v8289_v7 = vld [vmem:[#allocation6 + $0x118] sm:$0xf0]  ;;  %v10098_v32 = vld [vmem:[#allocation6 + $0x4ec] sm:$0xf] }
 0x317   :  { %5498 = vmatpush.bf16.msrb.mxu0 %v8672_v40  ;;  %5479 = vmatpush.bf16.msra.mxu3 %v8640_v39  ;;  %v5292_v23 = vpop.f32.mrf.mxu0  ;;  %v8209_v40 = vld [vmem:[#allocation6 + $0x78] sm:$0xf0]  ;;  %v8431_v39 = vld [vmem:[#allocation6 + $0x228] sm:$0xf] }
 0x318   :  { %v5293_v54 = vadd.f32 %v5292_v23, %v10834_v45  ;;  %v8212_v42 = vor.u32 %v9954_v53, %v8209_v40  ;;  %v8193_v45 = vld [vmem:[#allocation6 + $0x58] sm:$0xf0]  ;;  %v8432_v44 = vor.u32 %v10012_v22, %v8431_v39  ;;  %v8560_v23 = vor.u32 %v10044_v28, %v8559_v26  ;;  %v8543_v53 = vld [vmem:[#allocation6 + $0x308] sm:$0xf]  ;;  %v10040_v40 = vld [vmem:[#allocation6 + $0x314] sm:$0xf0] }
 0x319   :  { %5511 = vmatpush.bf16.msrb.mxu1 %v8800_v19  ;;  %v5305_v55 = vpop.f32.mrf.mxu1  ;;  %v9986_v19 = vld [vmem:[#allocation6 + $0x16c] sm:$0xf]  ;;  %v8196_v38 = vor.u32 %v9950_v62, %v8193_v45  ;;  %v8544_v61 = vor.u32 %v10040_v40, %v8543_v53  ;;  %v8737_v39 = vld [vmem:[#allocation6 + $0x498] sm:$0xf0] }
 0x31a   :  { %5499 = vmatmul.bf16.vlgmr.msrb.gmra.mxu0 %v10783_v51  ;;  %v10843_v11 = vadd.f32 %v5305_v55, %v5293_v54  ;;  %5467 = vmatpush.bf16.msra.mxu2 %v8496_v33  ;;  %v8340_v37 = vor.u32 %v9986_v19, %v8337_v57  ;;  %v8785_v33 = vld [vmem:[#allocation6 + $0x4f8] sm:$0xf0]  ;;  %v9039_v19 = vld [vmem:[#allocation6 + $0x6e8] sm:$0xf]  ;;  %v10164_v57 = vld [vmem:[#allocation6 + $0x6f4] sm:$0xf0] }
 0x31b   :  { %5543 = vmatpush.bf16.msra.mxu0 %v8276_v41  ;;  %5480 = vmatpush.bf16.msra.mxu3 %v8624_v13  ;;  %v8608_v41 = vor.u32 %v10056_v6, %v8607_v50  ;;  %v10130_v13 = vld [vmem:[#allocation6 + $0x5ec] sm:$0xf]  ;;  %v8415_v50 = vld [vmem:[#allocation6 + $0x208] sm:$0xf]  ;;  %v10008_v6 = vld [vmem:[#allocation6 + $0x214] sm:$0xf0]  ;;  %v8788_v54 = vor.u32 %v10098_v32, %v8785_v33  ;;  %v9040_v62 = vor.u32 %v10164_v57, %v9039_v19 }
 0x31c   :  { %5512 = vmatmul.bf16.vlgmr.msrb.gmra.mxu1 %v10785_v56  ;;  %v8916_v55 = vor.u32 %v10130_v13, %v8913_v43  ;;  %v8416_v60 = vor.u32 %v10008_v6, %v8415_v50  ;;  %v10118_v22 = vld [vmem:[#allocation6 + $0x58c] sm:$0xf]  ;;  %v8865_v26 = vld [vmem:[#allocation6 + $0x598] sm:$0xf0]  ;;  %v9119_v13 = vld [vmem:[#allocation6 + $0x788] sm:$0xf] }
 0x31d   :  { %5556 = vmatpush.bf16.msra.mxu1 %v8404_v58  ;;  %v8463_v58 = vld [vmem:[#allocation6 + $0x268] sm:$0xf]  ;;  %v8868_v33 = vor.u32 %v10118_v22, %v8865_v26  ;;  %v10184_v43 = vld [vmem:[#allocation6 + $0x794] sm:$0xf0] }
 0x31e   :  { %5468 = vmatpush.bf16.msra.mxu2 %v8480_v17  ;;  %v8464_v5 = vor.u32 %v10020_v31, %v8463_v58  ;;  %v9167_v17 = vld [vmem:[#allocation6 + $0x7e8] sm:$0xf]  ;;  %v10094_v58 = vld [vmem:[#allocation6 + $0x4cc] sm:$0xf]  ;;  %v8769_v31 = vld [vmem:[#allocation6 + $0x4d8] sm:$0xf0]  ;;  %v9120_v53 = vor.u32 %v10184_v43, %v9119_v13 }
 0x31f   :  { %5544 = vmatpush.bf16.msra.mxu0 %v8260_v35  ;;  %5481 = vmatpush.bf16.msra.mxu3 %v8608_v41  ;;  %v5294_v9 = vpop.f32.mrf.mxu0  ;;  %v8575_v35 = vld [vmem:[#allocation6 + $0x348] sm:$0xf]  ;;  %v10196_v41 = vld [vmem:[#allocation6 + $0x7f4] sm:$0xf0]  ;;  %v8657_v13 = vld [vmem:[#allocation6 + $0x3f8] sm:$0xf0] }
 0x320   :  { %v9168_v45 = vor.u32 %v10196_v41, %v9167_v17  ;;  %v10090_v9 = vld [vmem:[#allocation6 + $0x4ac] sm:$0xf]  ;;  %v9103_v57 = vld [vmem:[#allocation6 + $0x768] sm:$0xf]  ;;  %v10180_v17 = vld [vmem:[#allocation6 + $0x774] sm:$0xf0] }
 0x321   :  { %5557 = vmatpush.bf16.msra.mxu1 %v8388_v20  ;;  %v10048_v20 = vld [vmem:[#allocation6 + $0x354] sm:$0xf0]  ;;  %v5307_v14 = vpop.f32.mrf.mxu1  ;;  %v10078_v41 = vld [vmem:[#allocation6 + $0x44c] sm:$0xf] }
 0x322   :  { %5469 = vmatpush.bf16.msra.mxu2 %v8464_v5  ;;  %v8576_v0 = vor.u32 %v10048_v20, %v8575_v35  ;;  %v8772_v5 = vor.u32 %v10094_v58, %v8769_v31  ;;  %v8881_v35 = vld [vmem:[#allocation6 + $0x5b8] sm:$0xf0]  ;;  %v9024_v20 = vor.u32 %v10160_v21, %v9023_v1  ;;  %v3944_v14 = vperm.slane %v10828_v63, 1  ;;  %v10110_v31 = vld [vmem:[#allocation6 + $0x54c] sm:$0xf] }
 0x323   :  { %5545 = vmatpush.bf16.msra.mxu0 %v8244_v3  ;;  %5482 = vmatpush.bf16.msra.mxu3 %v8592_v59  ;;  %v8180_v3 = vor.u32 %v9946_v2, %v8177_v16  ;;  %v9152_v2 = vor.u32 %v10192_v4, %v9151_v8  ;;  %v9007_v16 = vld [vmem:[#allocation6 + $0x6a8] sm:$0xf]  ;;  %v8705_v58 = vld [vmem:[#allocation6 + $0x458] sm:$0xf0]  ;;  %v10176_v8 = vld [vmem:[#allocation6 + $0x754] sm:$0xf0] }
 0x324   :  { %v8708_v21 = vor.u32 %v10078_v41, %v8705_v58  ;;  %v10074_v4 = vld [vmem:[#allocation6 + $0x42c] sm:$0xf]  ;;  %v8625_v41 = vld [vmem:[#allocation6 + $0x3b8] sm:$0xf0] }
 0x325   :  { %5558 = vmatpush.bf16.msra.mxu1 %v8372_v27  ;;  %v8308_v27 = vor.u32 %v9978_v15, %v8305_v29  ;;  %v10156_v15 = vld [vmem:[#allocation6 + $0x6b4] sm:$0xf0] }
 0x326   :  { %5470 = vmatpush.bf16.msra.mxu2 %v8448_v18 }
 0x327   :  { %5546 = vmatpush.bf16.msra.mxu0 %v8228_v48  ;;  %5483 = vmatpush.bf16.msra.mxu3 %v8576_v0  ;;  %v8164_v48 = vor.u32 %v9942_v52, %v8161_v12  ;;  %v10188_v0 = vld [vmem:[#allocation6 + $0x7b4] sm:$0xf0]  ;;  %v8991_v52 = vld [vmem:[#allocation6 + $0x688] sm:$0xf] }
 0x328   :  { %v10152_v12 = vld [vmem:[#allocation6 + $0x694] sm:$0xf0] }
 0x329   :  { %5559 = vmatpush.bf16.msra.mxu1 %v8356_v49  ;;  %v8292_v49 = vor.u32 %v9974_v30, %v8289_v7  ;;  %v8992_v6 = vor.u32 %v10152_v12, %v8991_v52  ;;  %v10136_v52 = vld [vmem:[#allocation6 + $0x614] sm:$0xf0]  ;;  %v9055_v12 = vld [vmem:[#allocation6 + $0x708] sm:$0xf] }
 0x32a   :  { %5471 = vmatpush.bf16.msra.mxu2 %v8432_v44  ;;  %v10082_v44 = vld [vmem:[#allocation6 + $0x46c] sm:$0xf] }
 0x32b   :  { %5547 = vmatpush.bf16.msra.mxu0 %v8212_v42  ;;  %5484 = vmatpush.bf16.msra.mxu3 %v8560_v23  ;;  %v10126_v42 = vld [vmem:[#allocation6 + $0x5cc] sm:$0xf]  ;;  %v8721_v23 = vld [vmem:[#allocation6 + $0x478] sm:$0xf0] }
 0x32c   :  { %v8724_v40 = vor.u32 %v10082_v44, %v8721_v23 }
 0x32d   :  { %5560 = vmatpush.bf16.msra.mxu1 %v8340_v37  ;;  %v8897_v37 = vld [vmem:[#allocation6 + $0x5d8] sm:$0xf0] }
 0x32e   :  { %v8900_v59 = vor.u32 %v10126_v42, %v8897_v37  ;;  %5472 = vmatpush.bf16.msra.mxu2 %v8416_v60  ;;  %v8833_v42 = vld [vmem:[#allocation6 + $0x558] sm:$0xf0] }
 0x32f   :  { %5548 = vmatpush.bf16.msra.mxu0 %v8196_v38  ;;  %v8753_v38 = vld [vmem:[#allocation6 + $0x4b8] sm:$0xf0]  ;;  %5485 = vmatpush.bf16.msra.mxu3 %v8544_v61  ;;  %v9104_v61 = vor.u32 %v10180_v17, %v9103_v57  ;;  %v10058_v17 = vld [vmem:[#allocation6 + $0x3ac] sm:$0xf] }
 0x330   :  { %v8756_v29 = vor.u32 %v10090_v9, %v8753_v38  ;;  %v8689_v9 = vld [vmem:[#allocation6 + $0x438] sm:$0xf0]  ;;  %v10106_v38 = vld [vmem:[#allocation6 + $0x52c] sm:$0xf] }
 0x331   :  { %5561 = vmatpush.bf16.msra.mxu1 %v8324_v34  ;;  %v10122_v34 = vld [vmem:[#allocation6 + $0x5ac] sm:$0xf]  ;;  %5473 = vmatmul.bf16.vlgmr.msra.gmra.mxu2 %v10764_v25  ;;  %v8497_v57 = vld [vmem:[#allocation6 + $0x2b8] sm:$0xf0] }
 0x332   :  { %5517 = vmatpush.bf16.msrb.mxu2 %v9040_v62  ;;  %v8884_v18 = vor.u32 %v10122_v34, %v8881_v35  ;;  %5486 = vmatmul.bf16.vlgmr.msra.gmra.mxu3 %v10766_v46  ;;  %v8959_v62 = vld [vmem:[#allocation6 + $0x648] sm:$0xf]  ;;  %v8817_v34 = vld [vmem:[#allocation6 + $0x538] sm:$0xf0] }
 0x333   :  { %5549 = vmatpush.bf16.msra.mxu0 %v8180_v3  ;;  %5530 = vmatpush.bf16.msrb.mxu3 %v9168_v45  ;;  %v10144_v45 = vld [vmem:[#allocation6 + $0x654] sm:$0xf0] }
 0x334   :  { %v8960_v35 = vor.u32 %v10144_v45, %v8959_v62 }
 0x335   :  { %5562 = vmatpush.bf16.msra.mxu1 %v8308_v27  ;;  %v9008_v27 = vor.u32 %v10156_v15, %v9007_v16  ;;  %v8692_v16 = vor.u32 %v10074_v4, %v8689_v9  ;;  %v8820_v15 = vor.u32 %v10106_v38, %v8817_v34  ;;  %v10014_v4 = vld [vmem:[#allocation6 + $0x24c] sm:$0xf] }
 0x336   :  { %5518 = vmatpush.bf16.msrb.mxu2 %v9024_v20 }
 0x337   :  { %5550 = vmatpush.bf16.msra.mxu0 %v8164_v48  ;;  %5531 = vmatpush.bf16.msrb.mxu3 %v9152_v2  ;;  %v5344_v3 = vpop.f32.mrf.mxu0  ;;  %v10114_v48 = vld [vmem:[#allocation6 + $0x56c] sm:$0xf]  ;;  %v8943_v2 = vld [vmem:[#allocation6 + $0x628] sm:$0xf] }
 0x338   :  { %v5345_v30 = vadd.f32 %v5344_v3, %v3944_v14  ;;  %v10140_v14 = vld [vmem:[#allocation6 + $0x634] sm:$0xf0] }
 0x339   :  { %5563 = vmatpush.bf16.msra.mxu1 %v8292_v49  ;;  %v5357_v7 = vpop.f32.mrf.mxu1  ;;  %v8849_v49 = vld [vmem:[#allocation6 + $0x578] sm:$0xf0]  ;;  %v8944_v22 = vor.u32 %v10140_v14, %v8943_v2  ;;  %v9231_v14 = vld [vmem:[#allocation9 + $0x70] sm:$0xf] }
 0x33a   :  { %5551 = vmatmul.bf16.vlgmr.msra.gmra.mxu0 %v10760_v24  ;;  %v9135_v24 = vld [vmem:[#allocation6 + $0x7a8] sm:$0xf]  ;;  %v10850_v50 = vadd.f32 %v5357_v7, %v5345_v30  ;;  %5519 = vmatpush.bf16.msrb.mxu2 %v9008_v27  ;;  %v8852_v19 = vor.u32 %v10114_v48, %v8849_v49  ;;  %v10168_v30 = vld [vmem:[#allocation6 + $0x714] sm:$0xf0]  ;;  %v10034_v7 = vld [vmem:[#allocation6 + $0x2ec] sm:$0xf] }
 0x33b   :  { %5595 = vmatpush.bf16.msrb.mxu0 %v8788_v54  ;;  %v9136_v28 = vor.u32 %v10188_v0, %v9135_v24  ;;  %v8975_v54 = vld [vmem:[#allocation6 + $0x668] sm:$0xf]  ;;  %v10070_v24 = vld [vmem:[#allocation6 + $0x40c] sm:$0xf]  ;;  %v8673_v0 = vld [vmem:[#allocation6 + $0x418] sm:$0xf0]  ;;  %v9056_v44 = vor.u32 %v10168_v30, %v9055_v12 }
 0x33c   :  { %5564 = vmatmul.bf16.vlgmr.msra.gmra.mxu1 %v10762_v47  ;;  %v10086_v47 = vld [vmem:[#allocation6 + $0x48c] sm:$0xf]  ;;  %v8676_v3 = vor.u32 %v10070_v24, %v8673_v0  ;;  %v8577_v2 = vld [vmem:[#allocation6 + $0x358] sm:$0xf0] }
 0x33d   :  { %5608 = vmatpush.bf16.msrb.mxu1 %v8916_v55  ;;  %v8740_v32 = vor.u32 %v10086_v47, %v8737_v39  ;;  %5532 = vmatpush.bf16.msrb.mxu3 %v9136_v28  ;;  %v10148_v55 = vld [vmem:[#allocation6 + $0x674] sm:$0xf0]  ;;  %v10102_v47 = vld [vmem:[#allocation6 + $0x50c] sm:$0xf]  ;;  %v8801_v39 = vld [vmem:[#allocation6 + $0x518] sm:$0xf0] }
 0x33e   :  { %5520 = vmatpush.bf16.msrb.mxu2 %v8992_v6  ;;  %v8976_v60 = vor.u32 %v10148_v55, %v8975_v54  ;;  %v8804_v27 = vor.u32 %v10102_v47, %v8801_v39  ;;  %v8927_v28 = vld [vmem:[#allocation6 + $0x608] sm:$0xf]  ;;  %v10030_v49 = vld [vmem:[#allocation6 + $0x2cc] sm:$0xf]  ;;  %v8513_v6 = vld [vmem:[#allocation6 + $0x2d8] sm:$0xf0] }
 0x33f   :  { %5596 = vmatpush.bf16.msrb.mxu0 %v8772_v5  ;;  %v5346_v37 = vpop.f32.mrf.mxu0  ;;  %v8836_v5 = vor.u32 %v10110_v31, %v8833_v42  ;;  %v8928_v43 = vor.u32 %v10136_v52, %v8927_v28  ;;  %v8641_v54 = vld [vmem:[#allocation6 + $0x3d8] sm:$0xf0]  ;;  %v8516_v55 = vor.u32 %v10030_v49, %v8513_v6  ;;  %v8628_v31 = vor.u32 %v10058_v17, %v8625_v41  ;;  %v10022_v42 = vld [vmem:[#allocation6 + $0x28c] sm:$0xf]  ;;  %v9287_v52 = vld [vmem:[#allocation9 + $0xe0] sm:$0xf] }
 0x340   :  { %v8481_v37 = vld [vmem:[#allocation6 + $0x298] sm:$0xf0]  ;;  %v10010_v24 = vld [vmem:[#allocation6 + $0x22c] sm:$0xf]  ;;  %v9215_v6 = vld [vmem:[#allocation9 + $0x50] sm:$0xf] }
 0x341   :  { %5609 = vmatpush.bf16.msrb.mxu1 %v8900_v59  ;;  %5533 = vmatpush.bf16.msrb.mxu3 %v9120_v53  ;;  %v5359_v1 = vpop.f32.mrf.mxu1  ;;  %v9087_v59 = vld [vmem:[#allocation6 + $0x748] sm:$0xf]  ;;  %v10062_v53 = vld [vmem:[#allocation6 + $0x3cc] sm:$0xf]  ;;  %v8484_v62 = vor.u32 %v10022_v42, %v8481_v37  ;;  %v9041_v49 = vld [vmem:[#allocation6 + $0x6f8] sm:$0xf0] }
 0x342   :  { %5521 = vmatpush.bf16.msrb.mxu2 %v8976_v60  ;;  %v9088_v20 = vor.u32 %v10176_v8, %v9087_v59  ;;  %v10054_v60 = vld [vmem:[#allocation6 + $0x38c] sm:$0xf]  ;;  %v8593_v59 = vld [vmem:[#allocation6 + $0x378] sm:$0xf0] }
 0x343   :  { %5597 = vmatpush.bf16.msrb.mxu0 %v8756_v29  ;;  %v9071_v29 = vld [vmem:[#allocation6 + $0x728] sm:$0xf]  ;;  %v10018_v1 = vld [vmem:[#allocation6 + $0x26c] sm:$0xf]  ;;  %v9025_v42 = vld [vmem:[#allocation6 + $0x6d8] sm:$0xf0] }
 0x344   :  { %v10210_v28 = vld [vmem:[#allocation9 + $0x64] sm:$0xf0] }
 0x345   :  { %5610 = vmatpush.bf16.msrb.mxu1 %v8884_v18  ;;  %5534 = vmatpush.bf16.msrb.mxu3 %v9104_v61  ;;  %v10172_v18 = vld [vmem:[#allocation6 + $0x734] sm:$0xf0]  ;;  %v8609_v61 = vld [vmem:[#allocation6 + $0x398] sm:$0xf0]  ;;  %v10226_v30 = vld [vmem:[#allocation9 + $0xe4] sm:$0xf0] }
 0x346   :  { %5522 = vmatpush.bf16.msrb.mxu2 %v8960_v35  ;;  %v9072_v26 = vor.u32 %v10172_v18, %v9071_v29  ;;  %v8612_v45 = vor.u32 %v10054_v60, %v8609_v61  ;;  %v8449_v35 = vld [vmem:[#allocation6 + $0x258] sm:$0xf0]  ;;  %v9207_v61 = vld [vmem:[#allocation9 + $0x40] sm:$0xf] }
 0x347   :  { %5598 = vmatpush.bf16.msrb.mxu0 %v8740_v32  ;;  %v8529_v32 = vld [vmem:[#allocation6 + $0x2f8] sm:$0xf0]  ;;  %v8452_v47 = vor.u32 %v10014_v4, %v8449_v35  ;;  %v3945_v4 = vperm.slane %v10828_v63, 2 }
 0x348   :  { %v8532_v23 = vor.u32 %v10034_v7, %v8529_v32  ;;  %v10228_v18 = vld [vmem:[#allocation9 + $0xf4] sm:$0xf0]  ;;  %v10006_v7 = vld [vmem:[#allocation6 + $0x20c] sm:$0xf] }
 0x349   :  { %5611 = vmatpush.bf16.msrb.mxu1 %v8868_v33  ;;  %5535 = vmatpush.bf16.msrb.mxu3 %v9088_v20  ;;  %v10066_v33 = vld [vmem:[#allocation6 + $0x3ec] sm:$0xf]  ;;  %v8417_v32 = vld [vmem:[#allocation6 + $0x218] sm:$0xf0] }
 0x34a   :  { %5523 = vmatpush.bf16.msrb.mxu2 %v8944_v22  ;;  %v8660_v48 = vor.u32 %v10066_v33, %v8657_v13  ;;  %v10046_v20 = vld [vmem:[#allocation6 + $0x34c] sm:$0xf]  ;;  %v8433_v22 = vld [vmem:[#allocation6 + $0x238] sm:$0xf0]  ;;  %v9288_v13 = vor.u32 %v10226_v30, %v9287_v52  ;;  %v8420_v41 = vor.u32 %v10006_v7, %v8417_v32  ;;  %v9183_v32 = vld [vmem:[#allocation9 + $0x10] sm:$0xf] }
 0x34b   :  { %5599 = vmatpush.bf16.msrb.mxu0 %v8724_v40  ;;  %v8644_v40 = vor.u32 %v10062_v53, %v8641_v54  ;;  %v8580_v39 = vor.u32 %v10046_v20, %v8577_v2  ;;  %v10038_v33 = vld [vmem:[#allocation6 + $0x30c] sm:$0xf]  ;;  %v10208_v53 = vld [vmem:[#allocation9 + $0x54] sm:$0xf0]  ;;  %v9279_v54 = vld [vmem:[#allocation9 + $0xd0] sm:$0xf] }
 0x34c   :  { %v9199_v20 = vld [vmem:[#allocation9 + $0x30] sm:$0xf]  ;;  %v10204_v2 = vld [vmem:[#allocation9 + $0x34] sm:$0xf0]  ;;  %v10182_v30 = vld [vmem:[#allocation6 + $0x78c] sm:$0xf] }
 0x34d   :  { %5612 = vmatpush.bf16.msrb.mxu1 %v8852_v19  ;;  %5536 = vmatpush.bf16.msrb.mxu3 %v9072_v26  ;;  %v10026_v19 = vld [vmem:[#allocation6 + $0x2ac] sm:$0xf]  ;;  %v8993_v52 = vld [vmem:[#allocation6 + $0x698] sm:$0xf0] }
 0x34e   :  { %5524 = vmatpush.bf16.msrb.mxu2 %v8928_v43  ;;  %v10042_v26 = vld [vmem:[#allocation6 + $0x32c] sm:$0xf]  ;;  %v8436_v43 = vor.u32 %v10010_v24, %v8433_v22  ;;  %v9121_v7 = vld [vmem:[#allocation6 + $0x798] sm:$0xf0] }
 0x34f   :  { %5600 = vmatpush.bf16.msrb.mxu0 %v8708_v21  ;;  %v8465_v21 = vld [vmem:[#allocation6 + $0x278] sm:$0xf0] }
 0x350   :  { %v8468_v38 = vor.u32 %v10018_v1, %v8465_v21  ;;  %v10190_v1 = vld [vmem:[#allocation6 + $0x7cc] sm:$0xf]  ;;  %v9153_v21 = vld [vmem:[#allocation6 + $0x7d8] sm:$0xf0] }
 0x351   :  { %5613 = vmatpush.bf16.msrb.mxu1 %v8836_v5  ;;  %5537 = vmatpush.bf16.msrb.mxu3 %v9056_v44  ;;  %v10050_v5 = vld [vmem:[#allocation6 + $0x36c] sm:$0xf]  ;;  %v9156_v35 = vor.u32 %v10190_v1, %v9153_v21  ;;  %v9239_v1 = vld [vmem:[#allocation9 + $0x80] sm:$0xf] }
 0x352   :  { %5569 = vmatpush.bf16.msra.mxu2 %v8532_v23  ;;  %v8596_v34 = vor.u32 %v10050_v5, %v8593_v59  ;;  %v8545_v23 = vld [vmem:[#allocation6 + $0x318] sm:$0xf0]  ;;  %v10222_v59 = vld [vmem:[#allocation9 + $0xc4] sm:$0xf0] }
 0x353   :  { %5601 = vmatpush.bf16.msrb.mxu0 %v8692_v16  ;;  %5525 = vmatmul.bf16.vlgmr.msrb.gmra.mxu2 %v10823_v10  ;;  %v10212_v16 = vld [vmem:[#allocation9 + $0x74] sm:$0xf0] }
 0x354   :  { %5538 = vmatmul.bf16.vlgmr.msrb.gmra.mxu3 %v10825_v36  ;;  %v9232_v29 = vor.u32 %v10212_v16, %v9231_v14  ;;  %v9263_v14 = vld [vmem:[#allocation9 + $0xb0] sm:$0xf]  ;;  %v10186_v16 = vld [vmem:[#allocation6 + $0x7ac] sm:$0xf] }
 0x355   :  { %5614 = vmatpush.bf16.msrb.mxu1 %v8820_v15  ;;  %5582 = vmatpush.bf16.msra.mxu3 %v8660_v48  ;;  %v9295_v15 = vld [vmem:[#allocation9 + $0xf0] sm:$0xf]  ;;  %v10162_v48 = vld [vmem:[#allocation6 + $0x6ec] sm:$0xf] }
 0x356   :  { %5570 = vmatpush.bf16.msra.mxu2 %v8516_v55  ;;  %v9296_v0 = vor.u32 %v10228_v18, %v9295_v15  ;;  %v10194_v55 = vld [vmem:[#allocation6 + $0x7ec] sm:$0xf]  ;;  %v9044_v37 = vor.u32 %v10162_v48, %v9041_v49  ;;  %v9137_v15 = vld [vmem:[#allocation6 + $0x7b8] sm:$0xf0]  ;;  %v9124_v48 = vor.u32 %v10182_v30, %v9121_v7  ;;  %v10207_v7 = vld [vmem:[#allocation9 + $0x54] sm:$0xf] }
 0x357   :  { %5602 = vmatpush.bf16.msrb.mxu0 %v8676_v3  ;;  %v10856_v58 = vpop.f32.mrf.mxu0  ;;  %v8561_v3 = vld [vmem:[#allocation6 + $0x338] sm:$0xf0]  ;;  %v10146_v49 = vld [vmem:[#allocation6 + $0x66c] sm:$0xf] }
 0x358   :  { %v8564_v44 = vor.u32 %v10042_v26, %v8561_v3  ;;  %v10220_v18 = vld [vmem:[#allocation9 + $0xb4] sm:$0xf0] }
 0x359   :  { %5615 = vmatpush.bf16.msrb.mxu1 %v8804_v27  ;;  %5583 = vmatpush.bf16.msra.mxu3 %v8644_v40  ;;  %v9223_v27 = vld [vmem:[#allocation9 + $0x60] sm:$0xf]  ;;  %v9169_v40 = vld [vmem:[#allocation6 + $0x7f8] sm:$0xf0]  ;;  %v9264_v63 = vor.u32 %v10220_v18, %v9263_v14  ;;  %v10209_v18 = vld [vmem:[#allocation9 + $0x64] sm:$0xf] }
 0x35a   :  { %5603 = vmatmul.bf16.vlgmr.msrb.gmra.mxu0 %v10783_v51  ;;  %v10858_v51 = vpop.f32.mrf.mxu1  ;;  %v9224_v12 = vor.u32 %v10210_v28, %v9223_v27  ;;  %v9172_v60 = vor.u32 %v10194_v55, %v9169_v40  ;;  %v9140_v27 = vor.u32 %v10186_v16, %v9137_v15  ;;  %v10150_v28 = vld [vmem:[#allocation6 + $0x68c] sm:$0xf]  ;;  %v8945_v16 = vld [vmem:[#allocation6 + $0x638] sm:$0xf0] }
 0x35b   :  { %6069 = vmatpush.bf16.msra.mxu0 %v9232_v29  ;;  %v9200_v29 = vor.u32 %v10204_v2, %v9199_v20  ;;  %v10170_v15 = vld [vmem:[#allocation6 + $0x72c] sm:$0xf]  ;;  %v9057_v30 = vld [vmem:[#allocation6 + $0x718] sm:$0xf0] }
 0x35c   :  { %5616 = vmatmul.bf16.vlgmr.msrb.gmra.mxu1 %v10785_v56  ;;  %v8500_v56 = vor.u32 %v10026_v19, %v8497_v57  ;;  %v9216_v19 = vor.u32 %v10208_v53, %v9215_v6  ;;  %v10224_v57 = vld [vmem:[#allocation9 + $0xd4] sm:$0xf0]  ;;  %v10178_v53 = vld [vmem:[#allocation6 + $0x76c] sm:$0xf] }
 0x35d   :  { %5584 = vmatpush.bf16.msra.mxu3 %v8628_v31  ;;  %6082 = vmatpush.bf16.msra.mxu1 %v9296_v0  ;;  %v9280_v17 = vor.u32 %v10224_v57, %v9279_v54  ;;  %v10158_v31 = vld [vmem:[#allocation6 + $0x6cc] sm:$0xf]  ;;  %v9191_v0 = vld [vmem:[#allocation9 + $0x20] sm:$0xf]  ;;  %v8977_v6 = vld [vmem:[#allocation6 + $0x678] sm:$0xf0] }
 0x35e   :  { %5571 = vmatpush.bf16.msra.mxu2 %v8500_v56  ;;  %v8548_v56 = vor.u32 %v10038_v33, %v8545_v23  ;;  %v8996_v23 = vor.u32 %v10150_v28, %v8993_v52  ;;  %v9105_v54 = vld [vmem:[#allocation6 + $0x778] sm:$0xf0] }
 0x35f   :  { %v5398_v8 = vpop.f32.mrf.mxu0  ;;  %6070 = vmatpush.bf16.msra.mxu0 %v9224_v12  ;;  %v10218_v12 = vld [vmem:[#allocation9 + $0xa4] sm:$0xf0]  ;;  %v8929_v52 = vld [vmem:[#allocation6 + $0x618] sm:$0xf0] }
 0x361   :  { %5585 = vmatpush.bf16.msra.mxu3 %v8612_v45  ;;  %6083 = vmatpush.bf16.msra.mxu1 %v9288_v13  ;;  %v9271_v45 = vld [vmem:[#allocation9 + $0xc0] sm:$0xf]  ;;  %v10200_v13 = vld [vmem:[#allocation9 + $0x14] sm:$0xf0] }
 0x362   :  { %5572 = vmatpush.bf16.msra.mxu2 %v8484_v62  ;;  %v5411_v9 = vpop.f32.mrf.mxu1  ;;  %v10206_v62 = vld [vmem:[#allocation9 + $0x44] sm:$0xf0]  ;;  %v9272_v8 = vor.u32 %v10222_v59, %v9271_v45  ;;  %v9184_v55 = vor.u32 %v10200_v13, %v9183_v32  ;;  %v10211_v59 = vld [vmem:[#allocation9 + $0x74] sm:$0xf]  ;;  %v9281_v13 = vld [vmem:[#allocation9 + $0xd8] sm:$0xf0] }
 0x363   :  { %6071 = vmatpush.bf16.msra.mxu0 %v9216_v19  ;;  %v9208_v5 = vor.u32 %v10206_v62, %v9207_v61  ;;  %v10154_v9 = vld [vmem:[#allocation6 + $0x6ac] sm:$0xf]  ;;  %v9108_v61 = vor.u32 %v10178_v53, %v9105_v54  ;;  %v9175_v62 = vld [vmem:[#allocation9] sm:$0xf]  ;;  %v9273_v54 = vld [vmem:[#allocation9 + $0xc8] sm:$0xf0] }
 0x364   :  { %v10198_v45 = vld [vmem:[#allocation9 + $0x4] sm:$0xf0] }
 0x365   :  { %5586 = vmatpush.bf16.msra.mxu3 %v8596_v34  ;;  %6084 = vmatpush.bf16.msra.mxu1 %v9280_v17  ;;  %v9028_v34 = vor.u32 %v10158_v31, %v9025_v42  ;;  %v10142_v17 = vld [vmem:[#allocation6 + $0x64c] sm:$0xf]  ;;  %v9089_v31 = vld [vmem:[#allocation6 + $0x758] sm:$0xf0]  ;;  %v9176_v21 = vor.u32 %v10198_v45, %v9175_v62 }
 0x366   :  { %5573 = vmatpush.bf16.msra.mxu2 %v8468_v38  ;;  %v9009_v38 = vld [vmem:[#allocation6 + $0x6b8] sm:$0xf0] }
 0x367   :  { %6072 = vmatpush.bf16.msra.mxu0 %v9208_v5  ;;  %v9012_v3 = vor.u32 %v10154_v9, %v9009_v38  ;;  %v10214_v5 = vld [vmem:[#allocation9 + $0x84] sm:$0xf0]  ;;  %v10227_v38 = vld [vmem:[#allocation9 + $0xf4] sm:$0xf] }
 0x369   :  { %5587 = vmatpush.bf16.msra.mxu3 %v8580_v39  ;;  %6085 = vmatpush.bf16.msra.mxu1 %v9272_v8  ;;  %v9255_v39 = vld [vmem:[#allocation9 + $0xa0] sm:$0xf]  ;;  %v9233_v8 = vld [vmem:[#allocation9 + $0x78] sm:$0xf0] }
 0x36a   :  { %5574 = vmatpush.bf16.msra.mxu2 %v8452_v47  ;;  %v10202_v47 = vld [vmem:[#allocation9 + $0x24] sm:$0xf0]  ;;  %v9236_v9 = vor.u32 %v10211_v59, %v9233_v8 }
 0x36b   :  { %6073 = vmatpush.bf16.msra.mxu0 %v9200_v29  ;;  %v9073_v29 = vld [vmem:[#allocation6 + $0x738] sm:$0xf0] }
 0x36c   :  { %v9076_v28 = vor.u32 %v10170_v15, %v9073_v29  ;;  %v10197_v15 = vld [vmem:[#allocation9 + $0x4] sm:$0xf] }
 0x36d   :  { %5588 = vmatpush.bf16.msra.mxu3 %v8564_v44  ;;  %6086 = vmatpush.bf16.msra.mxu1 %v9264_v63  ;;  %v10216_v44 = vld [vmem:[#allocation9 + $0x94] sm:$0xf0]  ;;  %v9225_v63 = vld [vmem:[#allocation9 + $0x68] sm:$0xf0]  ;;  %v10213_v29 = vld [vmem:[#allocation9 + $0x84] sm:$0xf] }
 0x36e   :  { %5575 = vmatpush.bf16.msra.mxu2 %v8436_v43  ;;  %v9247_v43 = vld [vmem:[#allocation9 + $0x90] sm:$0xf] }
 0x36f   :  { %v9248_v40 = vor.u32 %v10216_v44, %v9247_v43 }
 0x371   :  { %5589 = vmatpush.bf16.msra.mxu3 %v8548_v56  ;;  %v10174_v56 = vld [vmem:[#allocation6 + $0x74c] sm:$0xf] }
 0x372   :  { %5576 = vmatpush.bf16.msra.mxu2 %v8420_v41  ;;  %v8961_v41 = vld [vmem:[#allocation6 + $0x658] sm:$0xf0]  ;;  %v9092_v14 = vor.u32 %v10174_v56, %v9089_v31  ;;  %v10203_v56 = vld [vmem:[#allocation9 + $0x34] sm:$0xf]  ;;  %v9201_v31 = vld [vmem:[#allocation9 + $0x38] sm:$0xf0] }
 0x373   :  { %v8964_v2 = vor.u32 %v10142_v17, %v8961_v41 }
 0x374   :  { %5590 = vmatmul.bf16.vlgmr.msra.gmra.mxu3 %v10766_v46  ;;  %v9256_v46 = vor.u32 %v10218_v12, %v9255_v39  ;;  %v10865_v19 = vpop.f32.mrf.mxu2  ;;  %v10166_v12 = vld [vmem:[#allocation6 + $0x70c] sm:$0xf] }
 0x375   :  { %5634 = vmatpush.bf16.msrb.mxu3 %v9172_v60  ;;  %5577 = vmatmul.bf16.vlgmr.msra.gmra.mxu2 %v10764_v25  ;;  %v9192_v25 = vor.u32 %v10202_v47, %v9191_v0  ;;  %v10867_v57 = vpop.f32.mrf.mxu3  ;;  %v8980_v60 = vor.u32 %v10146_v49, %v8977_v6  ;;  %v9228_v0 = vor.u32 %v10209_v18, %v9225_v63  ;;  %v9289_v47 = vld [vmem:[#allocation9 + $0xe8] sm:$0xf0]  ;;  %v10221_v6 = vld [vmem:[#allocation9 + $0xc4] sm:$0xf] }
 0x376   :  { %5621 = vmatpush.bf16.msrb.mxu2 %v9044_v37  ;;  %6087 = vmatpush.bf16.msra.mxu1 %v9256_v46  ;;  %v10223_v46 = vld [vmem:[#allocation9 + $0xd4] sm:$0xf]  ;;  %v9209_v49 = vld [vmem:[#allocation9 + $0x48] sm:$0xf0]  ;;  %v9276_v17 = vor.u32 %v10221_v6, %v9273_v54 }
 0x377   :  { %v5448_v24 = vpop.f32.mrf.mxu0  ;;  %6074 = vmatpush.bf16.msra.mxu0 %v9192_v25  ;;  %v9217_v25 = vld [vmem:[#allocation9 + $0x58] sm:$0xf0]  ;;  %v9284_v43 = vor.u32 %v10223_v46, %v9281_v13 }
 0x378   :  { %v5449_v22 = vadd.f32 %v5448_v24, %v3945_v4  ;;  %v9240_v4 = vor.u32 %v10214_v5, %v9239_v1  ;;  %v10225_v24 = vld [vmem:[#allocation9 + $0xe4] sm:$0xf]  ;;  %v9220_v32 = vor.u32 %v10207_v7, %v9217_v25 }
 0x379   :  { %5635 = vmatpush.bf16.msrb.mxu3 %v9156_v35  ;;  %v5461_v26 = vpop.f32.mrf.mxu1  ;;  %v10138_v35 = vld [vmem:[#allocation6 + $0x62c] sm:$0xf]  ;;  %v10201_v1 = vld [vmem:[#allocation9 + $0x24] sm:$0xf] }
 0x37a   :  { %5622 = vmatpush.bf16.msrb.mxu2 %v9028_v34  ;;  %v10863_v33 = vadd.f32 %v5461_v26, %v5449_v22  ;;  %6088 = vmatpush.bf16.msra.mxu1 %v9248_v40  ;;  %v9297_v34 = vld [vmem:[#allocation9 + $0xf8] sm:$0xf0]  ;;  %v10134_v26 = vld [vmem:[#allocation6 + $0x60c] sm:$0xf]  ;;  %v10217_v5 = vld [vmem:[#allocation9 + $0xa4] sm:$0xf] }
 0x37b   :  { %6075 = vmatpush.bf16.msra.mxu0 %v9184_v55  ;;  %v9300_v20 = vor.u32 %v10227_v38, %v9297_v34  ;;  %v8932_v44 = vor.u32 %v10134_v26, %v8929_v52 }
 0x37c   :  { %v5320_v39 = vpop.f32.mrf.mxu2 }
 0x37d   :  { %5636 = vmatpush.bf16.msrb.mxu3 %v9140_v27  ;;  %v5333_v22 = vpop.f32.mrf.mxu3  ;;  %v8948_v27 = vor.u32 %v10138_v35, %v8945_v16  ;;  %v10199_v35 = vld [vmem:[#allocation9 + $0x14] sm:$0xf]  ;;  %v5319_v16 = vadd.f32 %v10865_v19, %v10843_v11 }
 0x37e   :  { %5623 = vmatpush.bf16.msrb.mxu2 %v9012_v3  ;;  %6089 = vmatpush.bf16.msra.mxu1 %v9240_v4  ;;  %v9292_v3 = vor.u32 %v10225_v24, %v9289_v47  ;;  %v5661_v19 = vld [vmem:[%s10916_s2] sm:$0xff] }
 0x37f   :  { %v5450_v42 = vpop.f32.mrf.mxu0  ;;  %6076 = vmatpush.bf16.msra.mxu0 %v9176_v21  ;;  %v9193_v21 = vld [vmem:[#allocation9 + $0x28] sm:$0xf0]  ;;  %v5332_v47 = vadd.f32 %v10867_v57, %v5319_v16  ;;  %v5667_v7 = vunpack.c.l.bf16 %v5661_v19  ;;  %v5668_v57 = vunpack.c.h.bf16 %v5661_v19  ;;  %v9343_v16 = vld [vmem:[#allocation9 + $0x150] sm:$0xf] }
 0x380   :  { %v10219_v42 = vld [vmem:[#allocation9 + $0xb4] sm:$0xf]  ;;  %v9196_v4 = vor.u32 %v10201_v1, %v9193_v21  ;;  %v9391_v19 = vld [vmem:[#allocation9 + $0x1b0] sm:$0xf] }
 0x381   :  { %5637 = vmatpush.bf16.msrb.mxu3 %v9124_v48  ;;  %v5463_v37 = vpop.f32.mrf.mxu1  ;;  %v10205_v48 = vld [vmem:[#allocation9 + $0x44] sm:$0xf]  ;;  %vm5647_vm8 = vcmp.ge.f32.partialorder %v5332_v47, 0.0 }
 0x382   :  { %5624 = vmatpush.bf16.msrb.mxu2 %v8996_v23  ;;  %6134 = vmatpush.bf16.msrb.mxu1 %v9300_v20  ;;  %v9060_v23 = vor.u32 %v10166_v12, %v9057_v30  ;;  %v9212_v53 = vor.u32 %v10205_v48, %v9209_v49  ;;  %v9265_v37 = vld [vmem:[#allocation9 + $0xb8] sm:$0xf0]  ;;  %v10215_v20 = vld [vmem:[#allocation9 + $0x94] sm:$0xf] }
 0x383   :  { %6121 = vmatpush.bf16.msrb.mxu0 %v9236_v9  ;;  %v9268_v62 = vor.u32 %v10219_v42, %v9265_v37  ;;  %v9257_v9 = vld [vmem:[#allocation9 + $0xa8] sm:$0xf0]  ;;  %v10296_v49 = vld [vmem:[#allocation7] sm:$0xf] }
 0x384   :  { %v5370_v55 = vpop.f32.mrf.mxu2  ;;  %v3946_v6 = vperm.slane %v10296_v49, 3 }
 0x385   :  { %5638 = vmatpush.bf16.msrb.mxu3 %v9108_v61  ;;  %v5383_v40 = vpop.f32.mrf.mxu3  ;;  %v5371_v41 = vadd.f32 %v5370_v55, %v10850_v50  ;;  %v9204_v61 = vor.u32 %v10203_v56, %v9201_v31 }
 0x386   :  { %5625 = vmatpush.bf16.msrb.mxu2 %v8980_v60  ;;  %6135 = vmatpush.bf16.msrb.mxu1 %v9292_v3 }
 0x387   :  { %6122 = vmatpush.bf16.msrb.mxu0 %v9228_v0  ;;  %v5384_v60 = vadd.f32 %v5383_v40, %v5371_v41  ;;  %v9241_v0 = vld [vmem:[#allocation9 + $0x88] sm:$0xf0] }
 0x388   :  { %v9244_v39 = vor.u32 %v10213_v29, %v9241_v0  ;;  %v10238_v0 = vld [vmem:[#allocation9 + $0x144] sm:$0xf0] }
 0x389   :  { %5639 = vmatpush.bf16.msrb.mxu3 %v9092_v14  ;;  %v5397_v45 = vadd.f32 %v10856_v58, %v5384_v60  ;;  %v9249_v58 = vld [vmem:[#allocation9 + $0x98] sm:$0xf0] }
 0x38a   :  { %5626 = vmatpush.bf16.msrb.mxu2 %v8964_v2  ;;  %6136 = vmatpush.bf16.msrb.mxu1 %v9284_v43  ;;  %v9252_v14 = vor.u32 %v10215_v20, %v9249_v58 }
 0x38b   :  { %6123 = vmatpush.bf16.msrb.mxu0 %v9220_v32  ;;  %v5410_v8 = vadd.f32 %v10858_v51, %v5397_v45  ;;  %v9177_v51 = vld [vmem:[#allocation9 + $0x8] sm:$0xf0] }
 0x38c   :  { %v5372_v38 = vpop.f32.mrf.mxu2  ;;  %v9180_v24 = vor.u32 %v10197_v15, %v9177_v51  ;;  %v10240_v15 = vld [vmem:[#allocation9 + $0x154] sm:$0xf0]  ;;  %v9407_v51 = vld [vmem:[#allocation9 + $0x1d0] sm:$0xf] }
 0x38d   :  { %5640 = vmatpush.bf16.msrb.mxu3 %v9076_v28  ;;  %v5385_v34 = vpop.f32.mrf.mxu3  ;;  %v10260_v38 = vld [vmem:[#allocation9 + $0x1f4] sm:$0xf0]  ;;  %v9344_v29 = vor.u32 %v10240_v15, %v9343_v16  ;;  %v9409_v16 = vld [vmem:[#allocation9 + $0x1d8] sm:$0xf0] }
 0x38e   :  { %5627 = vmatpush.bf16.msrb.mxu2 %v8948_v27  ;;  %6137 = vmatpush.bf16.msrb.mxu1 %v9276_v17  ;;  %v5651_v27 = vmul.f32 0.2, %v5332_v47 }
 0x38f   :  { %6124 = vmatpush.bf16.msrb.mxu0 %v9212_v53 }
 0x390   :  { %v5655_v52 = vsel %vm5647_vm8, %v5332_v47, %v5651_v27  ;;  %v9399_v47 = vld [vmem:[#allocation9 + $0x1c0] sm:$0xf]  ;;  %v10236_v27 = vld [vmem:[#allocation9 + $0x134] sm:$0xf0] }
 0x391   :  { %5641 = vmatpush.bf16.msrb.mxu3 %v9060_v23 }
 0x392   :  { %5628 = vmatpush.bf16.msrb.mxu2 %v8932_v44  ;;  %6138 = vmatpush.bf16.msrb.mxu1 %v9268_v62 }
 0x393   :  { %6125 = vmatpush.bf16.msrb.mxu0 %v9204_v61 }
 0x394   :  { %5642 = vmatmul.bf16.vlgmr.msrb.gmra.mxu3 %v10825_v36  ;;  %v9185_v36 = vld [vmem:[#allocation9 + $0x18] sm:$0xf0]  ;;  %v5422_v22 = vpop.f32.mrf.mxu2 }
 0x395   :  { %5629 = vmatmul.bf16.vlgmr.msrb.gmra.mxu2 %v10823_v10  ;;  %v9260_v10 = vor.u32 %v10217_v5, %v9257_v9  ;;  %v9188_v2 = vor.u32 %v10199_v35, %v9185_v36  ;;  %v5435_v26 = vpop.f32.mrf.mxu3  ;;  %v5423_v3 = vadd.f32 %v5422_v22, %v5410_v8  ;;  %v9359_v5 = vld [vmem:[#allocation9 + $0x170] sm:$0xf]  ;;  %v10244_v8 = vld [vmem:[#allocation9 + $0x174] sm:$0xf0]  ;;  %v10242_v35 = vld [vmem:[#allocation9 + $0x164] sm:$0xf0] }
 0x396   :  { %v9360_v9 = vor.u32 %v10244_v8, %v9359_v5  ;;  %v10241_v5 = vld [vmem:[#allocation9 + $0x164] sm:$0xf]  ;;  %v9353_v8 = vld [vmem:[#allocation9 + $0x168] sm:$0xf0] }
 0x397   :  { %v10873_v59 = vpop.f32.mrf.mxu0  ;;  %6126 = vmatpush.bf16.msrb.mxu0 %v9196_v4  ;;  %6139 = vmatpush.bf16.msrb.mxu1 %v9260_v10  ;;  %v5436_v28 = vadd.f32 %v5435_v26, %v5423_v3  ;;  %v9423_v4 = vld [vmem:[#allocation9 + $0x1f0] sm:$0xf] }
 0x398   :  { %6095 = vmatpush.bf16.msra.mxu2 %v9360_v9  ;;  %v9327_v3 = vld [vmem:[#allocation9 + $0x130] sm:$0xf] }
 0x399   :  { %v10875_v50 = vpop.f32.mrf.mxu1  ;;  %vm5648_vm9 = vcmp.ge.f32.partialorder %v5436_v28, 0.0  ;;  %v5652_v11 = vmul.f32 0.2, %v5436_v28 }
 0x39b   :  { %6127 = vmatpush.bf16.msrb.mxu0 %v9188_v2  ;;  %6140 = vmatpush.bf16.msrb.mxu1 %v9252_v14  ;;  %v5656_v12 = vsel %vm5648_vm9, %v5436_v28, %v5652_v11  ;;  %v10258_v2 = vld [vmem:[#allocation9 + $0x1e4] sm:$0xf0] }
 0x39c   :  { %v5659_v30 = vpack.c.bf16 %v5656_v12, %v5655_v52  ;;  %v5424_v25 = vpop.f32.mrf.mxu2  ;;  %v10252_v52 = vld [vmem:[#allocation9 + $0x1b4] sm:$0xf0]  ;;  %v9328_v12 = vor.u32 %v10236_v27, %v9327_v3  ;;  %v9329_v3 = vld [vmem:[#allocation9 + $0x138] sm:$0xf0]  ;;  %v10251_v27 = vld [vmem:[#allocation9 + $0x1b4] sm:$0xf] }
 0x39d   :  { %v5437_v46 = vpop.f32.mrf.mxu3  ;;  %v9383_v25 = vld [vmem:[#allocation9 + $0x1a0] sm:$0xf] }
 0x39e   :  { %v5663_v32 = vunpack.c.l.bf16 %v5659_v30  ;;  %v5664_v13 = vunpack.c.h.bf16 %v5659_v30  ;;  %v9392_v30 = vor.u32 %v10252_v52, %v9391_v19  ;;  %v10250_v46 = vld [vmem:[#allocation9 + $0x1a4] sm:$0xf0]  ;;  %v10233_v19 = vld [vmem:[#allocation9 + $0x124] sm:$0xf]  ;;  %v9321_v52 = vld [vmem:[#allocation9 + $0x128] sm:$0xf0] }
 0x39f   :  { %v5502_v18 = vpop.f32.mrf.mxu0  ;;  %6128 = vmatpush.bf16.msrb.mxu0 %v9180_v24  ;;  %6141 = vmatpush.bf16.msrb.mxu1 %v9244_v39  ;;  %v9335_v24 = vld [vmem:[#allocation9 + $0x140] sm:$0xf]  ;;  %v10254_v39 = vld [vmem:[#allocation9 + $0x1c4] sm:$0xf0] }
 0x3a0   :  { %v5671_v43 = vmul.f32 %v5667_v7, %v5663_v32  ;;  %v5672_v44 = vmul.f32 %v5668_v57, %v5664_v13  ;;  %v10256_v18 = vld [vmem:[#allocation9 + $0x1d4] sm:$0xf0]  ;;  %v9336_v22 = vor.u32 %v10238_v0, %v9335_v24  ;;  %v9400_v26 = vor.u32 %v10254_v39, %v9399_v47  ;;  %v9319_v7 = vld [vmem:[#allocation9 + $0x120] sm:$0xf]  ;;  %v10234_v57 = vld [vmem:[#allocation9 + $0x124] sm:$0xf0] }
 0x3a1   :  { %v5515_v63 = vpop.f32.mrf.mxu1  ;;  %v9320_v32 = vor.u32 %v10234_v57, %v9319_v7  ;;  %v9384_v13 = vor.u32 %v10250_v46, %v9383_v25  ;;  %v10253_v24 = vld [vmem:[#allocation9 + $0x1c4] sm:$0xf]  ;;  %v9401_v39 = vld [vmem:[#allocation9 + $0x1c8] sm:$0xf0]  ;;  %v10231_v57 = vld [vmem:[#allocation9 + $0x114] sm:$0xf] }
 0x3a2   :  { %v5675_v23 = vpack.c.bf16 %v5671_v43, %v5671_v43  ;;  %v5676_v48 = vpack.c.bf16 %v5672_v44, %v5672_v44  ;;  %v9408_v63 = vor.u32 %v10256_v18, %v9407_v51  ;;  %v9311_v43 = vld [vmem:[#allocation9 + $0x110] sm:$0xf]  ;;  %v10232_v44 = vld [vmem:[#allocation9 + $0x114] sm:$0xf0]  ;;  %v10237_v18 = vld [vmem:[#allocation9 + $0x144] sm:$0xf] }
 0x3a3   :  { %v9312_v49 = vor.u32 %v10232_v44, %v9311_v43  ;;  %v9313_v25 = vld [vmem:[#allocation9 + $0x118] sm:$0xf0]  ;;  %v10247_v46 = vld [vmem:[#allocation9 + $0x194] sm:$0xf]  ;;  %v10229_v44 = vld [vmem:[#allocation9 + $0x104] sm:$0xf] }
 0x3a4   :  { %6077 = vmatmul.bf16.vlgmr.msra.gmra.mxu0 %v5675_v23  ;;  %6090 = vmatmul.bf16.vlgmr.msra.gmra.mxu1 %v5676_v48 }
 0x3b4   :  { %v5474_v56 = vpop.f32.mrf.mxu2  ;;  %6129 = vmatmul.bf16.vlgmr.msrb.gmra.mxu0 %v5675_v23  ;;  %6142 = vmatmul.bf16.vlgmr.msrb.gmra.mxu1 %v5676_v48  ;;  %v9375_v23 = vld [vmem:[#allocation9 + $0x190] sm:$0xf]  ;;  %v10248_v48 = vld [vmem:[#allocation9 + $0x194] sm:$0xf0] }
 0x3b5   :  { %v5487_v31 = vpop.f32.mrf.mxu3  ;;  %v5475_v42 = vadd.f32 %v5474_v56, %v10863_v33  ;;  %v9424_v33 = vor.u32 %v10260_v38, %v9423_v4  ;;  %v10243_v56 = vld [vmem:[#allocation9 + $0x174] sm:$0xf]  ;;  %v10257_v4 = vld [vmem:[#allocation9 + $0x1e4] sm:$0xf] }
 0x3b7   :  { %v5552_v53 = vpop.f32.mrf.mxu0  ;;  %v5488_v37 = vadd.f32 %v5487_v31, %v5475_v42  ;;  %6108 = vmatpush.bf16.msra.mxu3 %v9424_v33  ;;  %v9361_v31 = vld [vmem:[#allocation9 + $0x178] sm:$0xf0]  ;;  %v9356_v33 = vor.u32 %v10241_v5, %v9353_v8 }
 0x3b8   :  { %v5553_v55 = vadd.f32 %v5552_v53, %v3946_v6  ;;  %v9376_v6 = vor.u32 %v10248_v48, %v9375_v23  ;;  %v9303_v53 = vld [vmem:[#allocation9 + $0x100] sm:$0xf]  ;;  %v9305_v23 = vld [vmem:[#allocation9 + $0x108] sm:$0xf0]  ;;  %v10245_v48 = vld [vmem:[#allocation9 + $0x184] sm:$0xf] }
 0x3b9   :  { %v5565_v54 = vpop.f32.mrf.mxu1  ;;  %v5501_v60 = vadd.f32 %v10873_v59, %v5488_v37  ;;  %v9351_v59 = vld [vmem:[#allocation9 + $0x160] sm:$0xf]  ;;  %v9364_v37 = vor.u32 %v10243_v56, %v9361_v31 }
 0x3ba   :  { %v10884_v40 = vadd.f32 %v5565_v54, %v5553_v55  ;;  %v9352_v58 = vor.u32 %v10242_v35, %v9351_v59  ;;  %v10230_v54 = vld [vmem:[#allocation9 + $0x104] sm:$0xf0]  ;;  %v9367_v55 = vld [vmem:[#allocation9 + $0x180] sm:$0xf] }
 0x3bb   :  { %v10889_v61 = vadd.f32 %v10875_v50, %v5501_v60  ;;  %v9415_v50 = vld [vmem:[#allocation9 + $0x1e0] sm:$0xf]  ;;  %v10259_v60 = vld [vmem:[#allocation9 + $0x1f4] sm:$0xf] }
 0x3bc   :  { %v5476_v62 = vpop.f32.mrf.mxu2  ;;  %v9416_v14 = vor.u32 %v10258_v2, %v9415_v50  ;;  %6096 = vmatpush.bf16.msra.mxu2 %v9352_v58  ;;  %v10239_v50 = vld [vmem:[#allocation9 + $0x154] sm:$0xf]  ;;  %v9345_v58 = vld [vmem:[#allocation9 + $0x158] sm:$0xf0] }
 0x3bd   :  { %v5489_v45 = vpop.f32.mrf.mxu3  ;;  %v9425_v62 = vld [vmem:[#allocation9 + $0x1f8] sm:$0xf0]  ;;  %v10255_v2 = vld [vmem:[#allocation9 + $0x1d4] sm:$0xf] }
 0x3be   :  { %6109 = vmatpush.bf16.msra.mxu3 %v9416_v14  ;;  %v9428_v45 = vor.u32 %v10259_v60, %v9425_v62  ;;  %v9348_v14 = vor.u32 %v10239_v50, %v9345_v58  ;;  %v9412_v51 = vor.u32 %v10255_v2, %v9409_v16  ;;  %v5662_v60 = vld [vmem:[%s10916_s2 + $0x8] sm:$0xff] }
 0x3bf   :  { %v5554_v17 = vpop.f32.mrf.mxu0  ;;  %v5670_v5 = vunpack.c.h.bf16 %v5662_v60 }
 0x3c0   :  { %6097 = vmatpush.bf16.msra.mxu2 %v9344_v29  ;;  %v9304_v17 = vor.u32 %v10230_v54, %v9303_v53  ;;  %v9369_v53 = vld [vmem:[#allocation9 + $0x188] sm:$0xf0] }
 0x3c1   :  { %v5567_v41 = vpop.f32.mrf.mxu1  ;;  %v9372_v54 = vor.u32 %v10245_v48, %v9369_v53 }
 0x3c2   :  { %6110 = vmatpush.bf16.msra.mxu3 %v9408_v63  ;;  %v10246_v41 = vld [vmem:[#allocation9 + $0x184] sm:$0xf0]  ;;  %v9337_v63 = vld [vmem:[#allocation9 + $0x148] sm:$0xf0] }
 0x3c3   :  { %v9368_v42 = vor.u32 %v10246_v41, %v9367_v55  ;;  %v9340_v47 = vor.u32 %v10237_v18, %v9337_v63 }
 0x3c4   :  { %6098 = vmatpush.bf16.msra.mxu2 %v9336_v22  ;;  %v9404_v22 = vor.u32 %v10253_v24, %v9401_v39  ;;  %v10276_v39 = vld [vmem:[#allocation12 + $0x78] sm:$0xff] }
 0x3c5   :  { %6334 = vmatpush.bf16.msra.mxu1 %v10276_v39 }
 0x3c6   :  { %6111 = vmatpush.bf16.msra.mxu3 %v9400_v26  ;;  %v10235_v26 = vld [vmem:[#allocation9 + $0x134] sm:$0xf] }
 0x3c8   :  { %6099 = vmatpush.bf16.msra.mxu2 %v9328_v12  ;;  %v9324_v12 = vor.u32 %v10233_v19, %v9321_v52  ;;  %v10272_v19 = vld [vmem:[#allocation12 + $0x58] sm:$0xff]  ;;  %v10263_v52 = vld [vmem:[#allocation12 + $0x10] sm:$0xff] }
 0x3ca   :  { %6112 = vmatpush.bf16.msra.mxu3 %v9392_v30  ;;  %v9385_v30 = vld [vmem:[#allocation9 + $0x1a8] sm:$0xf0] }
 0x3cc   :  { %6100 = vmatpush.bf16.msra.mxu2 %v9320_v32  ;;  %v9377_v32 = vld [vmem:[#allocation9 + $0x198] sm:$0xf0] }
 0x3cd   :  { %v9380_v43 = vor.u32 %v10247_v46, %v9377_v32 }
 0x3ce   :  { %6113 = vmatpush.bf16.msra.mxu3 %v9384_v13  ;;  %v9316_v13 = vor.u32 %v10231_v57, %v9313_v25  ;;  %v10269_v57 = vld [vmem:[#allocation12 + $0x40] sm:$0xff] }
 0x3d0   :  { %6101 = vmatpush.bf16.msra.mxu2 %v9312_v49 }
 0x3d2   :  { %6114 = vmatpush.bf16.msra.mxu3 %v9376_v6  ;;  %v9308_v6 = vor.u32 %v10229_v44, %v9305_v23 }
 0x3d4   :  { %6102 = vmatpush.bf16.msra.mxu2 %v9304_v17 }
 0x3d6   :  { %v10895_v36 = vpop.f32.mrf.mxu2  ;;  %6115 = vmatpush.bf16.msra.mxu3 %v9368_v42 }
 0x3d7   :  { %v10891_v1 = vpop.f32.mrf.mxu0  ;;  %v10897_v20 = vpop.f32.mrf.mxu3  ;;  %v5527_v49 = vadd.f32 %v10895_v36, %v10889_v61 }
 0x3d8   :  { %6147 = vmatpush.bf16.msrb.mxu2 %v9364_v37 }
 0x3d9   :  { %v10893_v21 = vpop.f32.mrf.mxu1  ;;  %v5540_v55 = vadd.f32 %v10897_v20, %v5527_v49 }
 0x3da   :  { %6160 = vmatpush.bf16.msrb.mxu3 %v9428_v45  ;;  %v5669_v45 = vunpack.c.l.bf16 %v5662_v60 }
 0x3db   :  { %v5653_v31 = vmul.f32 0.2, %v5540_v55  ;;  %vm5649_vm10 = vcmp.ge.f32.partialorder %v5540_v55, 0.0 }
 0x3dc   :  { %6148 = vmatpush.bf16.msrb.mxu2 %v9356_v33 }
 0x3dd   :  { %v5657_v61 = vsel %vm5649_vm10, %v5540_v55, %v5653_v31  ;;  %v6180_v55 = vld [vmem:[%s10917_s3] sm:$0xff] }
 0x3de   :  { %v5528_v28 = vpop.f32.mrf.mxu2  ;;  %v6183_v31 = vunpack.c.l.bf16 %v6180_v55 }
 0x3df   :  { %v5606_v34 = vpop.f32.mrf.mxu0  ;;  %v5541_v11 = vpop.f32.mrf.mxu3  ;;  %v9332_v28 = vor.u32 %v10235_v26, %v9329_v3  ;;  %v10275_v26 = vld [vmem:[#allocation12 + $0x70] sm:$0xff]  ;;  %v10266_v3 = vld [vmem:[#allocation12 + $0x28] sm:$0xff] }
 0x3e0   :  { %v9417_v34 = vld [vmem:[#allocation9 + $0x1e8] sm:$0xf0]  ;;  %6149 = vmatpush.bf16.msrb.mxu2 %v9348_v14  ;;  %6335 = vmatpush.bf16.msra.mxu1 %v10275_v26 }
 0x3e1   :  { %v5619_v10 = vpop.f32.mrf.mxu1  ;;  %v9420_v59 = vor.u32 %v10257_v4, %v9417_v34 }
 0x3e3   :  { %6161 = vmatpush.bf16.msrb.mxu3 %v9420_v59  ;;  %v5743_v59 = vld [vmem:[#allocation10] sm:$0x3] }
 0x3e4   :  { %6150 = vmatpush.bf16.msrb.mxu2 %v9340_v47  ;;  %v10268_v47 = vld [vmem:[#allocation12 + $0x38] sm:$0xff] }
 0x3e5   :  { %6321 = vmatpush.bf16.msra.mxu0 %v10268_v47 }
 0x3e7   :  { %6162 = vmatpush.bf16.msrb.mxu3 %v9412_v51  ;;  %v5746_v51 = vperm.slane %v5743_v59, 1 }
 0x3e8   :  { %6151 = vmatpush.bf16.msrb.mxu2 %v9332_v28  ;;  %v10265_v28 = vld [vmem:[#allocation12 + $0x20] sm:$0xff] }
 0x3eb   :  { %6163 = vmatpush.bf16.msrb.mxu3 %v9404_v22  ;;  %v10267_v22 = vld [vmem:[#allocation12 + $0x30] sm:$0xff] }
 0x3ec   :  { %6152 = vmatpush.bf16.msrb.mxu2 %v9324_v12  ;;  %6322 = vmatpush.bf16.msra.mxu0 %v10267_v22  ;;  %v10262_v12 = vld [vmem:[#allocation12 + $0x8] sm:$0xff] }
 0x3f0   :  { %6153 = vmatpush.bf16.msrb.mxu2 %v9316_v13  ;;  %6323 = vmatpush.bf16.msra.mxu0 %v10266_v3 }
 0x3f4   :  { %6154 = vmatpush.bf16.msrb.mxu2 %v9308_v6  ;;  %6324 = vmatpush.bf16.msra.mxu0 %v10265_v28 }
 0x3f7   :  { %v5591_v38 = vpop.f32.mrf.mxu3 }
 0x3f8   :  { %v5578_v9 = vpop.f32.mrf.mxu2 }
 0x3f9   :  { %v5579_v10 = vadd.f32 %v5578_v9, %v10884_v40 }
 0x3fb   :  { %v5592_v35 = vadd.f32 %v5591_v38, %v5579_v10 }
 0x3fd   :  { %v5605_v15 = vadd.f32 %v10891_v1, %v5592_v35  ;;  %v9393_v1 = vld [vmem:[#allocation9 + $0x1b8] sm:$0xf0]  ;;  %v5745_v35 = vperm.slane %v5743_v59, 0 }
 0x3fe   :  { %v9396_v11 = vor.u32 %v10251_v27, %v9393_v1  ;;  %v10274_v27 = vld [vmem:[#allocation12 + $0x68] sm:$0xff]  ;;  %v10273_v1 = vld [vmem:[#allocation12 + $0x60] sm:$0xff] }
 0x3ff   :  { %v5618_v29 = vadd.f32 %v10893_v21, %v5605_v15  ;;  %v5593_v0 = vpop.f32.mrf.mxu3  ;;  %v10249_v21 = vld [vmem:[#allocation9 + $0x1a4] sm:$0xf]  ;;  %6336 = vmatpush.bf16.msra.mxu1 %v10274_v27 }
 0x400   :  { %v5580_v40 = vpop.f32.mrf.mxu2  ;;  %6164 = vmatpush.bf16.msrb.mxu3 %v9396_v11  ;;  %v9388_v7 = vor.u32 %v10249_v21, %v9385_v30  ;;  %v10264_v11 = vld [vmem:[#allocation12 + $0x18] sm:$0xff]  ;;  %v10271_v21 = vld [vmem:[#allocation12 + $0x50] sm:$0xff]  ;;  %v10270_v30 = vld [vmem:[#allocation12 + $0x48] sm:$0xff] }
 0x401   :  { %6325 = vmatpush.bf16.msra.mxu0 %v10264_v11 }
 0x403   :  { %6337 = vmatpush.bf16.msra.mxu1 %v10273_v1 }
 0x404   :  { %6165 = vmatpush.bf16.msrb.mxu3 %v9388_v7  ;;  %v10261_v7 = vld [vmem:[#allocation12] sm:$0xff] }
 0x405   :  { %6326 = vmatpush.bf16.msra.mxu0 %v10263_v52 }
 0x407   :  { %6338 = vmatpush.bf16.msra.mxu1 %v10272_v19 }
 0x408   :  { %6166 = vmatpush.bf16.msrb.mxu3 %v9380_v43 }
 0x409   :  { %6327 = vmatpush.bf16.msra.mxu0 %v10262_v12 }
 0x40b   :  { %6339 = vmatpush.bf16.msra.mxu1 %v10271_v21 }
 0x40c   :  { %6167 = vmatpush.bf16.msrb.mxu3 %v9372_v54 }
 0x40d   :  { %6328 = vmatpush.bf16.msra.mxu0 %v10261_v7 }
 0x40f   :  { %6340 = vmatpush.bf16.msra.mxu1 %v10270_v30 }
 0x413   :  { %6341 = vmatpush.bf16.msra.mxu1 %v10269_v57 }
 0x417   :  { %v5643_v41 = vpop.f32.mrf.mxu3 }
 0x418   :  { %v5630_v17 = vpop.f32.mrf.mxu2 }
 0x419   :  { %v5631_v56 = vadd.f32 %v5630_v17, %v5618_v29 }
 0x41b   :  { %v5644_v42 = vadd.f32 %v5643_v41, %v5631_v56 }
 0x41d   :  { %vm5650_vm11 = vcmp.ge.f32.partialorder %v5644_v42, 0.0  ;;  %v5654_v37 = vmul.f32 0.2, %v5644_v42 }
 0x41f   :  { %v5658_v36 = vsel %vm5650_vm11, %v5644_v42, %v5654_v37  ;;  %v5645_v4 = vpop.f32.mrf.mxu3  ;;  %v6184_v42 = vunpack.c.h.bf16 %v6180_v55 }
 0x420   :  { %v5660_v62 = vpack.c.bf16 %v5658_v36, %v5657_v61  ;;  %v5632_v8 = vpop.f32.mrf.mxu2  ;;  %v10293_v4 = vld [vmem:[#allocation13] ss:$0 sm:$0xff] }
 0x421   :  { %v6078_v50 = vpop.f32.mrf.mxu0  ;;  %v6091_v58 = vpop.f32.mrf.mxu1 }
 0x422   :  { %v5665_v20 = vunpack.c.l.bf16 %v5660_v62  ;;  %v5666_v9 = vunpack.c.h.bf16 %v5660_v62  ;;  %v6079_v2 = vadd.f32 %v6078_v50, %v5745_v35 }
 0x424   :  { %v5673_v38 = vmul.f32 %v5669_v45, %v5665_v20  ;;  %v5674_v33 = vmul.f32 %v5670_v5, %v5666_v9  ;;  %v6092_v14 = vadd.f32 %v6091_v58, %v6079_v2 }
 0x426   :  { %v5677_v34 = vpack.c.bf16 %v5673_v38, %v5673_v38  ;;  %v5678_v10 = vpack.c.bf16 %v5674_v33, %v5674_v33 }
 0x428   :  { %6103 = vmatmul.bf16.vlgmr.msra.gmra.mxu2 %v5677_v34  ;;  %6116 = vmatmul.bf16.vlgmr.msra.gmra.mxu3 %v5678_v10 }
 0x429   :  { %v6080_v16 = vpop.f32.mrf.mxu0  ;;  %v6093_v15 = vpop.f32.mrf.mxu1 }
 0x431   :  { %v6130_v29 = vpop.f32.mrf.mxu0  ;;  %v6143_v18 = vpop.f32.mrf.mxu1 }
 0x432   :  { %v6131_v63 = vadd.f32 %v6130_v29, %v5746_v51 }
 0x434   :  { %v6144_v24 = vadd.f32 %v6143_v18, %v6131_v63 }
 0x438   :  { %6155 = vmatmul.bf16.vlgmr.msrb.gmra.mxu2 %v5677_v34  ;;  %6168 = vmatmul.bf16.vlgmr.msrb.gmra.mxu3 %v5678_v10 }
 0x439   :  { %v6132_v40 = vpop.f32.mrf.mxu0  ;;  %v6145_v0 = vpop.f32.mrf.mxu1 }
 0x4ab   :  { %v6104_v25 = vpop.f32.mrf.mxu2  ;;  %v6117_v46 = vpop.f32.mrf.mxu3 }
 0x4ac   :  { %v6105_v43 = vadd.f32 %v6104_v25, %v6092_v14 }
 0x4ae   :  { %v6118_v44 = vadd.f32 %v6117_v46, %v6105_v43 }
 0x4b0   :  { %v6175_v6 = vmul.f32 0.2, %v6118_v44  ;;  %vm6173_vm12 = vcmp.ge.f32.partialorder %v6118_v44, 0.0 }
 0x4b2   :  { %v6177_v17 = vsel %vm6173_vm12, %v6118_v44, %v6175_v6 }
 0x4b3   :  { %v6106_v32 = vpop.f32.mrf.mxu2  ;;  %v6119_v13 = vpop.f32.mrf.mxu3 }
 0x4bb   :  { %v6156_v23 = vpop.f32.mrf.mxu2  ;;  %v6169_v48 = vpop.f32.mrf.mxu3 }
 0x4bc   :  { %v6157_v49 = vadd.f32 %v6156_v23, %v6144_v24 }
 0x4be   :  { %v6170_v53 = vadd.f32 %v6169_v48, %v6157_v49 }
 0x4c0   :  { %vm6174_vm13 = vcmp.ge.f32.partialorder %v6170_v53, 0.0  ;;  %v6176_v54 = vmul.f32 0.2, %v6170_v53 }
 0x4c2   :  { %v6178_v41 = vsel %vm6174_vm13, %v6170_v53, %v6176_v54 }
 0x4c3   :  { %v6179_v56 = vpack.c.bf16 %v6178_v41, %v6177_v17  ;;  %v6158_v37 = vpop.f32.mrf.mxu2  ;;  %v6171_v60 = vpop.f32.mrf.mxu3 }
 0x4c5   :  { %v6181_v61 = vunpack.c.l.bf16 %v6179_v56  ;;  %v6182_v36 = vunpack.c.h.bf16 %v6179_v56 }
 0x4c7   :  { %v6185_v62 = vmul.f32 %v6183_v31, %v6181_v61  ;;  %v6186_v45 = vmul.f32 %v6184_v42, %v6182_v36 }
 0x4c9   :  { %v6187_v5 = vpack.c.bf16 %v6185_v62, %v6185_v62  ;;  %v6188_v8 = vpack.c.bf16 %v6186_v45, %v6186_v45 }
 0x4cb   :  { %6329 = vmatmul.bf16.vlgmr.msra.gmra.mxu0 %v6187_v5  ;;  %6342 = vmatmul.bf16.vlgmr.msra.gmra.mxu1 %v6188_v8 }
 0x548   :  { %v6330_v20 = vpop.f32.mrf.mxu0  ;;  %v6343_v9 = vpop.f32.mrf.mxu1 }
 0x549   :  { %v6331_v38 = vadd.f32 %v10293_v4, %v6330_v20 }
 0x54b   :  { %v6344_v33 = vadd.f32 %v6343_v9, %v6331_v38 }
 0x54d   :  { %6347 = vst [vmem:[%s10926_s12] sm:$0xff] %v6344_v33 }
 0x550   :  { %v6332_v34 = vpop.f32.mrf.mxu0  ;;  %v6345_v10 = vpop.f32.mrf.mxu1 }
 0x551   :  { %6352 = vsyncpa [#allocation3], 1 }
 0x552   :  { %6353 = vsyncpa [#allocation5], 1 }
 0x553   :  { %6354 = vsyncpa [#allocation8], 1 }
 0x554   :  { %6355 = vsyncpa [#allocation11], 1 }
 0x555   :  { %6356 = vsyncpa [#allocation14], 1 }

</bundles_post_ra>
